<compile_context>
chip_gen: v6e
topology: v6e:2x2x1
jax: 0.10.0
libtpu: 0.0.40
codegen_flags: <defaults>
</compile_context>

<pallas_src>
import jax
import jax.numpy as jnp
from jax import lax
from jax.experimental import pallas as pl
from jax.experimental.pallas import tpu as pltpu


# ---------------------------------------------------------------------------
# Wrapper-side weight preprocessing (pure JAX glue, tiny, done once per call)
# ---------------------------------------------------------------------------
def _conv1_banded_weight(w1):
    # w1: (16, 1, 5, 5) = (O, I=1, KH, KW)  ->  (5*28, 28*16)
    # Wband[kh*28 + c, j*16 + o] = w1[o, 0, kh, c - j + 2] inside the band, else 0.
    w1r = jnp.transpose(w1[:, 0], (1, 2, 0))                  # (KH, KW, O)
    c = jnp.arange(28)[:, None]                               # input column
    j = jnp.arange(28)[None, :]                               # output column
    kw = c - j + 2
    valid = (kw >= 0) & (kw < 5)
    m = w1r[:, jnp.clip(kw, 0, 4), :]                         # (KH, 28, 28, O)
    m = jnp.where(valid[None, :, :, None], m, 0.0)
    return m.reshape(5 * 28, 28 * 16)


def _conv2_banded_weight(w2):
    # w2: (32, 16, 5, 5) = (O, I, KH, KW)  ->  (5*14*16, 14*32)
    # Wband[kh*224 + c*16 + ci, j*32 + co] = w2[co, ci, kh, c - j + 2] inside band.
    w2r = jnp.transpose(w2, (2, 3, 1, 0))                     # (KH, KW, I, O)
    c = jnp.arange(14)[:, None]
    j = jnp.arange(14)[None, :]
    kw = c - j + 2
    valid = (kw >= 0) & (kw < 5)
    m = w2r[:, jnp.clip(kw, 0, 4), :, :]                      # (KH, 14, 14, I, O)
    m = jnp.where(valid[None, :, :, None, None], m, 0.0)
    m = jnp.transpose(m, (0, 1, 3, 2, 4))                     # (KH, c, I, j, O)
    return m.reshape(5 * 14 * 16, 14 * 32)


# ---------------------------------------------------------------------------
# In-kernel helpers (only MXU dots, lane slices/concat, elementwise ops)
# ---------------------------------------------------------------------------
def _selector(n_rows, n_cols, scale, offset):
    # Exact 0/1 matrix: sel[i, r] = 1.0 where r == scale * i + offset.
    i = lax.broadcasted_iota(jnp.int32, (n_rows, n_cols), 0)
    r = lax.broadcasted_iota(jnp.int32, (n_rows, n_cols), 1)
    return (r == scale * i + offset).astype(jnp.float32)


def _row_shift_cat(x, n):
    # lhs[i, kh*cols + c] = x[i + kh - 2, c] (zero rows outside the image),
    # built with 5 exact selection matmuls + a lane-dim concat.
    pieces = []
    for kh in range(5):
        sel = _selector(n, n, 1, kh - 2)
        pieces.append(jnp.dot(sel, x, preferred_element_type=jnp.float32))
    return jnp.concatenate(pieces, axis=1)


def _maxpool2x2(x, h, w, c):
    # x: (h, w*c) lane-dense conv output -> (h//2, (w//2)*c).
    pe = _selector(h // 2, h, 2, 0)
    po = _selector(h // 2, h, 2, 1)
    rows = jnp.maximum(jnp.dot(pe, x, preferred_element_type=jnp.float32),
                       jnp.dot(po, x, preferred_element_type=jnp.float32))
    cols = [jnp.maximum(rows[:, (2 * j) * c:(2 * j + 1) * c],
                        rows[:, (2 * j + 1) * c:(2 * j + 2) * c])
            for j in range(w // 2)]
    return jnp.concatenate(cols, axis=1)


# ---------------------------------------------------------------------------
# Fused forward kernel: one image per grid step, everything in VMEM
# ---------------------------------------------------------------------------
def _cnn_kernel(x_ref, w1_ref, b1_ref, w2_ref, b2_ref, wfc_ref, bfc_ref, o_ref):
    f32 = jnp.float32
    x = x_ref[0]                                               # (28, 28) f32

    # conv1 + ReLU: (28, 140) @ (140, 448) -> (28, 28*16) lane-dense
    lhs1 = _row_shift_cat(x, 28)
    c1 = jnp.dot(lhs1.astype(jnp.bfloat16), w1_ref[...],
                 preferred_element_type=f32) + b1_ref[...]
    c1 = jnp.maximum(c1, 0.0)
    h1 = _maxpool2x2(c1, 28, 28, 16)                           # (14, 14*16)

    # conv2 + ReLU: (14, 1120) @ (1120, 448) -> (14, 14*32) lane-dense
    lhs2 = _row_shift_cat(h1, 14)
    c2 = jnp.dot(lhs2.astype(jnp.bfloat16), w2_ref[...],
                 preferred_element_type=f32) + b2_ref[...]
    c2 = jnp.maximum(c2, 0.0)
    h2 = _maxpool2x2(c2, 14, 14, 32)                           # (7, 7*32)

    # flatten rows into lanes -> (1, 1568) in (h, w, c) order, then Linear
    flat = jnp.concatenate([h2[h:h + 1, :] for h in range(7)], axis=1)
    logits = jnp.dot(flat.astype(jnp.bfloat16), wfc_ref[...],
                     preferred_element_type=f32) + bfc_ref[...]
    o_ref[0] = logits                                          # (1, 10)


def cnn_forward(params, x_nchw):
    b = x_nchw.shape[0]
    x = x_nchw.reshape(b, 28, 28).astype(jnp.float32)          # C_in == 1

    # Preprocess weights (banded conv matrices, tiled biases, NCHW-order FC weight).
    w1cat = _conv1_banded_weight(params["w1"]).astype(jnp.bfloat16)      # (140, 448)
    b1t = jnp.tile(params["b1"], 28).reshape(1, 448).astype(jnp.float32)
    w2cat = _conv2_banded_weight(params["w2"]).astype(jnp.bfloat16)      # (1120, 448)
    b2t = jnp.tile(params["b2"], 14).reshape(1, 448).astype(jnp.float32)
    # PyTorch flattens NCHW (c, h, w); reorder FC weight rows to our (h, w, c) flatten.
    wfc = (params["w_out"].reshape(10, 32, 7, 7)
           .transpose(2, 3, 1, 0).reshape(7 * 7 * 32, 10).astype(jnp.bfloat16))
    bfc = params["b_out"].reshape(1, 10).astype(jnp.float32)

    out = pl.pallas_call(
        _cnn_kernel,
        out_shape=jax.ShapeDtypeStruct((b, 1, 10), jnp.float32),
        grid_spec=pltpu.PrefetchScalarGridSpec(
            num_scalar_prefetch=0,
            grid=(b,),
            in_specs=[
                pl.BlockSpec((1, 28, 28), lambda i: (i, 0, 0)),   # per-image input
                pl.BlockSpec((140, 448), lambda i: (0, 0)),       # conv1 banded weight
                pl.BlockSpec((1, 448), lambda i: (0, 0)),         # conv1 bias (tiled)
                pl.BlockSpec((1120, 448), lambda i: (0, 0)),      # conv2 banded weight
                pl.BlockSpec((1, 448), lambda i: (0, 0)),         # conv2 bias (tiled)
                pl.BlockSpec((1568, 10), lambda i: (0, 0)),       # FC weight
                pl.BlockSpec((1, 10), lambda i: (0, 0)),          # FC bias
            ],
            out_specs=pl.BlockSpec((1, 1, 10), lambda i: (i, 0, 0)),
        ),
        compiler_params=pltpu.CompilerParams(
            dimension_semantics=("parallel",),
        ),
    )(x, w1cat, b1t, w2cat, b2t, wfc, bfc)
    return out.reshape(b, 10)


def init_params(key):
    """Deterministic parameters, shapes in PyTorch conventions."""
    ks = jax.random.split(key, 6)
    return {
        "w1": 0.10 * jax.random.normal(ks[0], (16, 1, 5, 5), jnp.float32),
        "b1": 0.10 * jax.random.normal(ks[1], (16,), jnp.float32),
        "w2": 0.05 * jax.random.normal(ks[2], (32, 16, 5, 5), jnp.float32),
        "b2": 0.10 * jax.random.normal(ks[3], (32,), jnp.float32),
        "w_out": 0.02 * jax.random.normal(ks[4], (10, 32 * 7 * 7), jnp.float32),
        "b_out": 0.10 * jax.random.normal(ks[5], (10,), jnp.float32),
    }


if __name__ == "__main__":
    key = jax.random.PRNGKey(0)
    pkey, xkey = jax.random.split(key)
    params = init_params(pkey)
    # forward implies MNIST-sized input: 28x28 -> pool -> 14 -> pool -> 7 (32*7*7)
    x = jax.random.normal(xkey, (2, 1, 28, 28), jnp.float32)   # NCHW like PyTorch
    out = jax.jit(cnn_forward)(params, x)
    out = jax.block_until_ready(out)
    assert out.shape == (2, 10) and out.dtype == jnp.float32
    print("KERNEL_OK")
</pallas_src>

<mosaic_0001>
module attributes {stable_mosaic.version = 11 : i64} {
  func.func @_cnn_kernel(%arg0: i32, %arg1: memref<1x28x28xf32, #tpu.memory_space<vmem>>, %arg2: memref<140x448xbf16, #tpu.memory_space<vmem>>, %arg3: memref<1x448xf32, #tpu.memory_space<vmem>>, %arg4: memref<1120x448xbf16, #tpu.memory_space<vmem>>, %arg5: memref<1x448xf32, #tpu.memory_space<vmem>>, %arg6: memref<1568x10xbf16, #tpu.memory_space<vmem>>, %arg7: memref<1x10xf32, #tpu.memory_space<vmem>>, %arg8: memref<1x1x10xf32, #tpu.memory_space<vmem>>) attributes {dimension_semantics = [#tpu.dimension_semantics<parallel>], iteration_bounds = array<i64: 2>, scalar_prefetch = 0 : i64, scratch_operands = 0 : i64, tpu.core_type = #tpu.core_type<tc>, window_params = [{transform_indices = @transform_0, window_bounds = array<i64: 1, 28, 28>}, {pipeline_mode = #tpu.pipeline_mode<synchronous>, transform_indices = @transform_1, window_bounds = array<i64: 140, 448>}, {pipeline_mode = #tpu.pipeline_mode<synchronous>, transform_indices = @transform_2, window_bounds = array<i64: 1, 448>}, {pipeline_mode = #tpu.pipeline_mode<synchronous>, transform_indices = @transform_3, window_bounds = array<i64: 1120, 448>}, {pipeline_mode = #tpu.pipeline_mode<synchronous>, transform_indices = @transform_4, window_bounds = array<i64: 1, 448>}, {pipeline_mode = #tpu.pipeline_mode<synchronous>, transform_indices = @transform_5, window_bounds = array<i64: 1568, 10>}, {pipeline_mode = #tpu.pipeline_mode<synchronous>, transform_indices = @transform_6, window_bounds = array<i64: 1, 10>}, {transform_indices = @transform_7, window_bounds = array<i64: 1, 1, 10>}]} {
    %c0 = arith.constant 0 : index
    %c0_0 = arith.constant 0 : index
    %c0_1 = arith.constant 0 : index
    %0 = vector.load %arg1[%c0, %c0_0, %c0_1] : memref<1x28x28xf32, #tpu.memory_space<vmem>>, vector<1x28x28xf32>
    %1 = vector.shape_cast %0 : vector<1x28x28xf32> to vector<28x28xf32>
    %2 = tpu.iota {dimensions = array<i32: 0>} : vector<28x28xi32>
    %3 = tpu.iota {dimensions = array<i32: 1>} : vector<28x28xi32>
    %c1_i32 = arith.constant 1 : i32
    %4 = vector.broadcast %c1_i32 : i32 to vector<28x28xi32>
    %5 = arith.muli %4, %2 : vector<28x28xi32>
    %c-2_i32 = arith.constant -2 : i32
    %6 = vector.broadcast %c-2_i32 : i32 to vector<28x28xi32>
    %7 = arith.addi %5, %6 : vector<28x28xi32>
    %8 = arith.cmpi eq, %3, %7 : vector<28x28xi32>
    %9 = arith.extui %8 : vector<28x28xi1> to vector<28x28xi32>
    %10 = arith.sitofp %9 : vector<28x28xi32> to vector<28x28xf32>
    %cst = arith.constant dense<0.000000e+00> : vector<28x28xf32>
    %11 = tpu.matmul %10, %1, %cst {dimension_numbers = #tpu.dot_dimension_numbers<[1], [0], [0], [1], [0, 0, 1, 1], [], []>} : vector<28x28xf32>, vector<28x28xf32>, vector<28x28xf32> -> vector<28x28xf32>
    %12 = tpu.iota {dimensions = array<i32: 0>} : vector<28x28xi32>
    %13 = tpu.iota {dimensions = array<i32: 1>} : vector<28x28xi32>
    %c1_i32_2 = arith.constant 1 : i32
    %14 = vector.broadcast %c1_i32_2 : i32 to vector<28x28xi32>
    %15 = arith.muli %14, %12 : vector<28x28xi32>
    %c-1_i32 = arith.constant -1 : i32
    %16 = vector.broadcast %c-1_i32 : i32 to vector<28x28xi32>
    %17 = arith.addi %15, %16 : vector<28x28xi32>
    %18 = arith.cmpi eq, %13, %17 : vector<28x28xi32>
    %19 = arith.extui %18 : vector<28x28xi1> to vector<28x28xi32>
    %20 = arith.sitofp %19 : vector<28x28xi32> to vector<28x28xf32>
    %cst_3 = arith.constant dense<0.000000e+00> : vector<28x28xf32>
    %21 = tpu.matmul %20, %1, %cst_3 {dimension_numbers = #tpu.dot_dimension_numbers<[1], [0], [0], [1], [0, 0, 1, 1], [], []>} : vector<28x28xf32>, vector<28x28xf32>, vector<28x28xf32> -> vector<28x28xf32>
    %22 = tpu.iota {dimensions = array<i32: 0>} : vector<28x28xi32>
    %23 = tpu.iota {dimensions = array<i32: 1>} : vector<28x28xi32>
    %c1_i32_4 = arith.constant 1 : i32
    %24 = vector.broadcast %c1_i32_4 : i32 to vector<28x28xi32>
    %25 = arith.muli %24, %22 : vector<28x28xi32>
    %c0_i32 = arith.constant 0 : i32
    %26 = vector.broadcast %c0_i32 : i32 to vector<28x28xi32>
    %27 = arith.addi %25, %26 : vector<28x28xi32>
    %28 = arith.cmpi eq, %23, %27 : vector<28x28xi32>
    %29 = arith.extui %28 : vector<28x28xi1> to vector<28x28xi32>
    %30 = arith.sitofp %29 : vector<28x28xi32> to vector<28x28xf32>
    %cst_5 = arith.constant dense<0.000000e+00> : vector<28x28xf32>
    %31 = tpu.matmul %30, %1, %cst_5 {dimension_numbers = #tpu.dot_dimension_numbers<[1], [0], [0], [1], [0, 0, 1, 1], [], []>} : vector<28x28xf32>, vector<28x28xf32>, vector<28x28xf32> -> vector<28x28xf32>
    %32 = tpu.iota {dimensions = array<i32: 0>} : vector<28x28xi32>
    %33 = tpu.iota {dimensions = array<i32: 1>} : vector<28x28xi32>
    %c1_i32_6 = arith.constant 1 : i32
    %34 = vector.broadcast %c1_i32_6 : i32 to vector<28x28xi32>
    %35 = arith.muli %34, %32 : vector<28x28xi32>
    %c1_i32_7 = arith.constant 1 : i32
    %36 = vector.broadcast %c1_i32_7 : i32 to vector<28x28xi32>
    %37 = arith.addi %35, %36 : vector<28x28xi32>
    %38 = arith.cmpi eq, %33, %37 : vector<28x28xi32>
    %39 = arith.extui %38 : vector<28x28xi1> to vector<28x28xi32>
    %40 = arith.sitofp %39 : vector<28x28xi32> to vector<28x28xf32>
    %cst_8 = arith.constant dense<0.000000e+00> : vector<28x28xf32>
    %41 = tpu.matmul %40, %1, %cst_8 {dimension_numbers = #tpu.dot_dimension_numbers<[1], [0], [0], [1], [0, 0, 1, 1], [], []>} : vector<28x28xf32>, vector<28x28xf32>, vector<28x28xf32> -> vector<28x28xf32>
    %42 = tpu.iota {dimensions = array<i32: 0>} : vector<28x28xi32>
    %43 = tpu.iota {dimensions = array<i32: 1>} : vector<28x28xi32>
    %c1_i32_9 = arith.constant 1 : i32
    %44 = vector.broadcast %c1_i32_9 : i32 to vector<28x28xi32>
    %45 = arith.muli %44, %42 : vector<28x28xi32>
    %c2_i32 = arith.constant 2 : i32
    %46 = vector.broadcast %c2_i32 : i32 to vector<28x28xi32>
    %47 = arith.addi %45, %46 : vector<28x28xi32>
    %48 = arith.cmpi eq, %43, %47 : vector<28x28xi32>
    %49 = arith.extui %48 : vector<28x28xi1> to vector<28x28xi32>
    %50 = arith.sitofp %49 : vector<28x28xi32> to vector<28x28xf32>
    %cst_10 = arith.constant dense<0.000000e+00> : vector<28x28xf32>
    %51 = tpu.matmul %50, %1, %cst_10 {dimension_numbers = #tpu.dot_dimension_numbers<[1], [0], [0], [1], [0, 0, 1, 1], [], []>} : vector<28x28xf32>, vector<28x28xf32>, vector<28x28xf32> -> vector<28x28xf32>
    %52 = tpu.concatenate %11, %21, %31, %41, %51 in 1 : vector<28x28xf32>, vector<28x28xf32>, vector<28x28xf32>, vector<28x28xf32>, vector<28x28xf32> -> vector<28x140xf32>
    %53 = arith.truncf %52 : vector<28x140xf32> to vector<28x140xbf16>
    %c0_11 = arith.constant 0 : index
    %c0_12 = arith.constant 0 : index
    %54 = vector.load %arg2[%c0_11, %c0_12] : memref<140x448xbf16, #tpu.memory_space<vmem>>, vector<140x448xbf16>
    %cst_13 = arith.constant dense<0.000000e+00> : vector<28x448xf32>
    %55 = tpu.matmul %53, %54, %cst_13 {dimension_numbers = #tpu.dot_dimension_numbers<[1], [0], [0], [1], [0, 0, 1, 1], [], []>} : vector<28x140xbf16>, vector<140x448xbf16>, vector<28x448xf32> -> vector<28x448xf32>
    %c0_14 = arith.constant 0 : index
    %c0_15 = arith.constant 0 : index
    %56 = vector.load %arg3[%c0_14, %c0_15] : memref<1x448xf32, #tpu.memory_space<vmem>>, vector<1x448xf32>
    %57 = vector.broadcast %56 : vector<1x448xf32> to vector<28x448xf32>
    %58 = arith.addf %55, %57 : vector<28x448xf32>
    %cst_16 = arith.constant 0.000000e+00 : f32
    %59 = vector.broadcast %cst_16 : f32 to vector<28x448xf32>
    %60 = arith.maximumf %58, %59 : vector<28x448xf32>
    %61 = tpu.iota {dimensions = array<i32: 0>} : vector<14x28xi32>
    %62 = tpu.iota {dimensions = array<i32: 1>} : vector<14x28xi32>
    %c2_i32_17 = arith.constant 2 : i32
    %63 = vector.broadcast %c2_i32_17 : i32 to vector<14x28xi32>
    %64 = arith.muli %63, %61 : vector<14x28xi32>
    %c0_i32_18 = arith.constant 0 : i32
    %65 = vector.broadcast %c0_i32_18 : i32 to vector<14x28xi32>
    %66 = arith.addi %64, %65 : vector<14x28xi32>
    %67 = arith.cmpi eq, %62, %66 : vector<14x28xi32>
    %68 = arith.extui %67 : vector<14x28xi1> to vector<14x28xi32>
    %69 = arith.sitofp %68 : vector<14x28xi32> to vector<14x28xf32>
    %70 = tpu.iota {dimensions = array<i32: 0>} : vector<14x28xi32>
    %71 = tpu.iota {dimensions = array<i32: 1>} : vector<14x28xi32>
    %c2_i32_19 = arith.constant 2 : i32
    %72 = vector.broadcast %c2_i32_19 : i32 to vector<14x28xi32>
    %73 = arith.muli %72, %70 : vector<14x28xi32>
    %c1_i32_20 = arith.constant 1 : i32
    %74 = vector.broadcast %c1_i32_20 : i32 to vector<14x28xi32>
    %75 = arith.addi %73, %74 : vector<14x28xi32>
    %76 = arith.cmpi eq, %71, %75 : vector<14x28xi32>
    %77 = arith.extui %76 : vector<14x28xi1> to vector<14x28xi32>
    %78 = arith.sitofp %77 : vector<14x28xi32> to vector<14x28xf32>
    %cst_21 = arith.constant dense<0.000000e+00> : vector<14x448xf32>
    %79 = tpu.matmul %69, %60, %cst_21 {dimension_numbers = #tpu.dot_dimension_numbers<[1], [0], [0], [1], [0, 0, 1, 1], [], []>} : vector<14x28xf32>, vector<28x448xf32>, vector<14x448xf32> -> vector<14x448xf32>
    %cst_22 = arith.constant dense<0.000000e+00> : vector<14x448xf32>
    %80 = tpu.matmul %78, %60, %cst_22 {dimension_numbers = #tpu.dot_dimension_numbers<[1], [0], [0], [1], [0, 0, 1, 1], [], []>} : vector<14x28xf32>, vector<28x448xf32>, vector<14x448xf32> -> vector<14x448xf32>
    %81 = arith.maximumf %79, %80 : vector<14x448xf32>
    %82 = vector.extract_strided_slice %81 {offsets = [0, 0], sizes = [14, 16], strides = [1, 1]} : vector<14x448xf32> to vector<14x16xf32>
    %83 = vector.extract_strided_slice %81 {offsets = [0, 16], sizes = [14, 16], strides = [1, 1]} : vector<14x448xf32> to vector<14x16xf32>
    %84 = arith.maximumf %82, %83 : vector<14x16xf32>
    %85 = vector.extract_strided_slice %81 {offsets = [0, 32], sizes = [14, 16], strides = [1, 1]} : vector<14x448xf32> to vector<14x16xf32>
    %86 = vector.extract_strided_slice %81 {offsets = [0, 48], sizes = [14, 16], strides = [1, 1]} : vector<14x448xf32> to vector<14x16xf32>
    %87 = arith.maximumf %85, %86 : vector<14x16xf32>
    %88 = vector.extract_strided_slice %81 {offsets = [0, 64], sizes = [14, 16], strides = [1, 1]} : vector<14x448xf32> to vector<14x16xf32>
    %89 = vector.extract_strided_slice %81 {offsets = [0, 80], sizes = [14, 16], strides = [1, 1]} : vector<14x448xf32> to vector<14x16xf32>
    %90 = arith.maximumf %88, %89 : vector<14x16xf32>
    %91 = vector.extract_strided_slice %81 {offsets = [0, 96], sizes = [14, 16], strides = [1, 1]} : vector<14x448xf32> to vector<14x16xf32>
    %92 = vector.extract_strided_slice %81 {offsets = [0, 112], sizes = [14, 16], strides = [1, 1]} : vector<14x448xf32> to vector<14x16xf32>
    %93 = arith.maximumf %91, %92 : vector<14x16xf32>
    %94 = vector.extract_strided_slice %81 {offsets = [0, 128], sizes = [14, 16], strides = [1, 1]} : vector<14x448xf32> to vector<14x16xf32>
    %95 = vector.extract_strided_slice %81 {offsets = [0, 144], sizes = [14, 16], strides = [1, 1]} : vector<14x448xf32> to vector<14x16xf32>
    %96 = arith.maximumf %94, %95 : vector<14x16xf32>
    %97 = vector.extract_strided_slice %81 {offsets = [0, 160], sizes = [14, 16], strides = [1, 1]} : vector<14x448xf32> to vector<14x16xf32>
    %98 = vector.extract_strided_slice %81 {offsets = [0, 176], sizes = [14, 16], strides = [1, 1]} : vector<14x448xf32> to vector<14x16xf32>
    %99 = arith.maximumf %97, %98 : vector<14x16xf32>
    %100 = vector.extract_strided_slice %81 {offsets = [0, 192], sizes = [14, 16], strides = [1, 1]} : vector<14x448xf32> to vector<14x16xf32>
    %101 = vector.extract_strided_slice %81 {offsets = [0, 208], sizes = [14, 16], strides = [1, 1]} : vector<14x448xf32> to vector<14x16xf32>
    %102 = arith.maximumf %100, %101 : vector<14x16xf32>
    %103 = vector.extract_strided_slice %81 {offsets = [0, 224], sizes = [14, 16], strides = [1, 1]} : vector<14x448xf32> to vector<14x16xf32>
    %104 = vector.extract_strided_slice %81 {offsets = [0, 240], sizes = [14, 16], strides = [1, 1]} : vector<14x448xf32> to vector<14x16xf32>
    %105 = arith.maximumf %103, %104 : vector<14x16xf32>
    %106 = vector.extract_strided_slice %81 {offsets = [0, 256], sizes = [14, 16], strides = [1, 1]} : vector<14x448xf32> to vector<14x16xf32>
    %107 = vector.extract_strided_slice %81 {offsets = [0, 272], sizes = [14, 16], strides = [1, 1]} : vector<14x448xf32> to vector<14x16xf32>
    %108 = arith.maximumf %106, %107 : vector<14x16xf32>
    %109 = vector.extract_strided_slice %81 {offsets = [0, 288], sizes = [14, 16], strides = [1, 1]} : vector<14x448xf32> to vector<14x16xf32>
    %110 = vector.extract_strided_slice %81 {offsets = [0, 304], sizes = [14, 16], strides = [1, 1]} : vector<14x448xf32> to vector<14x16xf32>
    %111 = arith.maximumf %109, %110 : vector<14x16xf32>
    %112 = vector.extract_strided_slice %81 {offsets = [0, 320], sizes = [14, 16], strides = [1, 1]} : vector<14x448xf32> to vector<14x16xf32>
    %113 = vector.extract_strided_slice %81 {offsets = [0, 336], sizes = [14, 16], strides = [1, 1]} : vector<14x448xf32> to vector<14x16xf32>
    %114 = arith.maximumf %112, %113 : vector<14x16xf32>
    %115 = vector.extract_strided_slice %81 {offsets = [0, 352], sizes = [14, 16], strides = [1, 1]} : vector<14x448xf32> to vector<14x16xf32>
    %116 = vector.extract_strided_slice %81 {offsets = [0, 368], sizes = [14, 16], strides = [1, 1]} : vector<14x448xf32> to vector<14x16xf32>
    %117 = arith.maximumf %115, %116 : vector<14x16xf32>
    %118 = vector.extract_strided_slice %81 {offsets = [0, 384], sizes = [14, 16], strides = [1, 1]} : vector<14x448xf32> to vector<14x16xf32>
    %119 = vector.extract_strided_slice %81 {offsets = [0, 400], sizes = [14, 16], strides = [1, 1]} : vector<14x448xf32> to vector<14x16xf32>
    %120 = arith.maximumf %118, %119 : vector<14x16xf32>
    %121 = vector.extract_strided_slice %81 {offsets = [0, 416], sizes = [14, 16], strides = [1, 1]} : vector<14x448xf32> to vector<14x16xf32>
    %122 = vector.extract_strided_slice %81 {offsets = [0, 432], sizes = [14, 16], strides = [1, 1]} : vector<14x448xf32> to vector<14x16xf32>
    %123 = arith.maximumf %121, %122 : vector<14x16xf32>
    %124 = tpu.concatenate %84, %87, %90, %93, %96, %99, %102, %105, %108, %111, %114, %117, %120, %123 in 1 : vector<14x16xf32>, vector<14x16xf32>, vector<14x16xf32>, vector<14x16xf32>, vector<14x16xf32>, vector<14x16xf32>, vector<14x16xf32>, vector<14x16xf32>, vector<14x16xf32>, vector<14x16xf32>, vector<14x16xf32>, vector<14x16xf32>, vector<14x16xf32>, vector<14x16xf32> -> vector<14x224xf32>
    %125 = tpu.iota {dimensions = array<i32: 0>} : vector<14x14xi32>
    %126 = tpu.iota {dimensions = array<i32: 1>} : vector<14x14xi32>
    %c1_i32_23 = arith.constant 1 : i32
    %127 = vector.broadcast %c1_i32_23 : i32 to vector<14x14xi32>
    %128 = arith.muli %127, %125 : vector<14x14xi32>
    %c-2_i32_24 = arith.constant -2 : i32
    %129 = vector.broadcast %c-2_i32_24 : i32 to vector<14x14xi32>
    %130 = arith.addi %128, %129 : vector<14x14xi32>
    %131 = arith.cmpi eq, %126, %130 : vector<14x14xi32>
    %132 = arith.extui %131 : vector<14x14xi1> to vector<14x14xi32>
    %133 = arith.sitofp %132 : vector<14x14xi32> to vector<14x14xf32>
    %cst_25 = arith.constant dense<0.000000e+00> : vector<14x224xf32>
    %134 = tpu.matmul %133, %124, %cst_25 {dimension_numbers = #tpu.dot_dimension_numbers<[1], [0], [0], [1], [0, 0, 1, 1], [], []>} : vector<14x14xf32>, vector<14x224xf32>, vector<14x224xf32> -> vector<14x224xf32>
    %135 = tpu.iota {dimensions = array<i32: 0>} : vector<14x14xi32>
    %136 = tpu.iota {dimensions = array<i32: 1>} : vector<14x14xi32>
    %c1_i32_26 = arith.constant 1 : i32
    %137 = vector.broadcast %c1_i32_26 : i32 to vector<14x14xi32>
    %138 = arith.muli %137, %135 : vector<14x14xi32>
    %c-1_i32_27 = arith.constant -1 : i32
    %139 = vector.broadcast %c-1_i32_27 : i32 to vector<14x14xi32>
    %140 = arith.addi %138, %139 : vector<14x14xi32>
    %141 = arith.cmpi eq, %136, %140 : vector<14x14xi32>
    %142 = arith.extui %141 : vector<14x14xi1> to vector<14x14xi32>
    %143 = arith.sitofp %142 : vector<14x14xi32> to vector<14x14xf32>
    %cst_28 = arith.constant dense<0.000000e+00> : vector<14x224xf32>
    %144 = tpu.matmul %143, %124, %cst_28 {dimension_numbers = #tpu.dot_dimension_numbers<[1], [0], [0], [1], [0, 0, 1, 1], [], []>} : vector<14x14xf32>, vector<14x224xf32>, vector<14x224xf32> -> vector<14x224xf32>
    %145 = tpu.iota {dimensions = array<i32: 0>} : vector<14x14xi32>
    %146 = tpu.iota {dimensions = array<i32: 1>} : vector<14x14xi32>
    %c1_i32_29 = arith.constant 1 : i32
    %147 = vector.broadcast %c1_i32_29 : i32 to vector<14x14xi32>
    %148 = arith.muli %147, %145 : vector<14x14xi32>
    %c0_i32_30 = arith.constant 0 : i32
    %149 = vector.broadcast %c0_i32_30 : i32 to vector<14x14xi32>
    %150 = arith.addi %148, %149 : vector<14x14xi32>
    %151 = arith.cmpi eq, %146, %150 : vector<14x14xi32>
    %152 = arith.extui %151 : vector<14x14xi1> to vector<14x14xi32>
    %153 = arith.sitofp %152 : vector<14x14xi32> to vector<14x14xf32>
    %cst_31 = arith.constant dense<0.000000e+00> : vector<14x224xf32>
    %154 = tpu.matmul %153, %124, %cst_31 {dimension_numbers = #tpu.dot_dimension_numbers<[1], [0], [0], [1], [0, 0, 1, 1], [], []>} : vector<14x14xf32>, vector<14x224xf32>, vector<14x224xf32> -> vector<14x224xf32>
    %155 = tpu.iota {dimensions = array<i32: 0>} : vector<14x14xi32>
    %156 = tpu.iota {dimensions = array<i32: 1>} : vector<14x14xi32>
    %c1_i32_32 = arith.constant 1 : i32
    %157 = vector.broadcast %c1_i32_32 : i32 to vector<14x14xi32>
    %158 = arith.muli %157, %155 : vector<14x14xi32>
    %c1_i32_33 = arith.constant 1 : i32
    %159 = vector.broadcast %c1_i32_33 : i32 to vector<14x14xi32>
    %160 = arith.addi %158, %159 : vector<14x14xi32>
    %161 = arith.cmpi eq, %156, %160 : vector<14x14xi32>
    %162 = arith.extui %161 : vector<14x14xi1> to vector<14x14xi32>
    %163 = arith.sitofp %162 : vector<14x14xi32> to vector<14x14xf32>
    %cst_34 = arith.constant dense<0.000000e+00> : vector<14x224xf32>
    %164 = tpu.matmul %163, %124, %cst_34 {dimension_numbers = #tpu.dot_dimension_numbers<[1], [0], [0], [1], [0, 0, 1, 1], [], []>} : vector<14x14xf32>, vector<14x224xf32>, vector<14x224xf32> -> vector<14x224xf32>
    %165 = tpu.iota {dimensions = array<i32: 0>} : vector<14x14xi32>
    %166 = tpu.iota {dimensions = array<i32: 1>} : vector<14x14xi32>
    %c1_i32_35 = arith.constant 1 : i32
    %167 = vector.broadcast %c1_i32_35 : i32 to vector<14x14xi32>
    %168 = arith.muli %167, %165 : vector<14x14xi32>
    %c2_i32_36 = arith.constant 2 : i32
    %169 = vector.broadcast %c2_i32_36 : i32 to vector<14x14xi32>
    %170 = arith.addi %168, %169 : vector<14x14xi32>
    %171 = arith.cmpi eq, %166, %170 : vector<14x14xi32>
    %172 = arith.extui %171 : vector<14x14xi1> to vector<14x14xi32>
    %173 = arith.sitofp %172 : vector<14x14xi32> to vector<14x14xf32>
    %cst_37 = arith.constant dense<0.000000e+00> : vector<14x224xf32>
    %174 = tpu.matmul %173, %124, %cst_37 {dimension_numbers = #tpu.dot_dimension_numbers<[1], [0], [0], [1], [0, 0, 1, 1], [], []>} : vector<14x14xf32>, vector<14x224xf32>, vector<14x224xf32> -> vector<14x224xf32>
    %175 = tpu.concatenate %134, %144, %154, %164, %174 in 1 : vector<14x224xf32>, vector<14x224xf32>, vector<14x224xf32>, vector<14x224xf32>, vector<14x224xf32> -> vector<14x1120xf32>
    %176 = arith.truncf %175 : vector<14x1120xf32> to vector<14x1120xbf16>
    %c0_38 = arith.constant 0 : index
    %c0_39 = arith.constant 0 : index
    %177 = vector.load %arg4[%c0_38, %c0_39] : memref<1120x448xbf16, #tpu.memory_space<vmem>>, vector<1120x448xbf16>
    %cst_40 = arith.constant dense<0.000000e+00> : vector<14x448xf32>
    %178 = tpu.matmul %176, %177, %cst_40 {dimension_numbers = #tpu.dot_dimension_numbers<[1], [0], [0], [1], [0, 0, 1, 1], [], []>} : vector<14x1120xbf16>, vector<1120x448xbf16>, vector<14x448xf32> -> vector<14x448xf32>
    %c0_41 = arith.constant 0 : index
    %c0_42 = arith.constant 0 : index
    %179 = vector.load %arg5[%c0_41, %c0_42] : memref<1x448xf32, #tpu.memory_space<vmem>>, vector<1x448xf32>
    %180 = vector.broadcast %179 : vector<1x448xf32> to vector<14x448xf32>
    %181 = arith.addf %178, %180 : vector<14x448xf32>
    %cst_43 = arith.constant 0.000000e+00 : f32
    %182 = vector.broadcast %cst_43 : f32 to vector<14x448xf32>
    %183 = arith.maximumf %181, %182 : vector<14x448xf32>
    %184 = tpu.iota {dimensions = array<i32: 0>} : vector<7x14xi32>
    %185 = tpu.iota {dimensions = array<i32: 1>} : vector<7x14xi32>
    %c2_i32_44 = arith.constant 2 : i32
    %186 = vector.broadcast %c2_i32_44 : i32 to vector<7x14xi32>
    %187 = arith.muli %186, %184 : vector<7x14xi32>
    %c0_i32_45 = arith.constant 0 : i32
    %188 = vector.broadcast %c0_i32_45 : i32 to vector<7x14xi32>
    %189 = arith.addi %187, %188 : vector<7x14xi32>
    %190 = arith.cmpi eq, %185, %189 : vector<7x14xi32>
    %191 = arith.extui %190 : vector<7x14xi1> to vector<7x14xi32>
    %192 = arith.sitofp %191 : vector<7x14xi32> to vector<7x14xf32>
    %193 = tpu.iota {dimensions = array<i32: 0>} : vector<7x14xi32>
    %194 = tpu.iota {dimensions = array<i32: 1>} : vector<7x14xi32>
    %c2_i32_46 = arith.constant 2 : i32
    %195 = vector.broadcast %c2_i32_46 : i32 to vector<7x14xi32>
    %196 = arith.muli %195, %193 : vector<7x14xi32>
    %c1_i32_47 = arith.constant 1 : i32
    %197 = vector.broadcast %c1_i32_47 : i32 to vector<7x14xi32>
    %198 = arith.addi %196, %197 : vector<7x14xi32>
    %199 = arith.cmpi eq, %194, %198 : vector<7x14xi32>
    %200 = arith.extui %199 : vector<7x14xi1> to vector<7x14xi32>
    %201 = arith.sitofp %200 : vector<7x14xi32> to vector<7x14xf32>
    %cst_48 = arith.constant dense<0.000000e+00> : vector<7x448xf32>
    %202 = tpu.matmul %192, %183, %cst_48 {dimension_numbers = #tpu.dot_dimension_numbers<[1], [0], [0], [1], [0, 0, 1, 1], [], []>} : vector<7x14xf32>, vector<14x448xf32>, vector<7x448xf32> -> vector<7x448xf32>
    %cst_49 = arith.constant dense<0.000000e+00> : vector<7x448xf32>
    %203 = tpu.matmul %201, %183, %cst_49 {dimension_numbers = #tpu.dot_dimension_numbers<[1], [0], [0], [1], [0, 0, 1, 1], [], []>} : vector<7x14xf32>, vector<14x448xf32>, vector<7x448xf32> -> vector<7x448xf32>
    %204 = arith.maximumf %202, %203 : vector<7x448xf32>
    %205 = vector.extract_strided_slice %204 {offsets = [0, 0], sizes = [7, 32], strides = [1, 1]} : vector<7x448xf32> to vector<7x32xf32>
    %206 = vector.extract_strided_slice %204 {offsets = [0, 32], sizes = [7, 32], strides = [1, 1]} : vector<7x448xf32> to vector<7x32xf32>
    %207 = arith.maximumf %205, %206 : vector<7x32xf32>
    %208 = vector.extract_strided_slice %204 {offsets = [0, 64], sizes = [7, 32], strides = [1, 1]} : vector<7x448xf32> to vector<7x32xf32>
    %209 = vector.extract_strided_slice %204 {offsets = [0, 96], sizes = [7, 32], strides = [1, 1]} : vector<7x448xf32> to vector<7x32xf32>
    %210 = arith.maximumf %208, %209 : vector<7x32xf32>
    %211 = vector.extract_strided_slice %204 {offsets = [0, 128], sizes = [7, 32], strides = [1, 1]} : vector<7x448xf32> to vector<7x32xf32>
    %212 = vector.extract_strided_slice %204 {offsets = [0, 160], sizes = [7, 32], strides = [1, 1]} : vector<7x448xf32> to vector<7x32xf32>
    %213 = arith.maximumf %211, %212 : vector<7x32xf32>
    %214 = vector.extract_strided_slice %204 {offsets = [0, 192], sizes = [7, 32], strides = [1, 1]} : vector<7x448xf32> to vector<7x32xf32>
    %215 = vector.extract_strided_slice %204 {offsets = [0, 224], sizes = [7, 32], strides = [1, 1]} : vector<7x448xf32> to vector<7x32xf32>
    %216 = arith.maximumf %214, %215 : vector<7x32xf32>
    %217 = vector.extract_strided_slice %204 {offsets = [0, 256], sizes = [7, 32], strides = [1, 1]} : vector<7x448xf32> to vector<7x32xf32>
    %218 = vector.extract_strided_slice %204 {offsets = [0, 288], sizes = [7, 32], strides = [1, 1]} : vector<7x448xf32> to vector<7x32xf32>
    %219 = arith.maximumf %217, %218 : vector<7x32xf32>
    %220 = vector.extract_strided_slice %204 {offsets = [0, 320], sizes = [7, 32], strides = [1, 1]} : vector<7x448xf32> to vector<7x32xf32>
    %221 = vector.extract_strided_slice %204 {offsets = [0, 352], sizes = [7, 32], strides = [1, 1]} : vector<7x448xf32> to vector<7x32xf32>
    %222 = arith.maximumf %220, %221 : vector<7x32xf32>
    %223 = vector.extract_strided_slice %204 {offsets = [0, 384], sizes = [7, 32], strides = [1, 1]} : vector<7x448xf32> to vector<7x32xf32>
    %224 = vector.extract_strided_slice %204 {offsets = [0, 416], sizes = [7, 32], strides = [1, 1]} : vector<7x448xf32> to vector<7x32xf32>
    %225 = arith.maximumf %223, %224 : vector<7x32xf32>
    %226 = tpu.concatenate %207, %210, %213, %216, %219, %222, %225 in 1 : vector<7x32xf32>, vector<7x32xf32>, vector<7x32xf32>, vector<7x32xf32>, vector<7x32xf32>, vector<7x32xf32>, vector<7x32xf32> -> vector<7x224xf32>
    %227 = vector.extract_strided_slice %226 {offsets = [0, 0], sizes = [1, 224], strides = [1, 1]} : vector<7x224xf32> to vector<1x224xf32>
    %228 = vector.extract_strided_slice %226 {offsets = [1, 0], sizes = [1, 224], strides = [1, 1]} : vector<7x224xf32> to vector<1x224xf32>
    %229 = vector.extract_strided_slice %226 {offsets = [2, 0], sizes = [1, 224], strides = [1, 1]} : vector<7x224xf32> to vector<1x224xf32>
    %230 = vector.extract_strided_slice %226 {offsets = [3, 0], sizes = [1, 224], strides = [1, 1]} : vector<7x224xf32> to vector<1x224xf32>
    %231 = vector.extract_strided_slice %226 {offsets = [4, 0], sizes = [1, 224], strides = [1, 1]} : vector<7x224xf32> to vector<1x224xf32>
    %232 = vector.extract_strided_slice %226 {offsets = [5, 0], sizes = [1, 224], strides = [1, 1]} : vector<7x224xf32> to vector<1x224xf32>
    %233 = vector.extract_strided_slice %226 {offsets = [6, 0], sizes = [1, 224], strides = [1, 1]} : vector<7x224xf32> to vector<1x224xf32>
    %234 = tpu.concatenate %227, %228, %229, %230, %231, %232, %233 in 1 : vector<1x224xf32>, vector<1x224xf32>, vector<1x224xf32>, vector<1x224xf32>, vector<1x224xf32>, vector<1x224xf32>, vector<1x224xf32> -> vector<1x1568xf32>
    %235 = arith.truncf %234 : vector<1x1568xf32> to vector<1x1568xbf16>
    %c0_50 = arith.constant 0 : index
    %c0_51 = arith.constant 0 : index
    %236 = vector.load %arg6[%c0_50, %c0_51] : memref<1568x10xbf16, #tpu.memory_space<vmem>>, vector<1568x10xbf16>
    %cst_52 = arith.constant dense<0.000000e+00> : vector<1x10xf32>
    %237 = tpu.matmul %235, %236, %cst_52 {dimension_numbers = #tpu.dot_dimension_numbers<[1], [0], [0], [1], [0, 0, 1, 1], [], []>} : vector<1x1568xbf16>, vector<1568x10xbf16>, vector<1x10xf32> -> vector<1x10xf32>
    %c0_53 = arith.constant 0 : index
    %c0_54 = arith.constant 0 : index
    %238 = vector.load %arg7[%c0_53, %c0_54] : memref<1x10xf32, #tpu.memory_space<vmem>>, vector<1x10xf32>
    %239 = arith.addf %237, %238 : vector<1x10xf32>
    %c0_55 = arith.constant 0 : index
    %c0_56 = arith.constant 0 : index
    %c0_57 = arith.constant 0 : index
    %240 = vector.load %arg8[%c0_55, %c0_56, %c0_57] : memref<1x1x10xf32, #tpu.memory_space<vmem>>, vector<1x1x10xf32>
    %241 = vector.shape_cast %240 : vector<1x1x10xf32> to vector<1x10xf32>
    %242 = vector.shape_cast %239 : vector<1x10xf32> to vector<1x1x10xf32>
    tpu.vector_store %arg8[%c0_55, %c0_56, %c0_57], %242 {strides = array<i32>} : memref<1x1x10xf32, #tpu.memory_space<vmem>>, vector<1x1x10xf32>,
    return
  }
  func.func @transform_0(%arg0: i32) -> (i32, i32, i32) {
    %c0_i32 = arith.constant 0 : i32
    %c0_i32_0 = arith.constant 0 : i32
    %c0_i32_1 = arith.constant 0 : i32
    return %arg0, %c0_i32, %c0_i32_0 : i32, i32, i32
  }
  func.func @transform_1(%arg0: i32) -> (i32, i32) {
    %c0_i32 = arith.constant 0 : i32
    %c0_i32_0 = arith.constant 0 : i32
    %c0_i32_1 = arith.constant 0 : i32
    return %c0_i32, %c0_i32_0 : i32, i32
  }
  func.func @transform_2(%arg0: i32) -> (i32, i32) {
    %c0_i32 = arith.constant 0 : i32
    %c0_i32_0 = arith.constant 0 : i32
    %c0_i32_1 = arith.constant 0 : i32
    return %c0_i32, %c0_i32_0 : i32, i32
  }
  func.func @transform_3(%arg0: i32) -> (i32, i32) {
    %c0_i32 = arith.constant 0 : i32
    %c0_i32_0 = arith.constant 0 : i32
    %c0_i32_1 = arith.constant 0 : i32
    return %c0_i32, %c0_i32_0 : i32, i32
  }
  func.func @transform_4(%arg0: i32) -> (i32, i32) {
    %c0_i32 = arith.constant 0 : i32
    %c0_i32_0 = arith.constant 0 : i32
    %c0_i32_1 = arith.constant 0 : i32
    return %c0_i32, %c0_i32_0 : i32, i32
  }
  func.func @transform_5(%arg0: i32) -> (i32, i32) {
    %c0_i32 = arith.constant 0 : i32
    %c0_i32_0 = arith.constant 0 : i32
    %c0_i32_1 = arith.constant 0 : i32
    return %c0_i32, %c0_i32_0 : i32, i32
  }
  func.func @transform_6(%arg0: i32) -> (i32, i32) {
    %c0_i32 = arith.constant 0 : i32
    %c0_i32_0 = arith.constant 0 : i32
    %c0_i32_1 = arith.constant 0 : i32
    return %c0_i32, %c0_i32_0 : i32, i32
  }
  func.func @transform_7(%arg0: i32) -> (i32, i32, i32) {
    %c0_i32 = arith.constant 0 : i32
    %c0_i32_0 = arith.constant 0 : i32
    %c0_i32_1 = arith.constant 0 : i32
    return %arg0, %c0_i32, %c0_i32_0 : i32, i32, i32
  }
}

</mosaic_0001>

<bundles_post_ra>
// kernel: tile.13
= control target key start
LH: loop header
LB: loop body
LE: loop exit
PB: predicated region body
PF: predicated region fallthrough
CT: control target
= control target key end

     0   :  { %s40_s0 = inlined_call_operand.vmem [shape: f32[16], index: 0, kind: input, shape index: {}]   ;;  %s41_s1 = inlined_call_operand.vmem [shape: f32[28,16], index: 1, kind: output, shape index: {}]  }
   0x1   :  { %v4_v0 = vld [vmem:[%s40_s0] ss:$0 sm:$0xff] }
   0x2   :  { %5 = vst [vmem:[%s41_s1] sm:$0xff] %v4_v0  ;;  %12 = vst [vmem:[%s41_s1 + $0x8] sm:$0xff] %v4_v0 }
   0x3   :  { %13 = vst [vmem:[%s41_s1 + $0x10] sm:$0xff] %v4_v0  ;;  %14 = vst [vmem:[%s41_s1 + $0x18] sm:$0xff] %v4_v0 }

// kernel: tile.14
= control target key start
LH: loop header
LB: loop body
LE: loop exit
PB: predicated region body
PF: predicated region fallthrough
CT: control target
= control target key end

     0   :  { %s94_s8 = smov 112   ;;  %s95_s11 = smov 80   ;;  %vm3_vm0 = vcmask 130048   ;;  %vm9_vm1 = vcmask 1048448   ;;  %vm15_vm2 = vcmask 917248   ;;  %vm21_vm3 = vcmask 786048   ;;  %s147_s0 = inlined_call_operand.vmem [shape: f32[28,16], index: 0, kind: input, shape index: {}]   ;;  %s148_s1 = inlined_call_operand.vmem [shape: f32[1,448], index: 1, kind: output, shape index: {}]  }
   0x1   :  { %v77_v0 = vld [vmem:[%s147_s0 + $0x7] ss:$8 sm:$0x7]   ;;  %v79_v1 = vld [vmem:[%s147_s0 + $0x5] ss:$8 sm:$0x7]  }
   0x2   :  { %7 = vrot.lane.b32.xlu0 %v77_v0, %s94_s8  ;;  %19 = vrot.lane.b32.xlu1 %v79_v1, %s95_s11  ;;  %v78_v2 = vld [vmem:[%s147_s0 + $0x6] ss:$8 sm:$0x7]   ;;  %v80_v3 = vld [vmem:[%s147_s0 + $0x4] ss:$8 sm:$0x7]  }
   0x3   :  { %s96_s16 = smov 96   ;;  %v2_v4 = vld [vmem:[%s147_s0] ss:$8 sm:$0xf]   ;;  %s97_s19 = smov 64   ;;  %vm27_vm4 = vcmask 654848  }
   0x4   :  { %v81_v5 = vld [vmem:[%s147_s0 + $0x3] ss:$8 sm:$0xf]   ;;  %4 = vst.msk [vmem:[#allocation0] ss:$8 sm:$0xf] %vm3_vm0, %v2_v4  }
   0x5   :  { %v82_v6 = vld [vmem:[%s147_s0 + $0x2] ss:$8 sm:$0xf]   ;;  %s98_s24 = smov 48   ;;  %s99_s25 = smov 32   ;;  %vm33_vm5 = vcmask 523648  }
   0x6   :  { %13 = vrot.lane.b32.xlu0 %v78_v2, %s96_s16  ;;  %25 = vrot.lane.b32.xlu1 %v80_v3, %s97_s19  ;;  %v83_v7 = vld [vmem:[%s147_s0 + $0x1] ss:$8 sm:$0xf]   ;;  %s100_s0 = smov 16   ;;  %vm39_vm6 = vcmask 392448   ;;  %vm45_vm7 = vcmask 261248  }
   0xa   :  { %31 = vrot.lane.b32.xlu0 %v81_v5, %s98_s24  ;;  %37 = vrot.lane.b32.xlu1 %v82_v6, %s99_s25 }
   0xe   :  { %43 = vrot.lane.b32.xlu0 %v83_v7, %s100_s0 }
  0x74   :  { %v8_v8 = vpop.permute.xlu0 %7   ;;  %v20_v9 = vpop.permute.xlu1 %19  }
  0x75   :  { %10 = vst.msk [vmem:[#allocation0] ss:$8 sm:$0x7] %vm9_vm1, %v8_v8  }
  0x78   :  { %v14_v10 = vpop.permute.xlu0 %13   ;;  %v26_v11 = vpop.permute.xlu1 %25  }
  0x79   :  { %16 = vst.msk [vmem:[#allocation0] ss:$8 sm:$0x7] %vm15_vm2, %v14_v10  }
  0x7a   :  { %22 = vst.msk [vmem:[#allocation0] ss:$8 sm:$0x7] %vm21_vm3, %v20_v9  }
  0x7b   :  { %28 = vst.msk [vmem:[#allocation0] ss:$8 sm:$0x7] %vm27_vm4, %v26_v11  }
  0x7c   :  { %v32_v12 = vpop.permute.xlu0 %31   ;;  %v38_v13 = vpop.permute.xlu1 %37  }
  0x7d   :  { %34 = vst.msk [vmem:[#allocation0] ss:$8 sm:$0xf] %vm33_vm5, %v32_v12  }
  0x7e   :  { %40 = vst.msk [vmem:[#allocation0] ss:$8 sm:$0xf] %vm39_vm6, %v38_v13  }
  0x80   :  { %v44_v14 = vpop.permute.xlu0 %43  }
  0x81   :  { %46 = vst.msk [vmem:[#allocation0] ss:$8 sm:$0xf] %vm45_vm7, %v44_v14  }
  0x88   :  { %v51_v15 = vld [vmem:[#allocation0] sm:$0x1]  ;;  %v56_v16 = vld [vmem:[#allocation0 + $0x8] sm:$0x1]  ;;  %v62_v17 = vld [vmem:[#allocation0 + $0x10] sm:$0x1] }
  0x89   :  { %54 = vst [vmem:[%s148_s1] sm:$0x1] %v51_v15  ;;  %84 = vst [vmem:[%s148_s1 + $0x1] sm:$0x1] %v56_v16  ;;  %v69_v18 = vld [vmem:[#allocation0 + $0x18] sm:$0x1] }
  0x8a   :  { %85 = vst [vmem:[%s148_s1 + $0x2] sm:$0x1] %v62_v17  ;;  %86 = vst [vmem:[%s148_s1 + $0x3] sm:$0x1] %v69_v18 }

// kernel: tile.18
= control target key start
LH: loop header
LB: loop body
LE: loop exit
PB: predicated region body
PF: predicated region fallthrough
CT: control target
= control target key end

     0   :  { %s28_s0 = inlined_call_operand.vmem [shape: f32[32], index: 0, kind: input, shape index: {}]   ;;  %s29_s1 = inlined_call_operand.vmem [shape: f32[14,32], index: 1, kind: output, shape index: {}]  }
   0x1   :  { %v4_v0 = vld [vmem:[%s28_s0] ss:$0 sm:$0xff] }
   0x2   :  { %5 = vst [vmem:[%s29_s1] sm:$0xff] %v4_v0  ;;  %8 = vst [vmem:[%s29_s1 + $0x8] sm:$0xff] %v4_v0 }

// kernel: tile.19
= control target key start
LH: loop header
LB: loop body
LE: loop exit
PB: predicated region body
PF: predicated region fallthrough
CT: control target
= control target key end

     0   :  { %s62_s8 = smov 96   ;;  %vm3_vm0 = vcmask 261120   ;;  %s64_s15 = smov 64   ;;  %vm9_vm1 = vcmask 1048320   ;;  %vm15_vm2 = vcmask 785920   ;;  %vm21_vm3 = vcmask 523520   ;;  %s99_s0 = inlined_call_operand.vmem [shape: f32[14,32], index: 0, kind: input, shape index: {}]   ;;  %s100_s1 = inlined_call_operand.vmem [shape: f32[1,448], index: 1, kind: output, shape index: {}]  }
   0x1   :  { %v53_v0 = vld [vmem:[%s99_s0 + $0x3] ss:$4 sm:$0x7]   ;;  %v54_v1 = vld [vmem:[%s99_s0 + $0x2] ss:$4 sm:$0x7]  }
   0x2   :  { %7 = vrot.lane.b32.xlu0 %v53_v0, %s62_s8  ;;  %v55_v2 = vld [vmem:[%s99_s0 + $0x1] ss:$4 sm:$0xf]   ;;  %v2_v3 = vld [vmem:[%s99_s0] ss:$4 sm:$0xf]  }
   0x3   :  { %s63_s0 = smov 32   ;;  %4 = vst.msk [vmem:[#allocation0] ss:$8 sm:$0xf] %vm3_vm0, %v2_v3  }
   0x4   :  { %19 = vrot.lane.b32.xlu1 %v55_v2, %s63_s0 }
   0x6   :  { %13 = vrot.lane.b32.xlu0 %v54_v1, %s64_s15 }
  0x74   :  { %v8_v4 = vpop.permute.xlu0 %7  }
  0x75   :  { %10 = vst.msk [vmem:[#allocation0] ss:$8 sm:$0x7] %vm9_vm1, %v8_v4  }
  0x76   :  { %v20_v5 = vpop.permute.xlu1 %19  }
  0x78   :  { %v14_v6 = vpop.permute.xlu0 %13  }
  0x79   :  { %16 = vst.msk [vmem:[#allocation0] ss:$8 sm:$0x7] %vm15_vm2, %v14_v6  }
  0x7a   :  { %22 = vst.msk [vmem:[#allocation0] ss:$8 sm:$0xf] %vm21_vm3, %v20_v5  }
  0x81   :  { %v27_v7 = vld [vmem:[#allocation0] sm:$0x1]  ;;  %v32_v8 = vld [vmem:[#allocation0 + $0x8] sm:$0x1]  ;;  %v38_v9 = vld [vmem:[#allocation0 + $0x10] sm:$0x1] }
  0x82   :  { %30 = vst [vmem:[%s100_s1] sm:$0x1] %v27_v7  ;;  %56 = vst [vmem:[%s100_s1 + $0x1] sm:$0x1] %v32_v8  ;;  %v45_v10 = vld [vmem:[#allocation0 + $0x18] sm:$0x1] }
  0x83   :  { %57 = vst [vmem:[%s100_s1 + $0x2] sm:$0x1] %v38_v9  ;;  %58 = vst [vmem:[%s100_s1 + $0x3] sm:$0x1] %v45_v10 }

// kernel: cnn_forward.1
= control target key start
LH: loop header
LB: loop body
LE: loop exit
PB: predicated region body
PF: predicated region fallthrough
CT: control target
= control target key end

     0   :  { %12 = vsyncpa [#allocation3], 0  ;;  %s9571_s0 = inlined_call_operand.vmem [shape: f32[2,28,28], index: 0, kind: input, shape index: {}]   ;;  %s9572_s1 = inlined_call_operand.vmem [shape: bf16[140,448], index: 1, kind: input, shape index: {}]   ;;  %s9573_s2 = inlined_call_operand.vmem [shape: f32[1,448], index: 2, kind: input, shape index: {}]   ;;  %s9574_s3 = inlined_call_operand.vmem [shape: bf16[1120,448], index: 3, kind: input, shape index: {}]   ;;  %s9575_s4 = inlined_call_operand.vmem [shape: f32[1,448], index: 4, kind: input, shape index: {}]   ;;  %s9576_s5 = inlined_call_operand.vmem [shape: bf16[1568,10], index: 5, kind: input, shape index: {}]   ;;  %s9577_s6 = inlined_call_operand.vmem [shape: f32[1,10], index: 6, kind: input, shape index: {}]   ;;  %s9578_s7 = inlined_call_operand.hbm [shape: f32[2,1,10], index: 7, kind: output, shape index: {}]  }
   0x1   :  { %14 = vsyncpa [#allocation3 + $0x1], 0  ;;  %s7631_s24 = smov 0   ;;  %s7633_s25 = smov 0  }
   0x2   :  { %s7635_s26 = smov 0   ;;  %s7637_s27 = smov 0  }
   0x3 LB: > { %s7652_s28 = sadd.s32 4294967295, %s7575_s27   ;;  %s6010_s29 = sadd.s32 4294967294, %s7575_s27   ;;  %s7575_s27 = sphi %s7637_s27, %s9584_s27   ;;  %s7571_s26 = sphi %s7635_s26, %s9583_s26   ;;  %s7567_s25 = sphi %s7633_s25, %s9582_s25   ;;  %s7563_s24 = sphi %s7631_s24, %s9581_s24  }
   0x4   : > { %s7656_s30 = sadd.s32 1, %s7575_s27   ;;  %s179_s8 = sadd.s32 1, %s7571_s26 }
   0x5   : > { %s176_s9 = ssub.s32 %s7575_s27, %s7656_s30  ;;  %p189_p0 = scmp.ne.s32.totalorder %s7571_s26, %s7567_s25 }
   0x6   : > { %p177_p1 = scmp.eq.s32.totalorder %s176_s9, 0  ;;  %p190_p2 = scmp.eq.s32.totalorder %s7652_s28, 1 }
   0x7   : > { %p195_p3 = scmp.ne.s32.totalorder %s7567_s25, %s7563_s24  ;;  %p196_p4 = scmp.eq.s32.totalorder %s6010_s29, 1 }
   0x8   : > { %s7667_s10 = scalar_select %p177_p1, %s7571_s26, %s179_s8  }
   0x9   : > { %p7669_p5 = por %p190_p2, %p189_p0  ;;  %p7673_p6 = por %p196_p4, %p195_p3 }
   0xa   : > { %p6013_p7 = scmp.ge.s32.totalorder %s7575_s27, 1  ;;  %p240_p8 = scmp.lt.s32.totalorder %s7575_s27, 3 }
   0xc   : > { %p241_p9 = pnand %p6013_p7, %p240_p8 }
   0xd   : > { %p271_p10 = scmp.lt.s32.totalorder (!%p241_p9), %s7652_s28, 1  ;;  %s7578_s18 = smov (!%p241_p9), 28  }
   0xe   : > { %244 = sbr.rel (%p241_p9) target bundleno = 2670 (0xa6e), region = 48  ;;  %s7579_s22 = smov (!%p241_p9), 56  }
   0xf   : > { %s7580_s23 = smov (!%p241_p9), 84   ;;  %s7581_s29 = smov (!%p241_p9), 112  }
  0x10   : > { %s7582_s9 = smov (!%p241_p9), 96   ;;  %s7585_s15 = smov (!%p241_p9), 48  }
  0x11   : > { %s7586_s16 = smov (!%p241_p9), 32  }
  0x13   : > { %v281_v0 = vlaneseq  ;;  %s272_s13 = scalar_select %p271_p10, %s7652_s28, 1  ;;  %vm317_vm0 = vcmask 1043456   ;;  %vm304_vm3 = vcmask 228352   ;;  %v7577_v15 = vmov 0.0   ;;  %v6943_v47 = vld [vmem:[%s9572_s1 + $0xe0] ss:$16 sps:$4 sm:$0xff]  }
  0x14   : > { %v6945_v48 = vld [vmem:[%s9572_s1 + $0xe4] ss:$16 sps:$4 sm:$0xff]   ;;  %v6946_v49 = vld [vmem:[%s9572_s1 + $0xe8] ss:$16 sps:$4 sm:$0xff]   ;;  %v6948_v50 = vld [vmem:[%s9572_s1 + $0xec] ss:$16 sps:$4 sm:$0xff]  }
  0x15   : > { %v7681_v1 = vshrl.u32 %v281_v0, 7  ;;  %s6539_s14 = sshll.u32 %s272_s13, 5  ;;  %v7683_v2 = vand.u32 127, %v281_v0  ;;  %v6951_v51 = vld [vmem:[%s9572_s1 + $0xc4] ss:$16 sps:$4 sm:$0xff]   ;;  %s7583_s13 = smov 64  }
  0x16   : > { %s275_s17 = scalar_lea.vmem %s9571_s0, %s6539_s14  ;;  %v6954_v52 = vld [vmem:[%s9572_s1 + $0xcc] ss:$16 sps:$4 sm:$0xff]   ;;  %v6949_v53 = vld [vmem:[%s9572_s1 + $0xc0] ss:$16 sps:$4 sm:$0xff]   ;;  %v6952_v54 = vld [vmem:[%s9572_s1 + $0xc8] ss:$16 sps:$4 sm:$0xff]  }
  0x17   : > { %v288_v3 = vadd.s32 4294967294, %v7681_v1  ;;  %v7687_v4 = vadd.s32 8, %v7681_v1  ;;  %v406_v5 = vadd.s32 4294967295, %v7681_v1  ;;  %v7694_v6 = vadd.s32 16, %v7681_v1  ;;  %v7696_v7 = vld [vmem:[%s275_s17 + $0x18] sm:$0xf] }
  0x18   : > { %v7698_v8 = vld [vmem:[%s275_s17 + $0x10] sm:$0xff]  ;;  %6715 = vmatprep.subr.msk.mxu0 %vm317_vm0, %v7696_v7  ;;  %6729 = vmatprep.subr.msk.mxu1 %vm317_vm0, %v7696_v7  ;;  %v7706_v11 = vld [vmem:[%s275_s17 + $0x8] sm:$0xff]  ;;  %v7709_v12 = vadd.s32 24, %v7681_v1  ;;  %v7715_v13 = vld [vmem:[%s275_s17] sm:$0xff]  ;;  %v628_v26 = vadd.s32 1, %v7681_v1  ;;  %vm519_vm10 = vcmp.eq.s32.totalorder %v7683_v2, %v7681_v1  ;;  %v741_v31 = vadd.s32 2, %v7681_v1 }
  0x19   : > { %v289_v9 = vadd.s32 4294967294, %v7687_v4  ;;  %v407_v10 = vadd.s32 4294967295, %v7687_v4  ;;  %6716 = vmatpush3.msk.msra.mxu0 %vm317_vm0, %v7696_v7  ;;  %6730 = vmatpush3.msk.msra.mxu1 %vm317_vm0, %v7696_v7  ;;  %vm292_vm1 = vcmp.eq.s32.totalorder %v7683_v2, %v288_v3  ;;  %vm410_vm2 = vcmp.eq.s32.totalorder %v7683_v2, %v406_v5  ;;  %v6957_v55 = vld [vmem:[%s9572_s1 + $0xa4] ss:$16 sps:$4 sm:$0xff]   ;;  %v6955_v56 = vld [vmem:[%s9572_s1 + $0xa0] ss:$16 sps:$4 sm:$0xff]  }
  0x1a   : > { %6717 = vmatprep.subr.mxu0 %v7698_v8  ;;  %6731 = vmatprep.subr.mxu1 %v7698_v8  ;;  %v290_v14 = vadd.s32 4294967294, %v7694_v6  ;;  %v7729_v16 = vsel %vm292_vm1, 1.0, %v7577_v15  ;;  %v291_v17 = vadd.s32 4294967294, %v7709_v12  ;;  %v408_v18 = vadd.s32 4294967295, %v7694_v6  ;;  %v6960_v57 = vld [vmem:[%s9572_s1 + $0xac] ss:$16 sps:$4 sm:$0xff]  }
  0x1b   : > { %6718 = vmatpush3.msra.mxu0 %v7698_v8  ;;  %6732 = vmatpush3.msra.mxu1 %v7698_v8  ;;  %vm293_vm4 = vcmp.eq.s32.totalorder %v7683_v2, %v289_v9  ;;  %vm411_vm5 = vcmp.eq.s32.totalorder %v7683_v2, %v407_v10  ;;  %v7736_v19 = vsel %vm410_vm2, 1.0, %v7577_v15  ;;  %v409_v20 = vadd.s32 4294967295, %v7709_v12  ;;  %v6958_v58 = vld [vmem:[%s9572_s1 + $0xa8] ss:$16 sps:$4 sm:$0xff]   ;;  %v6963_v59 = vld [vmem:[%s9572_s1 + $0x84] ss:$16 sps:$4 sm:$0xff]  }
  0x1c   : > { %6719 = vmatprep.subr.mxu0 %v7706_v11  ;;  %6733 = vmatprep.subr.mxu1 %v7706_v11  ;;  %v7742_v21 = vsel %vm293_vm4, 1.0, %v7577_v15  ;;  %v7745_v22 = vsel %vm411_vm5, 1.0, %v7577_v15  ;;  %vm294_vm6 = vcmp.eq.s32.totalorder %v7683_v2, %v290_v14  ;;  %vm295_vm7 = vcmp.eq.s32.totalorder %v7683_v2, %v291_v17  ;;  %v6966_v60 = vld [vmem:[%s9572_s1 + $0x8c] ss:$16 sps:$4 sm:$0xff]   ;;  %v6961_v61 = vld [vmem:[%s9572_s1 + $0x80] ss:$16 sps:$4 sm:$0xff]  }
  0x1d   : > { %6720 = vmatpush3.msra.mxu0 %v7706_v11  ;;  %6734 = vmatpush3.msra.mxu1 %v7706_v11  ;;  %vm412_vm8 = vcmp.eq.s32.totalorder %v7683_v2, %v408_v18  ;;  %v6018_v23 = vsel %vm294_vm6, 1.0, %v7577_v15  ;;  %vm413_vm9 = vcmp.eq.s32.totalorder %v7683_v2, %v409_v20  ;;  %v6019_v24 = vsel %vm295_vm7, 1.0, %v7577_v15  ;;  %v6964_v62 = vld [vmem:[%s9572_s1 + $0x88] ss:$16 sps:$4 sm:$0xff]   ;;  %v6967_v63 = vld [vmem:[%s9572_s1 + $0x60] ss:$16 sps:$4 sm:$0xff]  }
  0x1e   : > { %6721 = vmatprep.subr.mxu0 %v7715_v13  ;;  %6735 = vmatprep.subr.mxu1 %v7715_v13  ;;  %v6027_v25 = vsel %vm412_vm8, 1.0, %v7577_v15  ;;  %v629_v27 = vadd.s32 1, %v7687_v4  ;;  %v6028_v28 = vsel %vm413_vm9, 1.0, %v7577_v15  ;;  %vm520_vm11 = vcmp.eq.s32.totalorder %v7683_v2, %v7687_v4  ;;  %v6969_v0 = vld [vmem:[%s9572_s1 + $0x64] ss:$16 sps:$4 sm:$0xff]   ;;  %s7584_s14 = smov 80  }
  0x1f   : > { %6722 = vmatpush3.msra.mxu0 %v7715_v13  ;;  %6723 = vmatprep.mubr.msk.f32.mxu0 %vm304_vm3, %v7729_v16  ;;  %v630_v29 = vadd.s32 1, %v7694_v6  ;;  %vm632_vm12 = vcmp.eq.s32.totalorder %v7683_v2, %v628_v26  ;;  %v7792_v30 = vsel %vm519_vm10, 1.0, %v7577_v15  ;;  %v7799_v32 = vsel %vm520_vm11, 1.0, %v7577_v15  ;;  %v6970_v3 = vld [vmem:[%s9572_s1 + $0x68] ss:$16 sps:$4 sm:$0xff]   ;;  %s7587_s17 = smov 16  }
  0x20   : > { %6736 = vmatpush3.msra.mxu1 %v7715_v13  ;;  %6737 = vmatprep.mubr.msk.f32.mxu1 %vm304_vm3, %v7736_v19  ;;  %vm633_vm13 = vcmp.eq.s32.totalorder %v7683_v2, %v629_v27  ;;  %vm521_vm14 = vcmp.eq.s32.totalorder %v7683_v2, %v7694_v6  ;;  %v631_v33 = vadd.s32 1, %v7709_v12  ;;  %v7807_v34 = vsel %vm632_vm12, 1.0, %v7577_v15  ;;  %v6972_v5 = vld [vmem:[%s9572_s1 + $0x6c] ss:$16 sps:$4 sm:$0xff]   ;;  %v6976_v9 = vld [vmem:[%s9572_s1 + $0x48] ss:$16 sps:$4 sm:$0xff]  }
  0x21   : > { %6724 = vmatmul.mubr.msk.f32.vlgmr.msra.gmra.mxu0 %vm304_vm3, %v7742_v21  ;;  %6738 = vmatmul.mubr.msk.f32.vlgmr.msra.gmra.mxu1 %vm304_vm3, %v7745_v22  ;;  %vm634_vm15 = vcmp.eq.s32.totalorder %v7683_v2, %v630_v29  ;;  %v7814_v35 = vsel %vm633_vm13, 1.0, %v7577_v15  ;;  %vm522_vm1 = vcmp.eq.s32.totalorder %v7683_v2, %v7709_v12  ;;  %v742_v36 = vadd.s32 2, %v7687_v4  ;;  %v6981_v17 = vld [vmem:[%s9572_s1 + $0x24] ss:$16 sps:$4 sm:$0xff]   ;;  %v6984_v18 = vld [vmem:[%s9572_s1 + $0x2c] ss:$16 sps:$4 sm:$0xff]  }
  0x22   : > { %6743 = vmatprep.subr.msk.mxu0 %vm317_vm0, %v7696_v7  ;;  %6757 = vmatprep.subr.msk.mxu1 %vm317_vm0, %v7696_v7  ;;  %v6036_v37 = vsel %vm521_vm14, 1.0, %v7577_v15  ;;  %vm745_vm2 = vcmp.eq.s32.totalorder %v7683_v2, %v741_v31  ;;  %v743_v38 = vadd.s32 2, %v7694_v6  ;;  %v6045_v39 = vsel %vm634_vm15, 1.0, %v7577_v15  ;;  %v6975_v6 = vld [vmem:[%s9572_s1 + $0x44] ss:$16 sps:$4 sm:$0xff]  }
  0x23   : > { %6744 = vmatpush3.msk.msra.mxu0 %vm317_vm0, %v7696_v7  ;;  %6758 = vmatpush3.msk.msra.mxu1 %vm317_vm0, %v7696_v7  ;;  %vm635_vm4 = vcmp.eq.s32.totalorder %v7683_v2, %v631_v33  ;;  %v6037_v40 = vsel %vm522_vm1, 1.0, %v7577_v15  ;;  %v7839_v41 = vsel %vm745_vm2, 1.0, %v7577_v15  ;;  %vm746_vm5 = vcmp.eq.s32.totalorder %v7683_v2, %v742_v36  ;;  %v6979_v20 = vld [vmem:[%s9572_s1 + $0x20] ss:$16 sps:$4 sm:$0xff]   ;;  %v6987_v27 = vld [vmem:[%s9572_s1 + $0x4] ss:$16 sps:$4 sm:$0xff]  }
  0x24   : > { %6745 = vmatprep.subr.mxu0 %v7698_v8  ;;  %6726 = vmatprep.mubr.msk.f32.mxu0 %vm304_vm3, %v6018_v23  ;;  %v744_v42 = vadd.s32 2, %v7709_v12  ;;  %v6046_v43 = vsel %vm635_vm4, 1.0, %v7577_v15  ;;  %vm747_vm6 = vcmp.eq.s32.totalorder %v7683_v2, %v743_v38  ;;  %v7853_v44 = vsel %vm746_vm5, 1.0, %v7577_v15  ;;  %v6982_v23 = vld [vmem:[%s9572_s1 + $0x28] ss:$16 sps:$4 sm:$0xff]  }
  0x25   : > { %6746 = vmatpush3.msra.mxu0 %v7698_v8  ;;  %6759 = vmatprep.subr.mxu1 %v7698_v8  ;;  %v6054_v45 = vsel %vm747_vm6, 1.0, %v7577_v15  ;;  %v6985_v29 = vld [vmem:[%s9572_s1] ss:$16 sps:$4 sm:$0xff]   ;;  %v6988_v31 = vld [vmem:[%s9572_s1 + $0x8] ss:$16 sps:$4 sm:$0xff]   ;;  %vm1182_vm8 = vcmask 1045504  }
  0x26   : > { %6727 = vmatmul.mubr.msk.f32.gmra.mxu0 %vm304_vm3, %v6019_v24  ;;  %6740 = vmatprep.mubr.msk.f32.mxu1 %vm304_vm3, %v6027_v25  ;;  %vm748_vm7 = vcmp.eq.s32.totalorder %v7683_v2, %v744_v42  ;;  %v6993_v38 = vld [vmem:[%s9572_s1 + $0x10c] ss:$16 sps:$4 sm:$0x3f]   ;;  %vm922_vm9 = vcmask 457728   ;;  %vm927_vm10 = vcmask 687104   ;;  %vm932_vm11 = vcmask 916480  }
  0x27   : > { %6747 = vmatprep.subr.mxu0 %v7706_v11  ;;  %6760 = vmatpush3.msra.mxu1 %v7698_v8  ;;  %v6055_v46 = vsel %vm748_vm7, 1.0, %v7577_v15  ;;  %vm1175_vm12 = vcmask 97280   ;;  %vm1799_vm2 = vcmask 392192   ;;  %vm1802_vm4 = vcmask 523264  }
  0x28   : > { %6741 = vmatmul.mubr.msk.f32.gmra.mxu1 %vm304_vm3, %v6028_v28  ;;  %6748 = vmatpush3.msra.mxu0 %v7706_v11  ;;  %v6990_v28 = vld [vmem:[%s9572_s1 + $0xc] ss:$16 sps:$4 sm:$0xff]   ;;  %vm1805_vm5 = vcmask 654336   ;;  %vm1808_vm6 = vcmask 785408   ;;  %vm1823_vm7 = vcmask 113664  }
  0x29   : > { %6761 = vmatprep.subr.mxu1 %v7706_v11  ;;  %6749 = vmatprep.subr.mxu0 %v7715_v13 }
  0x2a   : > { %6762 = vmatpush3.msra.mxu1 %v7706_v11  ;;  %6750 = vmatpush3.msra.mxu0 %v7715_v13 }
  0x2b   : > { %6751 = vmatprep.mubr.msk.f32.mxu0 %vm304_vm3, %v7792_v30  ;;  %6763 = vmatprep.subr.mxu1 %v7715_v13 }
  0x2c   : > { %6752 = vmatmul.mubr.msk.f32.vlgmr.msra.gmra.mxu0 %vm304_vm3, %v7799_v32  ;;  %6764 = vmatpush3.msra.mxu1 %v7715_v13 }
  0x2d   : > { %6765 = vmatprep.mubr.msk.f32.mxu1 %vm304_vm3, %v7807_v34  ;;  %6771 = vmatprep.subr.msk.mxu0 %vm317_vm0, %v7696_v7 }
  0x2e   : > { %6766 = vmatmul.mubr.msk.f32.vlgmr.msra.gmra.mxu1 %vm304_vm3, %v7814_v35  ;;  %6772 = vmatpush3.msk.msra.mxu0 %vm317_vm0, %v7696_v7  ;;  %v6978_v7 = vld [vmem:[%s9572_s1 + $0x4c] ss:$16 sps:$4 sm:$0xff]  }
  0x2f   : > { %6773 = vmatprep.subr.mxu0 %v7698_v8  ;;  %6754 = vmatprep.mubr.msk.f32.mxu0 %vm304_vm3, %v6036_v37  ;;  %v6991_v37 = vld [vmem:[%s9572_s1 + $0x104] ss:$16 sps:$4 sm:$0x3f]  }
  0x30   : > { %6774 = vmatpush3.msra.mxu0 %v7698_v8  ;;  %6768 = vmatprep.mubr.msk.f32.mxu1 %vm304_vm3, %v6045_v39  ;;  %v6973_v8 = vld [vmem:[%s9572_s1 + $0x40] ss:$16 sps:$4 sm:$0xff]  }
  0x31   : > { %6755 = vmatmul.mubr.msk.f32.gmra.mxu0 %vm304_vm3, %v6037_v40  ;;  %6775 = vmatprep.subr.mxu0 %v7706_v11  ;;  %v6995_v39 = vld [vmem:[%s9572_s1 + $0x100] ss:$16 sps:$4 sm:$0x3f]  }
  0x32   : > { %6776 = vmatpush3.msra.mxu0 %v7706_v11  ;;  %6779 = vmatprep.mubr.msk.f32.mxu0 %vm304_vm3, %v7839_v41 }
  0x33   : > { %6777 = vmatprep.subr.mxu0 %v7715_v13  ;;  %6769 = vmatmul.mubr.msk.f32.gmra.mxu1 %vm304_vm3, %v6046_v43  ;;  %v6996_v43 = vld [vmem:[%s9572_s1 + $0x108] ss:$16 sps:$4 sm:$0x3f]  }
  0x34   : > { %6778 = vmatpush3.msra.mxu0 %v7715_v13  ;;  %1195 = vmatprep.subr.bf16.mxu1 %v6945_v48  ;;  %v1190_v48 = vsel %vm1182_vm8, %v6996_v43, 0 }
  0x35   : > { %6780 = vmatmul.mubr.msk.f32.vlgmr.msra.gmra.mxu0 %vm304_vm3, %v7853_v44  ;;  %1248 = vmatprep.subr.bf16.mxu0 %v6948_v50 }
  0x36   : > { %6782 = vmatprep.mubr.msk.f32.mxu0 %vm304_vm3, %v6054_v45  ;;  %1196 = vmatpush1.bf16.msra.mxu1 %v6943_v47 }
  0x37   : > { %1249 = vmatpush1.bf16.msra.mxu0 %v6946_v49  ;;  %1197 = vmatprep.subr.bf16.mxu1 %v6951_v51 }
  0x38   : > { %1250 = vmatprep.subr.bf16.mxu0 %v6954_v52 }
  0x39   : > { %6783 = vmatmul.mubr.msk.f32.gmra.mxu0 %vm304_vm3, %v6055_v46  ;;  %v1184_v46 = vsel %vm1182_vm8, %v6995_v39, 0 }
  0x3a   : > { %1198 = vmatpush1.bf16.msra.mxu1 %v6949_v53 }
  0x3b   : > { %1251 = vmatpush1.bf16.msra.mxu0 %v6952_v54  ;;  %1199 = vmatprep.subr.bf16.mxu1 %v6957_v55 }
  0x3c   : > { %1252 = vmatprep.subr.bf16.mxu0 %v6960_v57 }
  0x3e   : > { %1200 = vmatpush1.bf16.msra.mxu1 %v6955_v56 }
  0x3f   : > { %1253 = vmatpush1.bf16.msra.mxu0 %v6958_v58  ;;  %1201 = vmatprep.subr.bf16.mxu1 %v6963_v59 }
  0x40   : > { %1254 = vmatprep.subr.bf16.mxu0 %v6966_v60 }
  0x42   : > { %1202 = vmatpush1.bf16.msra.mxu1 %v6961_v61 }
  0x43   : > { %1255 = vmatpush1.bf16.msra.mxu0 %v6964_v62  ;;  %1203 = vmatprep.subr.bf16.mxu1 %v6969_v0 }
  0x44   : > { %1256 = vmatprep.subr.bf16.mxu0 %v6972_v5 }
  0x46   : > { %1204 = vmatpush1.bf16.msra.mxu1 %v6967_v63 }
  0x47   : > { %1257 = vmatpush1.bf16.msra.mxu0 %v6970_v3  ;;  %1205 = vmatprep.subr.bf16.mxu1 %v6975_v6 }
  0x48   : > { %1258 = vmatprep.subr.bf16.mxu0 %v6978_v7 }
  0x4a   : > { %1206 = vmatpush1.bf16.msra.mxu1 %v6973_v8 }
  0x4b   : > { %1259 = vmatpush1.bf16.msra.mxu0 %v6976_v9  ;;  %1207 = vmatprep.subr.bf16.mxu1 %v6981_v17 }
  0x4c   : > { %1260 = vmatprep.subr.bf16.mxu0 %v6984_v18 }
  0x4e   : > { %1208 = vmatpush1.bf16.msra.mxu1 %v6979_v20 }
  0x4f   : > { %1261 = vmatpush1.bf16.msra.mxu0 %v6982_v23  ;;  %1209 = vmatprep.subr.bf16.mxu1 %v6987_v27 }
  0x50   : > { %1262 = vmatprep.subr.bf16.mxu0 %v6990_v28 }
  0x52   : > { %1210 = vmatpush1.bf16.msra.mxu1 %v6985_v29 }
  0x53   : > { %1263 = vmatpush1.bf16.msra.mxu0 %v6988_v31  ;;  %6097 = vmatprep.subr.msk.bf16.mxu1 %vm1182_vm8, %v6991_v37 }
  0x54   : > { %6100 = vmatprep.subr.msk.bf16.mxu0 %vm1182_vm8, %v6993_v38 }
  0x56   : > { %1226 = vmatpush2.bf16.msra.mxu1 %v1184_v46 }
  0x57   : > { %1279 = vmatpush2.bf16.msra.mxu0 %v1190_v48 }
  0xe1   : > { %v7937_v10 = vpop.f32.mrf.mxu0  ;;  %v6739_v11 = vpop.f32.mrf.mxu1 }
  0xe3   : > { %v7939_v12 = vpop.f32.mrf.mxu0  ;;  %v500_v13 = vpop.f32.mrf.mxu1 }
  0xe4   : > { %v6853_v14 = vpack.i.bf16 %v6739_v11, %v500_v13 }
  0xe6   : > { %v7953_v24 = vpop.f32.mrf.mxu0  ;;  %6854 = vrot.lane.b32.xlu0 %v6853_v14, %s7578_s18 }
  0xe8   : > { %v6742_v25 = vpop.f32.mrf.mxu1  ;;  %v7956_v26 = vpop.f32.mrf.mxu0 }
  0xea   : > { %v510_v33 = vpop.f32.mrf.mxu1 }
  0xeb   : > { %v6863_v51 = vpack.i.bf16 %v6742_v25, %v510_v33 }
  0xec   : > { %v6753_v36 = vpop.f32.mrf.mxu0 }
  0xee   : > { %v6767_v40 = vpop.f32.mrf.mxu1  ;;  %v609_v42 = vpop.f32.mrf.mxu0 }
  0xef   : > { %v6858_v45 = vpack.i.bf16 %v6753_v36, %v609_v42 }
  0xf0   : > { %v722_v47 = vpop.f32.mrf.mxu1 }
  0xf1   : > { %v6868_v49 = vpack.i.bf16 %v6767_v40, %v722_v47  ;;  %v6756_v50 = vpop.f32.mrf.mxu0  ;;  %6859 = vrot.lane.b32.xlu0 %v6858_v45, %s7579_s22 }
  0xf3   : > { %6869 = vrot.lane.b32.xlu1 %v6868_v49, %s7580_s23  ;;  %v619_v52 = vpop.f32.mrf.mxu0  ;;  %v6770_v53 = vpop.f32.mrf.mxu1 }
  0xf4   : > { %v6878_v60 = vpack.i.bf16 %v6756_v50, %v619_v52 }
  0xf5   : > { %v6781_v54 = vpop.f32.mrf.mxu0  ;;  %6864 = vrot.lane.b32.xlu0 %v6863_v51, %s7578_s18  ;;  %v732_v55 = vpop.f32.mrf.mxu1 }
  0xf6   : > { %v6883_v56 = vpack.i.bf16 %v6770_v53, %v732_v55 }
  0xf7   : > { %v835_v57 = vpop.f32.mrf.mxu0 }
  0xf8   : > { %v6873_v58 = vpack.i.bf16 %v6781_v54, %v835_v57 }
  0xf9   : > { %v6784_v59 = vpop.f32.mrf.mxu0  ;;  %6884 = vrot.lane.b32.xlu0 %v6883_v56, %s7580_s23  ;;  %s7590_s23 = smov [#allocation2]  }
  0xfa   : > { %6874 = vrot.lane.b32.xlu1 %v6873_v58, %s7581_s29 }
  0xfb   : > { %v845_v61 = vpop.f32.mrf.mxu0 }
  0xfc   : > { %v6888_v62 = vpack.i.bf16 %v6784_v59, %v845_v61 }
  0xfe   : > { %6879 = vrot.lane.b32.xlu1 %v6878_v60, %s7579_s22 }
 0x102   : > { %6889 = vrot.lane.b32.xlu1 %v6888_v62, %s7581_s29 }
 0x158   : > { %v6855_v63 = vpop.permute.xlu0 %6854 }
 0x159   : > { %v6857_v3 = vunpack.i.h.bf16 %v6855_v63  ;;  %v6856_v5 = vunpack.i.l.bf16 %v6855_v63 }
 0x15b   : > { %v918_v9 = vsel %vm304_vm3, %v7939_v12, %v6856_v5  ;;  %v919_v11 = vsel %vm304_vm3, %v7937_v10, %v6857_v3  ;;  %v981_v3 = vsub.s32 0, %v7681_v1  ;;  %v989_v5 = vsub.s32 2, %v7681_v1 }
 0x163   : > { %v6860_v0 = vpop.permute.xlu0 %6859 }
 0x164   : > { %v6862_v6 = vunpack.i.h.bf16 %v6860_v0  ;;  %v6861_v7 = vunpack.i.l.bf16 %v6860_v0 }
 0x165   : > { %v6870_v8 = vpop.permute.xlu1 %6869 }
 0x166   : > { %v6872_v13 = vunpack.i.h.bf16 %v6870_v8  ;;  %v6871_v14 = vunpack.i.l.bf16 %v6870_v8  ;;  %v924_v17 = vsel %vm922_vm9, %v919_v11, %v6862_v6  ;;  %v923_v18 = vsel %vm922_vm9, %v918_v9, %v6861_v7  ;;  %v977_v8 = vld [vmem:[%s9573_s2] sm:$0xf] }
 0x167   : > { %v6865_v20 = vpop.permute.xlu0 %6864  ;;  %v985_v9 = vsub.s32 1, %v7681_v1  ;;  %v993_v11 = vsub.s32 3, %v7681_v1 }
 0x168   : > { %v928_v28 = vsel %vm927_vm10, %v923_v18, %v6871_v14  ;;  %v929_v12 = vsel %vm927_vm10, %v924_v17, %v6872_v13  ;;  %v6867_v29 = vunpack.i.h.bf16 %v6865_v20  ;;  %v6866_v31 = vunpack.i.l.bf16 %v6865_v20 }
 0x169   : > { %v982_v17 = vrot.slane %v977_v8, %v981_v3  ;;  %v990_v18 = vrot.slane %v977_v8, %v989_v5 }
 0x16a   : > { %v921_v43 = vsel %vm304_vm3, %v7953_v24, %v6867_v29  ;;  %v920_v45 = vsel %vm304_vm3, %v7956_v26, %v6866_v31 }
 0x16b   : > { %v6885_v37 = vpop.permute.xlu0 %6884 }
 0x16c   : > { %v6875_v23 = vpop.permute.xlu1 %6874  ;;  %v6887_v46 = vunpack.i.h.bf16 %v6885_v37  ;;  %v6886_v47 = vunpack.i.l.bf16 %v6885_v37 }
 0x16d   : > { %v6877_v25 = vunpack.i.h.bf16 %v6875_v23  ;;  %v6876_v27 = vunpack.i.l.bf16 %v6875_v23 }
 0x16f   : > { %v934_v10 = vsel %vm932_vm11, %v929_v12, %v6877_v25  ;;  %v933_v33 = vsel %vm932_vm11, %v928_v28, %v6876_v27  ;;  %v938_v36 = vpack.c.bf16 %v6877_v25, %v6876_v27  ;;  %v986_v25 = vrot.slane %v977_v8, %v985_v9 }
 0x170   : > { %v937_v38 = vpack.c.bf16 %v934_v10, %v933_v33  ;;  %v6880_v39 = vpop.permute.xlu1 %6879  ;;  %v994_v27 = vrot.slane %v977_v8, %v993_v11 }
 0x171   : > { %v6882_v40 = vunpack.i.h.bf16 %v6880_v39  ;;  %v6881_v42 = vunpack.i.l.bf16 %v6880_v39  ;;  %6098 = vmatprep.mubr.msk.bf16.mxu1 %vm1175_vm12, %v938_v36  ;;  %6101 = vmatprep.mubr.msk.bf16.mxu0 %vm1175_vm12, %v938_v36 }
 0x172   : > { %1228 = vmatmul.mubr.bf16.vlgmr.msra.gmra.mxu1 %v937_v38  ;;  %1281 = vmatmul.mubr.bf16.vlgmr.msra.gmra.mxu0 %v937_v38 }
 0x173   : > { %v926_v48 = vsel %vm922_vm9, %v921_v43, %v6882_v40  ;;  %v925_v49 = vsel %vm922_vm9, %v920_v45, %v6881_v42  ;;  %v1317_v40 = vmul.u32 2, %v7681_v1  ;;  %vm5940_vm9 = vcmask 73728  }
 0x174   : > { %v6890_v50 = vpop.permute.xlu1 %6889  ;;  %v930_v53 = vsel %vm927_vm10, %v925_v49, %v6886_v47  ;;  %v931_v54 = vsel %vm927_vm10, %v926_v48, %v6887_v46 }
 0x175   : > { %v6892_v51 = vunpack.i.h.bf16 %v6890_v50  ;;  %v6891_v52 = vunpack.i.l.bf16 %v6890_v50  ;;  %vm1319_vm13 = vcmp.eq.s32.totalorder %v7683_v2, %v1317_v40 }
 0x177   : > { %v940_v55 = vpack.c.bf16 %v6892_v51, %v6891_v52  ;;  %v935_v24 = vsel %vm932_vm11, %v930_v53, %v6891_v52  ;;  %v936_v26 = vsel %vm932_vm11, %v931_v54, %v6892_v51 }
 0x178   : > { %v939_v56 = vpack.c.bf16 %v936_v26, %v935_v24 }
 0x179   : > { %6099 = vmatprep.mubr.msk.bf16.mxu1 %vm1175_vm12, %v940_v55  ;;  %6102 = vmatprep.mubr.msk.bf16.mxu0 %vm1175_vm12, %v940_v55 }
 0x17a   : > { %1238 = vmatmul.mubr.bf16.gmra.mxu1 %v939_v56  ;;  %1291 = vmatmul.mubr.bf16.gmra.mxu0 %v939_v56 }
 0x17b   : > { %1415 = vmatprep.mubr.f32.mxu1 %v7577_v15  ;;  %1492 = vmatprep.mubr.f32.mxu0 %v7577_v15 }
 0x232   : > { %v1229_v57 = vpop.f32.mrf.mxu1  ;;  %v1282_v58 = vpop.f32.mrf.mxu0 }
 0x233   : > { %v1230_v55 = vadd.f32 %v1229_v57, %v982_v17  ;;  %v1283_v24 = vadd.f32 %v1282_v58, %v990_v18  ;;  %v1318_v57 = vmul.u32 2, %v7687_v4  ;;  %v1325_v4 = vadd.s32 1, %v1317_v40 }
 0x234   : > { %v1231_v59 = vpop.f32.mrf.mxu1  ;;  %v1284_v60 = vpop.f32.mrf.mxu0 }
 0x235   : > { %v1232_v51 = vadd.f32 %v1231_v59, %v986_v25  ;;  %v1285_v52 = vadd.f32 %v1284_v60, %v994_v27  ;;  %vm1320_vm14 = vcmp.eq.s32.totalorder %v7683_v2, %v1318_v57  ;;  %vm1327_vm15 = vcmp.eq.s32.totalorder %v7683_v2, %v1325_v4 }
 0x236   : > { %v1233_v61 = vpop.f32.mrf.mxu1  ;;  %v1286_v62 = vpop.f32.mrf.mxu0  ;;  %v6104_v8 = vsel %vm1320_vm14, 1.0, %v7577_v15 }
 0x237   : > { %v1234_v47 = vadd.f32 %v1233_v61, %v982_v17  ;;  %v1287_v48 = vadd.f32 %v1286_v62, %v990_v18  ;;  %v1302_v58 = vmax.f32 %v1232_v51, 0.0 }
 0x238   : > { %v1235_v63 = vpop.f32.mrf.mxu1  ;;  %v1288_v0 = vpop.f32.mrf.mxu0 }
 0x239   : > { %v1236_v42 = vadd.f32 %v1235_v63, %v986_v25  ;;  %v1289_v43 = vadd.f32 %v1288_v0, %v994_v27  ;;  %v1305_v61 = vmax.f32 %v1234_v47, 0.0  ;;  %v1307_v62 = vmax.f32 %v1287_v48, 0.0 }
 0x23a   : > { %v1239_v6 = vpop.f32.mrf.mxu1  ;;  %v1292_v7 = vpop.f32.mrf.mxu0  ;;  %v1304_v63 = vmax.f32 %v1285_v52, 0.0  ;;  %v1301_v0 = vmax.f32 %v1230_v55, 0.0 }
 0x23b   : > { %v1240_v38 = vadd.f32 %v1239_v6, %v982_v17  ;;  %v1293_v39 = vadd.f32 %v1292_v7, %v990_v18  ;;  %v1306_v59 = vmax.f32 %v1236_v42, 0.0  ;;  %v8045_v60 = vmax.f32 %v1289_v43, 0.0 }
 0x23c   : > { %v1241_v13 = vpop.f32.mrf.mxu1  ;;  %v1294_v14 = vpop.f32.mrf.mxu0  ;;  %v1303_v6 = vmax.f32 %v1283_v24, 0.0  ;;  %v8053_v7 = vsel %vm1319_vm13, 1.0, %v7577_v15 }
 0x23d   : > { %v1242_v10 = vadd.f32 %v1241_v13, %v986_v25  ;;  %v1295_v33 = vadd.f32 %v1294_v14, %v994_v27  ;;  %v1309_v26 = vmax.f32 %v1240_v38, 0.0  ;;  %v8040_v56 = vmax.f32 %v1293_v39, 0.0 }
 0x23e   : > { %v1243_v20 = vpop.f32.mrf.mxu1  ;;  %v1296_v23 = vpop.f32.mrf.mxu0  ;;  %v1326_v13 = vadd.s32 1, %v1318_v57  ;;  %v8075_v14 = vsel %vm1327_vm15, 1.0, %v7577_v15 }
 0x23f   : > { %v1244_v28 = vadd.f32 %v1243_v20, %v982_v17  ;;  %v1297_v12 = vadd.f32 %v1296_v23, %v990_v18  ;;  %v1310_v53 = vmax.f32 %v1242_v10, 0.0  ;;  %v8035_v54 = vmax.f32 %v1295_v33, 0.0 }
 0x240   : > { %v1245_v29 = vpop.f32.mrf.mxu1  ;;  %v1298_v31 = vpop.f32.mrf.mxu0  ;;  %vm1328_vm1 = vcmp.eq.s32.totalorder %v7683_v2, %v1326_v13 }
 0x241   : > { %v1246_v36 = vadd.f32 %v1245_v29, %v986_v25  ;;  %v1299_v37 = vadd.f32 %v1298_v31, %v994_v27  ;;  %v1313_v49 = vmax.f32 %v1244_v28, 0.0  ;;  %v8033_v50 = vmax.f32 %v1297_v12, 0.0 }
 0x242   : > { %v6106_v17 = vsel %vm1328_vm1, 1.0, %v7577_v15 }
 0x243   : > { %v1314_v45 = vmax.f32 %v1246_v36, 0.0  ;;  %v8031_v46 = vmax.f32 %v1299_v37, 0.0 }
 0x245   : > { %6107 = vmatprep.subr.msk.mxu1 %vm317_vm0, %v1314_v45  ;;  %6111 = vmatprep.subr.msk.mxu0 %vm317_vm0, %v8031_v46 }
 0x246   : > { %6108 = vmatpush1.msk.msra.mxu1 %vm317_vm0, %v1313_v49  ;;  %6112 = vmatpush1.msk.msra.mxu0 %vm317_vm0, %v8033_v50 }
 0x247   : > { %1377 = vmatprep.subr.mxu1 %v1310_v53  ;;  %1454 = vmatprep.subr.mxu0 %v8035_v54 }
 0x248   : > { %1378 = vmatpush1.msra.mxu1 %v1309_v26  ;;  %1455 = vmatpush1.msra.mxu0 %v8040_v56 }
 0x249   : > { %1379 = vmatprep.subr.mxu1 %v1306_v59  ;;  %1456 = vmatprep.subr.mxu0 %v8045_v60 }
 0x24a   : > { %1380 = vmatpush1.msra.mxu1 %v1305_v61  ;;  %1457 = vmatpush1.msra.mxu0 %v1307_v62 }
 0x24b   : > { %1381 = vmatprep.subr.mxu1 %v1302_v58  ;;  %1458 = vmatprep.subr.mxu0 %v1304_v63 }
 0x24c   : > { %1382 = vmatpush1.msra.mxu1 %v1301_v0  ;;  %1459 = vmatpush1.msra.mxu0 %v1303_v6 }
 0x24d   : > { %6109 = vmatmul.mubr.msk.f32.vlgmr.msra.gmra.mxu1 %vm304_vm3, %v8053_v7  ;;  %6115 = vmatprep.subr.msk.mxu1 %vm317_vm0, %v1314_v45 }
 0x24e   : > { %6119 = vmatprep.subr.msk.mxu0 %vm317_vm0, %v8031_v46  ;;  %6113 = vmatmul.mubr.msk.f32.vlgmr.msra.gmra.mxu0 %vm304_vm3, %v8053_v7 }
 0x24f   : > { %6116 = vmatpush1.msk.msra.mxu1 %vm317_vm0, %v1313_v49  ;;  %6120 = vmatpush1.msk.msra.mxu0 %vm317_vm0, %v8033_v50 }
 0x250   : > { %1537 = vmatprep.subr.mxu1 %v1310_v53  ;;  %1614 = vmatprep.subr.mxu0 %v8035_v54 }
 0x251   : > { %1421 = vmatprep.mubr.f32.mxu1 %v7577_v15  ;;  %1538 = vmatpush1.msra.mxu1 %v1309_v26 }
 0x252   : > { %1615 = vmatpush1.msra.mxu0 %v8040_v56  ;;  %6110 = vmatmul.mubr.msk.f32.gmra.mxu1 %vm304_vm3, %v6104_v8 }
 0x253   : > { %1539 = vmatprep.subr.mxu1 %v1306_v59  ;;  %1616 = vmatprep.subr.mxu0 %v8045_v60 }
 0x254   : > { %1498 = vmatprep.mubr.f32.mxu0 %v7577_v15  ;;  %1540 = vmatpush1.msra.mxu1 %v1305_v61 }
 0x255   : > { %1617 = vmatpush1.msra.mxu0 %v1307_v62  ;;  %1541 = vmatprep.subr.mxu1 %v1302_v58 }
 0x256   : > { %6114 = vmatmul.mubr.msk.f32.gmra.mxu0 %vm304_vm3, %v6104_v8  ;;  %1618 = vmatprep.subr.mxu0 %v1304_v63 }
 0x257   : > { %1542 = vmatpush1.msra.mxu1 %v1301_v0  ;;  %1575 = vmatprep.mubr.f32.mxu1 %v7577_v15 }
 0x258   : > { %1619 = vmatpush1.msra.mxu0 %v1303_v6  ;;  %6117 = vmatmul.mubr.msk.f32.vlgmr.msra.gmra.mxu1 %vm304_vm3, %v8075_v14 }
 0x259   : > { %6793 = vmatprep.subr.msk.mxu1 %vm317_vm0, %v8031_v46  ;;  %1652 = vmatprep.mubr.f32.mxu0 %v7577_v15 }
 0x25a   : > { %6797 = vmatpush1.msk.msra.mxu1 %vm317_vm0, %v8033_v50  ;;  %6121 = vmatmul.mubr.msk.f32.vlgmr.msra.gmra.mxu0 %vm304_vm3, %v8075_v14  ;;  %vm1793_vm0 = vcmask 130048  }
 0x25b   : > { %6794 = vmatprep.subr.mxu1 %v8035_v54  ;;  %1581 = vmatprep.mubr.f32.mxu1 %v7577_v15 }
 0x25c   : > { %6798 = vmatpush1.msra.mxu1 %v8040_v56  ;;  %1979 = vmatprep.mubr.f32.mxu0 %v7577_v15 }
 0x25d   : > { %6118 = vmatmul.mubr.msk.f32.gmra.mxu1 %vm304_vm3, %v6106_v17  ;;  %6795 = vmatprep.subr.mxu1 %v8045_v60 }
 0x25e   : > { %6799 = vmatpush1.msra.mxu1 %v1307_v62  ;;  %1658 = vmatprep.mubr.f32.mxu1 %v7577_v15 }
 0x25f   : > { %6796 = vmatprep.subr.mxu1 %v1304_v63 }
 0x260   : > { %6800 = vmatpush1.msra.mxu1 %v1303_v6 }
 0x261   : > { %6122 = vmatmul.mubr.msk.f32.vlgmr.msra.gmra.mxu1 %vm304_vm3, %v6106_v17  ;;  %vm1796_vm3 = vcmask 261120  }
 0x262   : > { %1898 = vmatprep.mubr.f32.mxu1 %v7577_v15 }
 0x30d   : > { %v1417_v2 = vpop.f32.mrf.mxu1 }
 0x30e   : > { %v1494_v20 = vpop.f32.mrf.mxu0 }
 0x30f   : > { %v1419_v18 = vpop.f32.mrf.mxu1 }
 0x310   : > { %v1496_v25 = vpop.f32.mrf.mxu0 }
 0x312   : > { %v1423_v23 = vpop.f32.mrf.mxu1 }
 0x314   : > { %v1425_v27 = vpop.f32.mrf.mxu1 }
 0x316   : > { %v1500_v28 = vpop.f32.mrf.mxu0 }
 0x318   : > { %v1577_v12 = vpop.f32.mrf.mxu1  ;;  %v1502_v10 = vpop.f32.mrf.mxu0 }
 0x319   : > { %v1665_v29 = vmax.f32 %v1417_v2, %v1577_v12 }
 0x31a   : > { %v1579_v31 = vpop.f32.mrf.mxu1  ;;  %v1654_v37 = vpop.f32.mrf.mxu0 }
 0x31b   : > { %1675 = vrot.lane.b32.xlu0 %v1665_v29, %s7581_s29  ;;  %v1667_v42 = vmax.f32 %v1494_v20, %v1654_v37  ;;  %v1666_v46 = vmax.f32 %v1419_v18, %v1579_v31 }
 0x31c   : > { %v1656_v48 = vpop.f32.mrf.mxu0 }
 0x31d   : > { %v1583_v33 = vpop.f32.mrf.mxu1  ;;  %v1668_v49 = vmax.f32 %v1496_v25, %v1656_v48 }
 0x31e   : > { %v1669_v36 = vmax.f32 %v1423_v23, %v1583_v33 }
 0x31f   : > { %v1585_v38 = vpop.f32.mrf.mxu1 }
 0x320   : > { %v1670_v39 = vmax.f32 %v1425_v27, %v1585_v38  ;;  %1677 = vrot.lane.b32.xlu0 %v1669_v36, %s7581_s29 }
 0x321   : > { %v1660_v40 = vpop.f32.mrf.mxu1 }
 0x322   : > { %1687 = vrot.lane.b32.xlu1 %v1670_v39, %s7581_s29  ;;  %v1671_v43 = vmax.f32 %v1500_v28, %v1660_v40 }
 0x323   : > { %v1662_v45 = vpop.f32.mrf.mxu1 }
 0x324   : > { %1695 = vrot.lane.b32.xlu0 %v1667_v42, %s7581_s29  ;;  %v1672_v47 = vmax.f32 %v1502_v10, %v1662_v45 }
 0x326   : > { %1697 = vrot.lane.b32.xlu1 %v1671_v43, %s7581_s29 }
 0x328   : > { %1685 = vrot.lane.b32.xlu0 %v1666_v46, %s7581_s29 }
 0x32a   : > { %1707 = vrot.lane.b32.xlu1 %v1672_v47, %s7581_s29 }
 0x32e   : > { %1705 = vrot.lane.b32.xlu1 %v1668_v49, %s7581_s29 }
 0x38d   : > { %v1676_v50 = vpop.permute.xlu0 %1675 }
 0x38e   : > { %v8107_v51 = vmax.f32 %v1665_v29, %v1676_v50 }
 0x390   : > { %1721 = vrot.lane.b32.xlu0 %v8107_v51, %s7582_s9  ;;  %1715 = vrot.lane.b32.xlu1 %v8107_v51, %s7581_s29 }
 0x392   : > { %v1678_v52 = vpop.permute.xlu0 %1677 }
 0x393   : > { %v1682_v53 = vmax.f32 %v1669_v36, %v1678_v52 }
 0x394   : > { %v1688_v54 = vpop.permute.xlu1 %1687 }
 0x395   : > { %1723 = vrot.lane.b32.xlu1 %v1682_v53, %s7582_s9  ;;  %v1692_v24 = vmax.f32 %v1670_v39, %v1688_v54 }
 0x396   : > { %v1696_v55 = vpop.permute.xlu0 %1695 }
 0x397   : > { %v8114_v26 = vmax.f32 %v1667_v42, %v1696_v55 }
 0x398   : > { %v1698_v60 = vpop.permute.xlu1 %1697 }
 0x399   : > { %1761 = vrot.lane.b32.xlu0 %v8114_v26, %s7581_s29  ;;  %1737 = vrot.lane.b32.xlu1 %v1692_v24, %s7583_s13  ;;  %v1702_v61 = vmax.f32 %v1671_v43, %v1698_v60 }
 0x39a   : > { %v1686_v56 = vpop.permute.xlu0 %1685 }
 0x39b   : > { %v1691_v59 = vmax.f32 %v1666_v46, %v1686_v56 }
 0x39c   : > { %v1708_v62 = vpop.permute.xlu1 %1707 }
 0x39d   : > { %1727 = vrot.lane.b32.xlu0 %v8107_v51, %s7584_s14  ;;  %1743 = vrot.lane.b32.xlu1 %v1692_v24, %s7585_s15  ;;  %v1712_v57 = vmax.f32 %v1672_v47, %v1708_v62 }
 0x3a0   : > { %v1706_v58 = vpop.permute.xlu1 %1705 }
 0x3a1   : > { %1767 = vrot.lane.b32.xlu0 %v8114_v26, %s7582_s9  ;;  %1749 = vrot.lane.b32.xlu1 %v1692_v24, %s7586_s16  ;;  %v1711_v63 = vmax.f32 %v1668_v49, %v1706_v58 }
 0x3a5   : > { %1773 = vrot.lane.b32.xlu0 %v8114_v26, %s7584_s14  ;;  %1755 = vrot.lane.b32.xlu1 %v1692_v24, %s7587_s17 }
 0x3a9   : > { %1735 = vrot.lane.b32.xlu0 %v1691_v59, %s7583_s13  ;;  %1747 = vrot.lane.b32.xlu1 %v1691_v59, %s7586_s16 }
 0x3ad   : > { %1741 = vrot.lane.b32.xlu0 %v1691_v59, %s7585_s15  ;;  %1769 = vrot.lane.b32.xlu1 %v1702_v61, %s7582_s9 }
 0x3b1   : > { %1717 = vrot.lane.b32.xlu0 %v1682_v53, %s7581_s29  ;;  %1775 = vrot.lane.b32.xlu1 %v1702_v61, %s7584_s14 }
 0x3b5   : > { %1729 = vrot.lane.b32.xlu0 %v1682_v53, %s7584_s14  ;;  %1783 = vrot.lane.b32.xlu1 %v1712_v57, %s7583_s13  ;;  %s269_s14 = sand.u32 1, %s7567_s25  }
 0x3b6   : > { %s5943_s21 = scalar_lea.sflag [#allocation3], %s269_s14 }
 0x3b9   : > { %1763 = vrot.lane.b32.xlu0 %v1702_v61, %s7581_s29  ;;  %1789 = vrot.lane.b32.xlu1 %v1712_v57, %s7585_s15 }
 0x3bd   : > { %1753 = vrot.lane.b32.xlu1 %v1691_v59, %s7587_s17  ;;  %1781 = vrot.lane.b32.xlu0 %v1711_v63, %s7583_s13 }
 0x3c1   : > { %1787 = vrot.lane.b32.xlu0 %v1711_v63, %s7585_s15 }
 0x402   : > { %v1716_v0 = vpop.permute.xlu1 %1715  ;;  %v1722_v6 = vpop.permute.xlu0 %1721 }
 0x403   : > { %v1794_v42 = vsel %vm1793_vm0, %v8107_v51, %v1716_v0 }
 0x404   : > { %v1797_v49 = vsel %vm1796_vm3, %v1794_v42, %v1722_v6  ;;  %v7041_v42 = vld [vmem:[%s9574_s3 + $0x1e4] ss:$16 sps:$4 sm:$0xff]  }
 0x407   : > { %v1724_v4 = vpop.permute.xlu1 %1723 }
 0x40b   : > { %v1762_v8 = vpop.permute.xlu0 %1761  ;;  %v1738_v13 = vpop.permute.xlu1 %1737 }
 0x40c   : > { %v1813_v55 = vsel %vm1793_vm0, %v8114_v26, %v1762_v8  ;;  %v7011_v8 = vld [vmem:[%s9574_s3 + $0x84] ss:$16 sps:$4 sm:$0xff]  }
 0x40f   : > { %v1728_v17 = vpop.permute.xlu0 %1727  ;;  %v1744_v2 = vpop.permute.xlu1 %1743 }
 0x413   : > { %v1768_v18 = vpop.permute.xlu0 %1767  ;;  %v1750_v20 = vpop.permute.xlu1 %1749 }
 0x414   : > { %v1815_v59 = vsel %vm1796_vm3, %v1813_v55, %v1768_v18  ;;  %v7017_v18 = vld [vmem:[%s9574_s3 + $0x64] ss:$16 sps:$4 sm:$0xff]  }
 0x415   : > { %v7059_v55 = vld [vmem:[%s9574_s3 + $0x184] ss:$16 sps:$4 sm:$0xff]  }
 0x417   : > { %v1774_v23 = vpop.permute.xlu0 %1773  ;;  %v1756_v25 = vpop.permute.xlu1 %1755 }
 0x418   : > { %v1817_v62 = vsel %vm1799_vm2, %v1815_v59, %v1774_v23  ;;  %v7032_v23 = vld [vmem:[%s9574_s3 + $0x264] ss:$16 sps:$4 sm:$0xff]   ;;  %v7057_v59 = vld [vmem:[%s9574_s3 + $0x180] ss:$16 sps:$4 sm:$0xff]  }
 0x41b   : > { %v1736_v27 = vpop.permute.xlu0 %1735  ;;  %v1748_v28 = vpop.permute.xlu1 %1747 }
 0x41f   : > { %v1742_v12 = vpop.permute.xlu0 %1741  ;;  %v1770_v29 = vpop.permute.xlu1 %1769 }
 0x423   : > { %v1718_v31 = vpop.permute.xlu0 %1717  ;;  %v1776_v10 = vpop.permute.xlu1 %1775 }
 0x424   : > { %v1795_v33 = vsel %vm1793_vm0, %v1682_v53, %v1718_v31  ;;  %v1800_v53 = vsel %vm1799_vm2, %v1797_v49, %v1728_v17  ;;  %v7026_v17 = vld [vmem:[%s9574_s3 + $0x284] ss:$16 sps:$4 sm:$0xff]  }
 0x425   : > { %v1798_v37 = vsel %vm1796_vm3, %v1795_v33, %v1724_v4  ;;  %v1803_v24 = vsel %vm1802_vm4, %v1800_v53, %v1736_v27  ;;  %v7003_v4 = vld [vmem:[%s9574_s3 + $0xa0] ss:$16 sps:$4 sm:$0xff]   ;;  %v7023_v27 = vld [vmem:[%s9574_s3 + $0x44] ss:$16 sps:$4 sm:$0xff]  }
 0x426   : > { %v1806_v60 = vsel %vm1805_vm5, %v1803_v24, %v1742_v12  ;;  %v7038_v12 = vld [vmem:[%s9574_s3 + $0x244] ss:$16 sps:$4 sm:$0xff]   ;;  %v7060_v53 = vld [vmem:[%s9574_s3 + $0x3c0] ss:$16 sps:$4 sm:$0xff]  }
 0x427   : > { %v1730_v36 = vpop.permute.xlu0 %1729  ;;  %v1784_v38 = vpop.permute.xlu1 %1783  ;;  %v1809_v63 = vsel %vm1808_vm6, %v1806_v60, %v1748_v28  ;;  %v7030_v28 = vld [vmem:[%s9574_s3 + $0x260] ss:$16 sps:$4 sm:$0xff]   ;;  %v7029_v31 = vld [vmem:[%s9574_s3 + $0x24] ss:$16 sps:$4 sm:$0xff]  }
 0x428   : > { %v1801_v39 = vsel %vm1799_vm2, %v1798_v37, %v1730_v36  ;;  %v7044_v33 = vld [vmem:[%s9574_s3 + $0x224] ss:$16 sps:$4 sm:$0xff]   ;;  %v7027_v36 = vld [vmem:[%s9574_s3 + $0x20] ss:$16 sps:$4 sm:$0xff]  }
 0x429   : > { %v1804_v40 = vsel %vm1802_vm4, %v1801_v39, %v1738_v13  ;;  %v7018_v13 = vld [vmem:[%s9574_s3 + $0x2a0] ss:$16 sps:$4 sm:$0xff]   ;;  %v7035_v37 = vld [vmem:[%s9574_s3 + $0x4] ss:$16 sps:$4 sm:$0xff]  }
 0x42a   : > { %v1807_v43 = vsel %vm1805_vm5, %v1804_v40, %v1744_v2  ;;  %v7009_v2 = vld [vmem:[%s9574_s3 + $0x80] ss:$16 sps:$4 sm:$0xff]   ;;  %v7050_v39 = vld [vmem:[%s9574_s3 + $0x204] ss:$16 sps:$4 sm:$0xff]  }
 0x42b   : > { %v1764_v45 = vpop.permute.xlu0 %1763  ;;  %v1790_v47 = vpop.permute.xlu1 %1789  ;;  %v1810_v52 = vsel %vm1808_vm6, %v1807_v43, %v1750_v20  ;;  %v7024_v20 = vld [vmem:[%s9574_s3 + $0x280] ss:$16 sps:$4 sm:$0xff]   ;;  %v7062_v49 = vld [vmem:[%s9574_s3 + $0x3c4] ss:$16 sps:$4 sm:$0xff]  }
 0x42c   : > { %v1814_v46 = vsel %vm1793_vm0, %v1702_v61, %v1764_v45  ;;  %v1812_v61 = vsel %vm932_vm11, %v1810_v52, %v1756_v25  ;;  %v7015_v25 = vld [vmem:[%s9574_s3 + $0x60] ss:$16 sps:$4 sm:$0xff]   ;;  %v7056_v45 = vld [vmem:[%s9574_s3 + $0x3e4] ss:$16 sps:$4 sm:$0xff]  }
 0x42d   : > { %v1816_v48 = vsel %vm1796_vm3, %v1814_v46, %v1770_v29  ;;  %v7021_v29 = vld [vmem:[%s9574_s3 + $0x40] ss:$16 sps:$4 sm:$0xff]   ;;  %v7053_v52 = vld [vmem:[%s9574_s3 + $0x1a4] ss:$16 sps:$4 sm:$0xff]  }
 0x42e   : > { %v1818_v50 = vsel %vm1799_vm2, %v1816_v48, %v1776_v10  ;;  %v7036_v10 = vld [vmem:[%s9574_s3 + $0x240] ss:$16 sps:$4 sm:$0xff]   ;;  %v7065_v60 = vld [vmem:[%s9574_s3 + $0x164] ss:$16 sps:$4 sm:$0xff]  }
 0x42f   : > { %v1820_v54 = vsel %vm1802_vm4, %v1818_v50, %v1784_v38  ;;  %v1782_v51 = vpop.permute.xlu0 %1781  ;;  %v1754_v57 = vpop.permute.xlu1 %1753  ;;  %v7042_v38 = vld [vmem:[%s9574_s3 + $0x220] ss:$16 sps:$4 sm:$0xff]  }
 0x430   : > { %v1822_v56 = vsel %vm1805_vm5, %v1820_v54, %v1790_v47  ;;  %v1819_v26 = vsel %vm1802_vm4, %v1817_v62, %v1782_v51  ;;  %v1811_v6 = vsel %vm932_vm11, %v1809_v63, %v1754_v57  ;;  %v7033_v40 = vld [vmem:[%s9574_s3] ss:$16 sps:$4 sm:$0xff]   ;;  %v7047_v47 = vld [vmem:[%s9574_s3 + $0x1c4] ss:$16 sps:$4 sm:$0xff]  }
 0x431   : > { %6123 = vmatprep.subr.msk.mxu1 %vm1182_vm8, %v1822_v56  ;;  %6127 = vmatprep.subr.msk.mxu0 %vm1182_vm8, %v1822_v56  ;;  %v7048_v43 = vld [vmem:[%s9574_s3 + $0x200] ss:$16 sps:$4 sm:$0xff]   ;;  %v7068_v54 = vld [vmem:[%s9574_s3 + $0x3a4] ss:$16 sps:$4 sm:$0xff]  }
 0x432   : > { %6124 = vmatpush1.msk.msra.mxu1 %vm1182_vm8, %v1812_v61  ;;  %6128 = vmatpush1.msk.msra.mxu0 %vm1182_vm8, %v1812_v61  ;;  %v7039_v46 = vld [vmem:[%s9574_s3 + $0x1e0] ss:$16 sps:$4 sm:$0xff]   ;;  %v7080_v62 = vld [vmem:[%s9574_s3 + $0x364] ss:$16 sps:$4 sm:$0xff]  }
 0x433   : > { %v1788_v58 = vpop.permute.xlu0 %1787  ;;  %v7054_v48 = vld [vmem:[%s9574_s3 + $0x3e0] ss:$16 sps:$4 sm:$0xff]  }
 0x434   : > { %v1821_v0 = vsel %vm1805_vm5, %v1819_v26, %v1788_v58  ;;  %v7045_v50 = vld [vmem:[%s9574_s3 + $0x1c0] ss:$16 sps:$4 sm:$0xff]   ;;  %v7071_v26 = vld [vmem:[%s9574_s3 + $0x144] ss:$16 sps:$4 sm:$0xff]  }
 0x435   : > { %1864 = vmatprep.subr.mxu1 %v1821_v0  ;;  %1945 = vmatprep.subr.mxu0 %v1821_v0  ;;  %v7051_v51 = vld [vmem:[%s9574_s3 + $0x1a0] ss:$16 sps:$4 sm:$0xff]  }
 0x436   : > { %1865 = vmatpush1.msra.mxu1 %v1811_v6  ;;  %1946 = vmatpush1.msra.mxu0 %v1811_v6  ;;  %v7066_v24 = vld [vmem:[%s9574_s3 + $0x3a0] ss:$16 sps:$4 sm:$0xff]  }
 0x437   : > { %6125 = vmatmul.mubr.msk.f32.vlgmr.msra.gmra.mxu1 %vm1823_vm7, %v7729_v16  ;;  %6129 = vmatmul.mubr.msk.f32.vlgmr.msra.gmra.mxu0 %vm1823_vm7, %v7736_v19  ;;  %v6997_v16 = vld [vmem:[%s9574_s3 + $0xe0] ss:$16 sps:$4 sm:$0xff]   ;;  %v6999_v19 = vld [vmem:[%s9574_s3 + $0xe4] ss:$16 sps:$4 sm:$0xff]  }
 0x438   : > { %6131 = vmatprep.subr.msk.mxu1 %vm1182_vm8, %v1822_v56  ;;  %6135 = vmatprep.subr.msk.mxu0 %vm1182_vm8, %v1822_v56  ;;  %v7063_v57 = vld [vmem:[%s9574_s3 + $0x160] ss:$16 sps:$4 sm:$0xff]  }
 0x439   : > { %6132 = vmatpush1.msk.msra.mxu1 %vm1182_vm8, %v1812_v61  ;;  %6136 = vmatpush1.msk.msra.mxu0 %vm1182_vm8, %v1812_v61  ;;  %v7078_v58 = vld [vmem:[%s9574_s3 + $0x360] ss:$16 sps:$4 sm:$0xff]  }
 0x43a   : > { %2026 = vmatprep.subr.mxu1 %v1821_v0  ;;  %2107 = vmatprep.subr.mxu0 %v1821_v0  ;;  %v7069_v63 = vld [vmem:[%s9574_s3 + $0x140] ss:$16 sps:$4 sm:$0xff]  }
 0x43b   : > { %1904 = vmatprep.mubr.f32.mxu1 %v7577_v15  ;;  %1985 = vmatprep.mubr.f32.mxu0 %v7577_v15 }
 0x43c   : > { %2027 = vmatpush1.msra.mxu1 %v1811_v6  ;;  %2108 = vmatpush1.msra.mxu0 %v1811_v6 }
 0x43d   : > { %6126 = vmatmul.mubr.msk.f32.gmra.mxu1 %vm1823_vm7, %v7742_v21  ;;  %6130 = vmatmul.mubr.msk.f32.gmra.mxu0 %vm1823_vm7, %v7745_v22  ;;  %v7002_v21 = vld [vmem:[%s9574_s3 + $0xc4] ss:$16 sps:$4 sm:$0xff]   ;;  %v7006_v22 = vld [vmem:[%s9574_s3 + $0x2e0] ss:$16 sps:$4 sm:$0xff]  }
 0x43e   : > { %6139 = vmatprep.subr.msk.mxu1 %vm1182_vm8, %v1822_v56  ;;  %2060 = vmatprep.mubr.f32.mxu1 %v7577_v15  ;;  %v7074_v56 = vld [vmem:[%s9574_s3 + $0x384] ss:$16 sps:$4 sm:$0xff]  }
 0x43f   : > { %2141 = vmatprep.mubr.f32.mxu0 %v7577_v15  ;;  %4013 = vmatprep.subr.bf16.mxu0 %v6999_v19  ;;  %v7083_v19 = vld [vmem:[%s9574_s3 + $0x104] ss:$16 sps:$4 sm:$0xff]  }
 0x441   : > { %6133 = vmatmul.mubr.msk.f32.vlgmr.msra.gmra.mxu1 %vm1823_vm7, %v7792_v30  ;;  %6137 = vmatmul.mubr.msk.f32.vlgmr.msra.gmra.mxu0 %vm1823_vm7, %v7807_v34  ;;  %v7008_v30 = vld [vmem:[%s9574_s3 + $0x2e4] ss:$16 sps:$4 sm:$0xff]  }
 0x442   : > { %6140 = vmatpush1.msk.msra.mxu1 %vm1182_vm8, %v1812_v61  ;;  %2066 = vmatprep.mubr.f32.mxu1 %v7577_v15  ;;  %v7014_v34 = vld [vmem:[%s9574_s3 + $0x2c4] ss:$16 sps:$4 sm:$0xff]   ;;  %v7072_v61 = vld [vmem:[%s9574_s3 + $0x380] ss:$16 sps:$4 sm:$0xff]  }
 0x443   : > { %2188 = vmatprep.subr.mxu1 %v1821_v0  ;;  %2147 = vmatprep.mubr.f32.mxu0 %v7577_v15  ;;  %v7077_v0 = vld [vmem:[%s9574_s3 + $0x124] ss:$16 sps:$4 sm:$0xff]  }
 0x444   : > { %2189 = vmatpush1.msra.mxu1 %v1811_v6  ;;  %4014 = vmatpush1.bf16.msra.mxu0 %v6997_v16  ;;  %v7075_v6 = vld [vmem:[%s9574_s3 + $0x120] ss:$16 sps:$4 sm:$0xff]  }
 0x445   : > { %6134 = vmatmul.mubr.msk.f32.gmra.mxu1 %vm1823_vm7, %v7799_v32  ;;  %6138 = vmatmul.mubr.msk.f32.gmra.mxu0 %vm1823_vm7, %v7814_v35  ;;  %v7000_v32 = vld [vmem:[%s9574_s3 + $0xc0] ss:$16 sps:$4 sm:$0xff]   ;;  %v7005_v35 = vld [vmem:[%s9574_s3 + $0xa4] ss:$16 sps:$4 sm:$0xff]  }
 0x446   : > { %2222 = vmatprep.mubr.f32.mxu1 %v7577_v15  ;;  %4015 = vmatprep.subr.bf16.mxu0 %v7002_v21  ;;  %v7081_v16 = vld [vmem:[%s9574_s3 + $0x100] ss:$16 sps:$4 sm:$0xff]  }
 0x447   : > { %4056 = vmatprep.subr.bf16.mxu1 %v7008_v30  ;;  %v7084_v21 = vld [vmem:[%s9574_s3 + $0x340] ss:$16 sps:$4 sm:$0xff]  }
 0x448   : > { %4016 = vmatpush1.bf16.msra.mxu0 %v7000_v32 }
 0x449   : > { %6141 = vmatmul.mubr.msk.f32.vlgmr.msra.gmra.mxu1 %vm1823_vm7, %v7839_v41  ;;  %v7012_v41 = vld [vmem:[%s9574_s3 + $0x2c0] ss:$16 sps:$4 sm:$0xff]   ;;  %4017 = vmatprep.subr.bf16.mxu0 %v7005_v35  ;;  %v7092_v35 = vld [vmem:[%s9574_s3 + $0x4e4] ss:$16 sps:$4 sm:$0xff]  }
 0x44a   : > { %2228 = vmatprep.mubr.f32.mxu1 %v7577_v15  ;;  %4057 = vmatpush1.bf16.msra.mxu1 %v7006_v22  ;;  %v7086_v22 = vld [vmem:[%s9574_s3 + $0x344] ss:$16 sps:$4 sm:$0xff]  }
 0x44b   : > { %4058 = vmatprep.subr.bf16.mxu1 %v7014_v34  ;;  %v7089_v34 = vld [vmem:[%s9574_s3 + $0x324] ss:$16 sps:$4 sm:$0xff]  }
 0x44c   : > { %4018 = vmatpush1.bf16.msra.mxu0 %v7003_v4 }
 0x44d   : > { %6142 = vmatmul.mubr.msk.f32.gmra.mxu1 %vm1823_vm7, %v7853_v44  ;;  %v7020_v44 = vld [vmem:[%s9574_s3 + $0x2a4] ss:$16 sps:$4 sm:$0xff]   ;;  %4019 = vmatprep.subr.bf16.mxu0 %v7011_v8  ;;  %v7093_v8 = vld [vmem:[%s9574_s3 + $0x300] ss:$16 sps:$4 sm:$0xff]  }
 0x44e   : > { %4059 = vmatpush1.bf16.msra.mxu1 %v7012_v41  ;;  %v7087_v41 = vld [vmem:[%s9574_s3 + $0x320] ss:$16 sps:$4 sm:$0xff]  }
 0x44f   : > { %4060 = vmatprep.subr.bf16.mxu1 %v7020_v44 }
 0x450   : > { %4020 = vmatpush1.bf16.msra.mxu0 %v7009_v2 }
 0x451   : > { %4021 = vmatprep.subr.bf16.mxu0 %v7017_v18 }
 0x452   : > { %4061 = vmatpush1.bf16.msra.mxu1 %v7018_v13  ;;  %v7095_v13 = vld [vmem:[%s9574_s3 + $0x304] ss:$16 sps:$4 sm:$0xff]  }
 0x453   : > { %4062 = vmatprep.subr.bf16.mxu1 %v7026_v17 }
 0x454   : > { %4022 = vmatpush1.bf16.msra.mxu0 %v7015_v25 }
 0x455   : > { %4023 = vmatprep.subr.bf16.mxu0 %v7023_v27  ;;  %v7104_v27 = vld [vmem:[%s9574_s3 + $0x6e4] ss:$16 sps:$4 sm:$0xff]  }
 0x456   : > { %4063 = vmatpush1.bf16.msra.mxu1 %v7024_v20 }
 0x457   : > { %4064 = vmatprep.subr.bf16.mxu1 %v7032_v23 }
 0x458   : > { %4024 = vmatpush1.bf16.msra.mxu0 %v7021_v29 }
 0x459   : > { %4025 = vmatprep.subr.bf16.mxu0 %v7029_v31 }
 0x45a   : > { %4065 = vmatpush1.bf16.msra.mxu1 %v7030_v28 }
 0x45b   : > { %4066 = vmatprep.subr.bf16.mxu1 %v7038_v12 }
 0x45c   : > { %4026 = vmatpush1.bf16.msra.mxu0 %v7027_v36 }
 0x45d   : > { %4027 = vmatprep.subr.bf16.mxu0 %v7035_v37 }
 0x45e   : > { %4067 = vmatpush1.bf16.msra.mxu1 %v7036_v10 }
 0x45f   : > { %4068 = vmatprep.subr.bf16.mxu1 %v7044_v33 }
 0x460   : > { %4028 = vmatpush1.bf16.msra.mxu0 %v7033_v40 }
 0x461   : > { %4029 = vmatprep.subr.bf16.mxu0 %v7041_v42 }
 0x462   : > { %4069 = vmatpush1.bf16.msra.mxu1 %v7042_v38 }
 0x463   : > { %4070 = vmatprep.subr.bf16.mxu1 %v7050_v39 }
 0x464   : > { %4030 = vmatpush2.bf16.msra.mxu0 %v7039_v46 }
 0x465   : > { %4031 = vmatprep.subr.bf16.mxu0 %v7047_v47 }
 0x466   : > { %4071 = vmatpush1.bf16.msra.mxu1 %v7048_v43 }
 0x467   : > { %4072 = vmatprep.subr.bf16.mxu1 %v7056_v45 }
 0x468   : > { %4032 = vmatpush2.bf16.msra.mxu0 %v7045_v50 }
 0x469   : > { %4033 = vmatprep.subr.bf16.mxu0 %v7053_v52 }
 0x46a   : > { %4073 = vmatpush2.bf16.msra.mxu1 %v7054_v48 }
 0x46b   : > { %4074 = vmatprep.subr.bf16.mxu1 %v7062_v49 }
 0x46c   : > { %4034 = vmatpush2.bf16.msra.mxu0 %v7051_v51 }
 0x46d   : > { %4035 = vmatprep.subr.bf16.mxu0 %v7059_v55  ;;  %v7098_v55 = vld [vmem:[%s9574_s3 + $0x4c4] ss:$16 sps:$4 sm:$0xff]  }
 0x46e   : > { %4075 = vmatpush2.bf16.msra.mxu1 %v7060_v53  ;;  %v7090_v53 = vld [vmem:[%s9574_s3 + $0x4e0] ss:$16 sps:$4 sm:$0xff]  }
 0x46f   : > { %4076 = vmatprep.subr.bf16.mxu1 %v7068_v54 }
 0x470   : > { %4036 = vmatpush2.bf16.msra.mxu0 %v7057_v59  ;;  %v7096_v59 = vld [vmem:[%s9574_s3 + $0x4c0] ss:$16 sps:$4 sm:$0xff]  }
 0x471   : > { %4037 = vmatprep.subr.bf16.mxu0 %v7065_v60 }
 0x472   : > { %4077 = vmatpush2.bf16.msra.mxu1 %v7066_v24 }
 0x473   : > { %4078 = vmatprep.subr.bf16.mxu1 %v7074_v56 }
 0x474   : > { %4038 = vmatpush2.bf16.msra.mxu0 %v7063_v57 }
 0x475   : > { %4039 = vmatprep.subr.bf16.mxu0 %v7071_v26  ;;  %v7101_v26 = vld [vmem:[%s9574_s3 + $0x4a4] ss:$16 sps:$4 sm:$0xff]  }
 0x476   : > { %4079 = vmatpush2.bf16.msra.mxu1 %v7072_v61 }
 0x477   : > { %4080 = vmatprep.subr.bf16.mxu1 %v7080_v62 }
 0x478   : > { %4040 = vmatpush2.bf16.msra.mxu0 %v7069_v63 }
 0x479   : > { %4041 = vmatprep.subr.bf16.mxu0 %v7077_v0 }
 0x47a   : > { %4081 = vmatpush2.bf16.msra.mxu1 %v7078_v58 }
 0x47b   : > { %4082 = vmatprep.subr.bf16.mxu1 %v7086_v22  ;;  %v7099_v22 = vld [vmem:[%s9574_s3 + $0x4a0] ss:$16 sps:$4 sm:$0xff]  }
 0x47c   : > { %4042 = vmatpush2.bf16.msra.mxu0 %v7075_v6 }
 0x47d   : > { %4043 = vmatprep.subr.bf16.mxu0 %v7083_v19 }
 0x47e   : > { %4083 = vmatpush2.bf16.msra.mxu1 %v7084_v21 }
 0x47f   : > { %4084 = vmatprep.subr.bf16.mxu1 %v7089_v34 }
 0x480   : > { %4044 = vmatpush2.bf16.msra.mxu0 %v7081_v16 }
 0x481   : > { %4099 = vmatprep.subr.bf16.mxu0 %v7092_v35 }
 0x482   : > { %4085 = vmatpush2.bf16.msra.mxu1 %v7087_v41 }
 0x483   : > { %4086 = vmatprep.subr.bf16.mxu1 %v7095_v13 }
 0x486   : > { %4087 = vmatpush2.bf16.msra.mxu1 %v7093_v8 }
 0x487   : > { %4142 = vmatprep.subr.bf16.mxu1 %v7104_v27  ;;  %v7113_v27 = vld [vmem:[%s9574_s3 + $0x464] ss:$16 sps:$4 sm:$0xff]  }
 0x4f7   : > { %v1900_v30 = vpop.f32.mrf.mxu1  ;;  %v1981_v32 = vpop.f32.mrf.mxu0 }
 0x4f9   : > { %v1902_v44 = vpop.f32.mrf.mxu1  ;;  %v1983_v4 = vpop.f32.mrf.mxu0 }
 0x4fd   : > { %v1906_v17 = vpop.f32.mrf.mxu1  ;;  %v1987_v2 = vpop.f32.mrf.mxu0 }
 0x4fe   : > { %v8390_v18 = vpack.c.bf16 %v1906_v17, %v1900_v30  ;;  %v6893_v20 = vpack.i.bf16 %v1987_v2, %v1981_v32  ;;  %v7102_v30 = vld [vmem:[%s9574_s3 + $0x6e0] ss:$16 sps:$4 sm:$0xff]  }
 0x4ff   : > { %v1908_v23 = vpop.f32.mrf.mxu1  ;;  %v1989_v25 = vpop.f32.mrf.mxu0 }
 0x500   : > { %6894 = vrot.lane.b32.xlu0 %v6893_v20, %s7582_s9  ;;  %v6898_v28 = vpack.i.bf16 %v1989_v25, %v1983_v4  ;;  %v7110_v4 = vld [vmem:[%s9574_s3 + $0x6c4] ss:$16 sps:$4 sm:$0xff]   ;;  %v7105_v20 = vld [vmem:[%s9574_s3 + $0x480] ss:$16 sps:$4 sm:$0xff]  }
 0x501   : > { %v2062_v12 = vpop.f32.mrf.mxu1  ;;  %v2143_v29 = vpop.f32.mrf.mxu0  ;;  %v7108_v25 = vld [vmem:[%s9574_s3 + $0x6c0] ss:$16 sps:$4 sm:$0xff]  }
 0x502   : > { %6899 = vrot.lane.b32.xlu1 %v6898_v28, %s7582_s9  ;;  %v7116_v28 = vld [vmem:[%s9574_s3 + $0x6a4] ss:$16 sps:$4 sm:$0xff]  }
 0x503   : > { %v2064_v31 = vpop.f32.mrf.mxu1  ;;  %v2145_v10 = vpop.f32.mrf.mxu0 }
 0x505   : > { %v2068_v33 = vpop.f32.mrf.mxu1  ;;  %v2149_v36 = vpop.f32.mrf.mxu0 }
 0x506   : > { %v6903_v37 = vpack.i.bf16 %v2068_v33, %v2062_v12  ;;  %v6908_v42 = vpack.i.bf16 %v2149_v36, %v2143_v29  ;;  %v7111_v12 = vld [vmem:[%s9574_s3 + $0x460] ss:$16 sps:$4 sm:$0xff]  }
 0x507   : > { %v2070_v38 = vpop.f32.mrf.mxu1  ;;  %v2151_v39 = vpop.f32.mrf.mxu0  ;;  %v7114_v29 = vld [vmem:[%s9574_s3 + $0x6a0] ss:$16 sps:$4 sm:$0xff]  }
 0x508   : > { %v6913_v40 = vpack.i.bf16 %v2070_v38, %v2064_v31  ;;  %6904 = vrot.lane.b32.xlu0 %v6903_v37, %s7583_s13  ;;  %v6918_v43 = vpack.i.bf16 %v2151_v39, %v2145_v10  ;;  %v7119_v31 = vld [vmem:[%s9574_s3 + $0x444] ss:$16 sps:$4 sm:$0xff]   ;;  %v7117_v33 = vld [vmem:[%s9574_s3 + $0x440] ss:$16 sps:$4 sm:$0xff]  }
 0x509   : > { %v2224_v24 = vpop.f32.mrf.mxu1  ;;  %v7122_v10 = vld [vmem:[%s9574_s3 + $0x684] ss:$16 sps:$4 sm:$0xff]   ;;  %v7120_v36 = vld [vmem:[%s9574_s3 + $0x680] ss:$16 sps:$4 sm:$0xff]  }
 0x50a   : > { %6914 = vrot.lane.b32.xlu1 %v6913_v40, %s7583_s13  ;;  %v7125_v37 = vld [vmem:[%s9574_s3 + $0x424] ss:$16 sps:$4 sm:$0xff]   ;;  %v7123_v39 = vld [vmem:[%s9574_s3 + $0x420] ss:$16 sps:$4 sm:$0xff]  }
 0x50b   : > { %v8425_v58 = vpop.f32.mrf.mxu1  ;;  %v7128_v38 = vld [vmem:[%s9574_s3 + $0x664] ss:$16 sps:$4 sm:$0xff]   ;;  %v7126_v40 = vld [vmem:[%s9574_s3 + $0x660] ss:$16 sps:$4 sm:$0xff]  }
 0x50c   : > { %6909 = vrot.lane.b32.xlu0 %v6908_v42, %s7586_s16  ;;  %v7131_v42 = vld [vmem:[%s9574_s3 + $0x404] ss:$16 sps:$4 sm:$0xff]  }
 0x50d   : > { %v2230_v8 = vpop.f32.mrf.mxu1 }
 0x50e   : > { %6919 = vrot.lane.b32.xlu1 %v6918_v43, %s7586_s16  ;;  %v8458_v13 = vpack.c.bf16 %v2230_v8, %v2224_v24  ;;  %v7134_v43 = vld [vmem:[%s9574_s3 + $0x644] ss:$16 sps:$4 sm:$0xff]   ;;  %v7162_v8 = vld [vmem:[%s9574_s3 + $0x7a0] ss:$16 sps:$4 sm:$0xff]  }
 0x50f   : > { %v7149_v24 = vld [vmem:[%s9574_s3 + $0x5a4] ss:$16 sps:$4 sm:$0xff]  }
 0x572   : > { %v6895_v45 = vpop.permute.xlu0 %6894 }
 0x573   : > { %v6897_v46 = vunpack.i.h.bf16 %v6895_v45  ;;  %v6896_v47 = vunpack.i.l.bf16 %v6895_v45  ;;  %v7129_v45 = vld [vmem:[%s9574_s3 + $0x400] ss:$16 sps:$4 sm:$0xff]  }
 0x574   : > { %v6900_v48 = vpop.permute.xlu1 %6899 }
 0x575   : > { %v2293_v49 = vsel %vm1808_vm6, %v1902_v44, %v6896_v47  ;;  %v2294_v50 = vsel %vm1808_vm6, %v1908_v23, %v6897_v46  ;;  %v6902_v54 = vunpack.i.h.bf16 %v6900_v48  ;;  %v6901_v51 = vunpack.i.l.bf16 %v6900_v48  ;;  %v7107_v44 = vld [vmem:[%s9574_s3 + $0x484] ss:$16 sps:$4 sm:$0xff]  }
 0x576   : > { %v8403_v52 = vpack.c.bf16 %v2294_v50, %v2293_v49  ;;  %v7140_v48 = vld [vmem:[%s9574_s3 + $0x624] ss:$16 sps:$4 sm:$0xff]   ;;  %v7135_v49 = vld [vmem:[%s9574_s3 + $0x5e0] ss:$16 sps:$4 sm:$0xff]  }
 0x577   : > { %v2248_v60 = vsel %vm1808_vm6, %v6897_v46, %v6902_v54  ;;  %v2247_v61 = vsel %vm1808_vm6, %v6896_v47, %v6901_v51  ;;  %v7132_v46 = vld [vmem:[%s9574_s3 + $0x640] ss:$16 sps:$4 sm:$0xff]   ;;  %v7137_v47 = vld [vmem:[%s9574_s3 + $0x5e4] ss:$16 sps:$4 sm:$0xff]  }
 0x578   : > { %4045 = vmatprep.mubr.bf16.mxu0 %v8403_v52  ;;  %v8435_v16 = vpack.c.bf16 %v2248_v60, %v2247_v61  ;;  %v7138_v50 = vld [vmem:[%s9574_s3 + $0x620] ss:$16 sps:$4 sm:$0xff]  }
 0x579   : > { %4046 = vmatmul.mubr.bf16.vlgmr.msra.gmra.mxu0 %v8390_v18  ;;  %v7147_v60 = vld [vmem:[%s9574_s3 + $0x5a0] ss:$16 sps:$4 sm:$0xff]  }
 0x57a   : > { %4100 = vmatpush1.bf16.msra.mxu0 %v7090_v53  ;;  %v8413_v56 = vpop.permute.xlu0 %6904  ;;  %v7143_v53 = vld [vmem:[%s9574_s3 + $0x5c4] ss:$16 sps:$4 sm:$0xff]   ;;  %v7150_v61 = vld [vmem:[%s9574_s3 + $0x7e0] ss:$16 sps:$4 sm:$0xff]  }
 0x57b   : > { %v6907_v62 = vunpack.i.h.bf16 %v8413_v56  ;;  %v6906_v57 = vunpack.i.l.bf16 %v8413_v56  ;;  %4101 = vmatprep.subr.bf16.mxu0 %v7098_v55  ;;  %v7144_v55 = vld [vmem:[%s9574_s3 + $0x600] ss:$16 sps:$4 sm:$0xff]   ;;  %v7191_v56 = vld [vmem:[%s9574_s3 + $0x704] ss:$16 sps:$4 sm:$0xff]  }
 0x57c   : > { %v8427_v63 = vpop.permute.xlu1 %6914 }
 0x57d   : > { %v2295_v0 = vsel %vm1802_vm4, %v6901_v51, %v6906_v57  ;;  %v2296_v6 = vsel %vm1802_vm4, %v6902_v54, %v6907_v62  ;;  %v6917_v32 = vunpack.i.h.bf16 %v8427_v63  ;;  %v6916_v34 = vunpack.i.l.bf16 %v8427_v63  ;;  %v7146_v54 = vld [vmem:[%s9574_s3 + $0x604] ss:$16 sps:$4 sm:$0xff]   ;;  %v7141_v51 = vld [vmem:[%s9574_s3 + $0x5c0] ss:$16 sps:$4 sm:$0xff]  }
 0x57e   : > { %4102 = vmatpush1.bf16.msra.mxu0 %v7096_v59  ;;  %v8437_v19 = vpop.permute.xlu0 %6909  ;;  %v8439_v21 = vpack.c.bf16 %v2296_v6, %v2295_v0  ;;  %v7152_v59 = vld [vmem:[%s9574_s3 + $0x7e4] ss:$16 sps:$4 sm:$0xff]   ;;  %v7153_v6 = vld [vmem:[%s9574_s3 + $0x580] ss:$16 sps:$4 sm:$0xff]  }
 0x57f   : > { %v6912_v35 = vunpack.i.h.bf16 %v8437_v19  ;;  %v6911_v41 = vunpack.i.l.bf16 %v8437_v19  ;;  %4103 = vmatprep.subr.bf16.mxu0 %v7101_v26  ;;  %v7155_v26 = vld [vmem:[%s9574_s3 + $0x584] ss:$16 sps:$4 sm:$0xff]  }
 0x580   : > { %4088 = vmatprep.mubr.bf16.mxu1 %v8439_v21  ;;  %v7158_v0 = vld [vmem:[%s9574_s3 + $0x7c4] ss:$16 sps:$4 sm:$0xff]  }
 0x581   : > { %4089 = vmatmul.mubr.bf16.vlgmr.msra.gmra.mxu1 %v8435_v16  ;;  %v2297_v17 = vsel %vm1796_vm3, %v6916_v34, %v6911_v41  ;;  %v2298_v2 = vsel %vm1796_vm3, %v6917_v32, %v6912_v35  ;;  %v7203_v19 = vld [vmem:[%s9574_s3 + $0x844] ss:$16 sps:$4 sm:$0xff]  }
 0x582   : > { %4104 = vmatpush1.bf16.msra.mxu0 %v7099_v22  ;;  %4143 = vmatpush1.bf16.msra.mxu1 %v7102_v30  ;;  %v8474_v23 = vpack.c.bf16 %v2298_v2, %v2297_v17  ;;  %v7156_v22 = vld [vmem:[%s9574_s3 + $0x7c0] ss:$16 sps:$4 sm:$0xff]   ;;  %v7161_v30 = vld [vmem:[%s9574_s3 + $0x564] ss:$16 sps:$4 sm:$0xff]  }
 0x583   : > { %4105 = vmatprep.subr.bf16.mxu0 %v7107_v44  ;;  %4144 = vmatprep.subr.bf16.mxu1 %v7110_v4  ;;  %v7164_v44 = vld [vmem:[%s9574_s3 + $0x7a4] ss:$16 sps:$4 sm:$0xff]   ;;  %v7159_v4 = vld [vmem:[%s9574_s3 + $0x560] ss:$16 sps:$4 sm:$0xff]  }
 0x584   : > { %4131 = vmatprep.mubr.bf16.mxu0 %v8474_v23  ;;  %4174 = vmatprep.mubr.bf16.mxu1 %v8458_v13  ;;  %v7167_v17 = vld [vmem:[%s9574_s3 + $0x544] ss:$16 sps:$4 sm:$0xff]  }
 0x585   : > { %v7170_v2 = vld [vmem:[%s9574_s3 + $0x784] ss:$16 sps:$4 sm:$0xff]  }
 0x586   : > { %4106 = vmatpush1.bf16.msra.mxu0 %v7105_v20  ;;  %4145 = vmatpush1.bf16.msra.mxu1 %v7108_v25  ;;  %v7165_v20 = vld [vmem:[%s9574_s3 + $0x540] ss:$16 sps:$4 sm:$0xff]  }
 0x587   : > { %4107 = vmatprep.subr.bf16.mxu0 %v7113_v27  ;;  %4146 = vmatprep.subr.bf16.mxu1 %v7116_v28  ;;  %v7168_v25 = vld [vmem:[%s9574_s3 + $0x780] ss:$16 sps:$4 sm:$0xff]   ;;  %v7173_v27 = vld [vmem:[%s9574_s3 + $0x524] ss:$16 sps:$4 sm:$0xff]  }
 0x588   : > { %v7176_v28 = vld [vmem:[%s9574_s3 + $0x764] ss:$16 sps:$4 sm:$0xff]  }
 0x58a   : > { %4108 = vmatpush1.bf16.msra.mxu0 %v7111_v12  ;;  %4147 = vmatpush1.bf16.msra.mxu1 %v7114_v29  ;;  %v7171_v12 = vld [vmem:[%s9574_s3 + $0x520] ss:$16 sps:$4 sm:$0xff]  }
 0x58b   : > { %4109 = vmatprep.subr.bf16.mxu0 %v7119_v31  ;;  %4148 = vmatprep.subr.bf16.mxu1 %v7122_v10  ;;  %v7174_v29 = vld [vmem:[%s9574_s3 + $0x760] ss:$16 sps:$4 sm:$0xff]   ;;  %v7179_v31 = vld [vmem:[%s9574_s3 + $0x504] ss:$16 sps:$4 sm:$0xff]  }
 0x58c   : > { %v7182_v10 = vld [vmem:[%s9574_s3 + $0x744] ss:$16 sps:$4 sm:$0xff]  }
 0x58e   : > { %4110 = vmatpush1.bf16.msra.mxu0 %v7117_v33  ;;  %4149 = vmatpush1.bf16.msra.mxu1 %v7120_v36  ;;  %v7177_v33 = vld [vmem:[%s9574_s3 + $0x500] ss:$16 sps:$4 sm:$0xff]  }
 0x58f   : > { %4111 = vmatprep.subr.bf16.mxu0 %v7125_v37  ;;  %4150 = vmatprep.subr.bf16.mxu1 %v7128_v38  ;;  %v7180_v36 = vld [vmem:[%s9574_s3 + $0x740] ss:$16 sps:$4 sm:$0xff]   ;;  %v7185_v37 = vld [vmem:[%s9574_s3 + $0x724] ss:$16 sps:$4 sm:$0xff]  }
 0x590   : > { %v7188_v38 = vld [vmem:[%s9574_s3 + $0x8a4] ss:$16 sps:$4 sm:$0xff]  }
 0x592   : > { %4112 = vmatpush1.bf16.msra.mxu0 %v7123_v39  ;;  %4151 = vmatpush1.bf16.msra.mxu1 %v7126_v40  ;;  %v2268_v39 = vsel %vm1802_vm4, %v6907_v62, %v6917_v32  ;;  %v2267_v40 = vsel %vm1802_vm4, %v6906_v57, %v6916_v34  ;;  %v7194_v62 = vld [vmem:[%s9574_s3 + $0x884] ss:$16 sps:$4 sm:$0xff]   ;;  %v7189_v32 = vld [vmem:[%s9574_s3 + $0x700] ss:$16 sps:$4 sm:$0xff]  }
 0x593   : > { %4113 = vmatprep.subr.bf16.mxu0 %v7131_v42  ;;  %4152 = vmatprep.subr.bf16.mxu1 %v7134_v43  ;;  %v6920_v42 = vpop.permute.xlu1 %6919  ;;  %v7183_v43 = vld [vmem:[%s9574_s3 + $0x720] ss:$16 sps:$4 sm:$0xff]  }
 0x594   : > { %v6922_v57 = vunpack.i.h.bf16 %v6920_v42  ;;  %v6921_v63 = vunpack.i.l.bf16 %v6920_v42  ;;  %v7192_v34 = vld [vmem:[%s9574_s3 + $0x880] ss:$16 sps:$4 sm:$0xff]   ;;  %v7251_v42 = vld [vmem:[%s9574_s3 + $0x1cc] ss:$16 sps:$4 sm:$0xff]  }
 0x596   : > { %4114 = vmatpush1.bf16.msra.mxu0 %v7129_v45  ;;  %4153 = vmatpush1.bf16.msra.mxu1 %v7132_v46  ;;  %v7186_v45 = vld [vmem:[%s9574_s3 + $0x8a0] ss:$16 sps:$4 sm:$0xff]   ;;  %v8647_v46 = vpack.c.bf16 %v2268_v39, %v2267_v40  ;;  %v7243_v39 = vld [vmem:[%s9574_s3 + $0x1e8] ss:$16 sps:$4 sm:$0xff]  }
 0x597   : > { %4115 = vmatprep.subr.bf16.mxu0 %v7137_v47  ;;  %4154 = vmatprep.subr.bf16.mxu1 %v7140_v48  ;;  %v7197_v47 = vld [vmem:[%s9574_s3 + $0x864] ss:$16 sps:$4 sm:$0xff]   ;;  %v7200_v48 = vld [vmem:[%s9574_s3 + $0xec] ss:$16 sps:$4 sm:$0xff]   ;;  %v7246_v40 = vld [vmem:[%s9574_s3 + $0x268] ss:$16 sps:$4 sm:$0xff]  }
 0x59a   : > { %4116 = vmatpush2.bf16.msra.mxu0 %v7135_v49  ;;  %4155 = vmatpush1.bf16.msra.mxu1 %v7138_v50  ;;  %v2288_v49 = vsel %vm1796_vm3, %v6912_v35, %v6922_v57  ;;  %v2287_v50 = vsel %vm1796_vm3, %v6911_v41, %v6921_v63  ;;  %v7206_v35 = vld [vmem:[%s9574_s3 + $0xcc] ss:$16 sps:$4 sm:$0xff]   ;;  %v7201_v41 = vld [vmem:[%s9574_s3 + $0x840] ss:$16 sps:$4 sm:$0xff]   ;;  %v7255_v63 = vld [vmem:[%s9574_s3 + $0x1a8] ss:$16 sps:$4 sm:$0xff]  }
 0x59b   : > { %4117 = vmatprep.subr.bf16.mxu0 %v7143_v53  ;;  %4156 = vmatprep.subr.bf16.mxu1 %v7146_v54  ;;  %v7588_v53 = vmov 0   ;;  %v7195_v54 = vld [vmem:[%s9574_s3 + $0x860] ss:$16 sps:$4 sm:$0xff]   ;;  %v7260_v57 = vld [vmem:[%s9574_s3 + $0x22c] ss:$16 sps:$4 sm:$0xff]  }
 0x59e   : > { %4118 = vmatpush2.bf16.msra.mxu0 %v7141_v51  ;;  %4157 = vmatpush1.bf16.msra.mxu1 %v7144_v55  ;;  %v7198_v51 = vld [vmem:[%s9574_s3 + $0xe8] ss:$16 sps:$4 sm:$0xff]   ;;  %v8681_v55 = vpack.c.bf16 %v2288_v49, %v2287_v50  ;;  %v7269_v50 = vld [vmem:[%s9574_s3 + $0x16c] ss:$16 sps:$4 sm:$0xff]  }
 0x59f   : > { %4119 = vmatprep.subr.bf16.mxu0 %v7149_v24  ;;  %4158 = vmatprep.subr.bf16.mxu1 %v7152_v59  ;;  %v7204_v24 = vld [vmem:[%s9574_s3 + $0xc8] ss:$16 sps:$4 sm:$0xff]   ;;  %v7209_v59 = vld [vmem:[%s9574_s3 + $0x824] ss:$16 sps:$4 sm:$0xff]  }
 0x5a0   : > { %v7264_v49 = vld [vmem:[%s9574_s3 + $0x208] ss:$16 sps:$4 sm:$0xff]  }
 0x5a2   : > { %4120 = vmatpush2.bf16.msra.mxu0 %v7147_v60  ;;  %4159 = vmatpush2.bf16.msra.mxu1 %v7150_v61  ;;  %v7212_v60 = vld [vmem:[%s9574_s3 + $0xac] ss:$16 sps:$4 sm:$0xff]   ;;  %v7207_v61 = vld [vmem:[%s9574_s3 + $0x820] ss:$16 sps:$4 sm:$0xff]  }
 0x5a3   : > { %4121 = vmatprep.subr.bf16.mxu0 %v7155_v26  ;;  %4160 = vmatprep.subr.bf16.mxu1 %v7158_v0  ;;  %v7215_v26 = vld [vmem:[%s9574_s3 + $0x804] ss:$16 sps:$4 sm:$0xff]   ;;  %v7218_v0 = vld [vmem:[%s9574_s3 + $0x8c] ss:$16 sps:$4 sm:$0xff]  }
 0x5a6   : > { %4122 = vmatpush2.bf16.msra.mxu0 %v7153_v6  ;;  %4161 = vmatpush2.bf16.msra.mxu1 %v7156_v22  ;;  %v7213_v6 = vld [vmem:[%s9574_s3 + $0x800] ss:$16 sps:$4 sm:$0xff]   ;;  %v7216_v22 = vld [vmem:[%s9574_s3 + $0x88] ss:$16 sps:$4 sm:$0xff]  }
 0x5a7   : > { %4123 = vmatprep.subr.bf16.mxu0 %v7161_v30  ;;  %4162 = vmatprep.subr.bf16.mxu1 %v7164_v44  ;;  %v7221_v30 = vld [vmem:[%s9574_s3 + $0x6c] ss:$16 sps:$4 sm:$0xff]  }
 0x5a8   : > { %v7224_v44 = vld [vmem:[%s9574_s3 + $0x2ec] ss:$16 sps:$4 sm:$0xff]  }
 0x5aa   : > { %4124 = vmatpush2.bf16.msra.mxu0 %v7159_v4  ;;  %4163 = vmatpush2.bf16.msra.mxu1 %v7162_v8  ;;  %v2232_v4 = vpop.f32.mrf.mxu1  ;;  %v7219_v8 = vld [vmem:[%s9574_s3 + $0x68] ss:$16 sps:$4 sm:$0xff]  }
 0x5ab   : > { %4125 = vmatprep.subr.bf16.mxu0 %v7167_v17  ;;  %4164 = vmatprep.subr.bf16.mxu1 %v7170_v2  ;;  %v7222_v17 = vld [vmem:[%s9574_s3 + $0x2e8] ss:$16 sps:$4 sm:$0xff]   ;;  %v8734_v2 = vpack.c.bf16 %v2232_v4, %v8425_v58  ;;  %v7296_v4 = vld [vmem:[%s9574_s3 + $0x4ec] ss:$16 sps:$4 sm:$0xff]  }
 0x5ac   : > { %v7225_v58 = vld [vmem:[%s9574_s3 + $0x48] ss:$16 sps:$4 sm:$0xff]  }
 0x5ae   : > { %4126 = vmatpush2.bf16.msra.mxu0 %v7165_v20  ;;  %4165 = vmatpush2.bf16.msra.mxu1 %v7168_v25  ;;  %v7227_v20 = vld [vmem:[%s9574_s3 + $0x4c] ss:$16 sps:$4 sm:$0xff]  }
 0x5af   : > { %4127 = vmatprep.subr.bf16.mxu0 %v7173_v27  ;;  %4166 = vmatprep.subr.bf16.mxu1 %v7176_v28  ;;  %v7230_v25 = vld [vmem:[%s9574_s3 + $0x2cc] ss:$16 sps:$4 sm:$0xff]   ;;  %v7228_v27 = vld [vmem:[%s9574_s3 + $0x2c8] ss:$16 sps:$4 sm:$0xff]  }
 0x5b0   : > { %v7233_v28 = vld [vmem:[%s9574_s3 + $0x2c] ss:$16 sps:$4 sm:$0xff]  }
 0x5b2   : > { %4128 = vmatpush2.bf16.msra.mxu0 %v7171_v12  ;;  %4167 = vmatpush2.bf16.msra.mxu1 %v7174_v29  ;;  %v7236_v12 = vld [vmem:[%s9574_s3 + $0x2ac] ss:$16 sps:$4 sm:$0xff]   ;;  %v7231_v29 = vld [vmem:[%s9574_s3 + $0x28] ss:$16 sps:$4 sm:$0xff]  }
 0x5b3   : > { %4129 = vmatprep.subr.bf16.mxu0 %v7179_v31  ;;  %4168 = vmatprep.subr.bf16.mxu1 %v7182_v10  ;;  %v7239_v31 = vld [vmem:[%s9574_s3 + $0xc] ss:$16 sps:$4 sm:$0xff]  }
 0x5b4   : > { %v7242_v10 = vld [vmem:[%s9574_s3 + $0x28c] ss:$16 sps:$4 sm:$0xff]  }
 0x5b6   : > { %4130 = vmatpush2.bf16.msra.mxu0 %v7177_v33  ;;  %4169 = vmatpush2.bf16.msra.mxu1 %v7180_v36  ;;  %v7237_v33 = vld [vmem:[%s9574_s3 + $0x8] ss:$16 sps:$4 sm:$0xff]  }
 0x5b7   : > { %4170 = vmatprep.subr.bf16.mxu1 %v7185_v37  ;;  %4189 = vmatprep.subr.bf16.mxu0 %v7188_v38  ;;  %v7240_v36 = vld [vmem:[%s9574_s3 + $0x288] ss:$16 sps:$4 sm:$0xff]   ;;  %v7245_v37 = vld [vmem:[%s9574_s3 + $0x1ec] ss:$16 sps:$4 sm:$0xff]  }
 0x5b8   : > { %v7248_v38 = vld [vmem:[%s9574_s3 + $0x26c] ss:$16 sps:$4 sm:$0xff]  }
 0x5b9   : > { %4132 = vmatmul.mubr.bf16.vlgmr.msra.gmra.mxu0 %v8647_v46 }
 0x5ba   : > { %4171 = vmatpush2.bf16.msra.mxu1 %v7183_v43  ;;  %4190 = vmatpush1.bf16.msra.mxu0 %v7186_v45  ;;  %v7254_v43 = vld [vmem:[%s9574_s3 + $0x24c] ss:$16 sps:$4 sm:$0xff]   ;;  %v7249_v45 = vld [vmem:[%s9574_s3 + $0x1c8] ss:$16 sps:$4 sm:$0xff]  }
 0x5bb   : > { %4172 = vmatprep.subr.bf16.mxu1 %v7191_v56  ;;  %4191 = vmatprep.subr.bf16.mxu0 %v7194_v62  ;;  %v7252_v56 = vld [vmem:[%s9574_s3 + $0x248] ss:$16 sps:$4 sm:$0xff]   ;;  %v7257_v62 = vld [vmem:[%s9574_s3 + $0x1ac] ss:$16 sps:$4 sm:$0xff]  }
 0x5bc   : > { %4217 = vmatprep.mubr.bf16.mxu0 %v7588_v53 }
 0x5be   : > { %4173 = vmatpush2.bf16.msra.mxu1 %v7189_v32  ;;  %4192 = vmatpush1.bf16.msra.mxu0 %v7192_v34  ;;  %v7258_v32 = vld [vmem:[%s9574_s3 + $0x228] ss:$16 sps:$4 sm:$0xff]   ;;  %v7263_v34 = vld [vmem:[%s9574_s3 + $0x18c] ss:$16 sps:$4 sm:$0xff]  }
 0x5bf   : > { %4193 = vmatprep.subr.bf16.mxu0 %v7197_v47  ;;  %4228 = vmatprep.subr.bf16.mxu1 %v7200_v48  ;;  %v7266_v47 = vld [vmem:[%s9574_s3 + $0x20c] ss:$16 sps:$4 sm:$0xff]   ;;  %v7261_v48 = vld [vmem:[%s9574_s3 + $0x188] ss:$16 sps:$4 sm:$0xff]  }
 0x5c1   : > { %4175 = vmatmul.mubr.bf16.vlgmr.msra.gmra.mxu1 %v8681_v55 }
 0x5c2   : > { %4194 = vmatpush1.bf16.msra.mxu0 %v7195_v54  ;;  %4229 = vmatpush1.bf16.msra.mxu1 %v7198_v51  ;;  %v7272_v54 = vld [vmem:[%s9574_s3 + $0x3ec] ss:$16 sps:$4 sm:$0xff]   ;;  %v7267_v51 = vld [vmem:[%s9574_s3 + $0x168] ss:$16 sps:$4 sm:$0xff]  }
 0x5c3   : > { %4260 = vmatprep.mubr.bf16.mxu1 %v8403_v52  ;;  %4195 = vmatprep.subr.bf16.mxu0 %v7203_v19  ;;  %v7210_v52 = vld [vmem:[%s9574_s3 + $0xa8] ss:$16 sps:$4 sm:$0xff]  }
 0x5c4   : > { %4230 = vmatprep.subr.bf16.mxu1 %v7206_v35  ;;  %v7270_v19 = vld [vmem:[%s9574_s3 + $0x3e8] ss:$16 sps:$4 sm:$0xff]   ;;  %v7275_v35 = vld [vmem:[%s9574_s3 + $0x14c] ss:$16 sps:$4 sm:$0xff]  }
 0x5c6   : > { %4196 = vmatpush1.bf16.msra.mxu0 %v7201_v41  ;;  %4231 = vmatpush1.bf16.msra.mxu1 %v7204_v24  ;;  %v7278_v41 = vld [vmem:[%s9574_s3 + $0x3cc] ss:$16 sps:$4 sm:$0xff]   ;;  %v7273_v24 = vld [vmem:[%s9574_s3 + $0x148] ss:$16 sps:$4 sm:$0xff]  }
 0x5c7   : > { %4197 = vmatprep.subr.bf16.mxu0 %v7209_v59  ;;  %4232 = vmatprep.subr.bf16.mxu1 %v7212_v60  ;;  %v7276_v59 = vld [vmem:[%s9574_s3 + $0x3c8] ss:$16 sps:$4 sm:$0xff]   ;;  %v7281_v60 = vld [vmem:[%s9574_s3 + $0x12c] ss:$16 sps:$4 sm:$0xff]  }
 0x5ca   : > { %4198 = vmatpush1.bf16.msra.mxu0 %v7207_v61  ;;  %4233 = vmatpush1.bf16.msra.mxu1 %v7210_v52  ;;  %v7284_v61 = vld [vmem:[%s9574_s3 + $0x3ac] ss:$16 sps:$4 sm:$0xff]   ;;  %v7279_v52 = vld [vmem:[%s9574_s3 + $0x128] ss:$16 sps:$4 sm:$0xff]  }
 0x5cb   : > { %4199 = vmatprep.subr.bf16.mxu0 %v7215_v26  ;;  %4234 = vmatprep.subr.bf16.mxu1 %v7218_v0  ;;  %v7282_v26 = vld [vmem:[%s9574_s3 + $0x3a8] ss:$16 sps:$4 sm:$0xff]   ;;  %v7287_v0 = vld [vmem:[%s9574_s3 + $0x10c] ss:$16 sps:$4 sm:$0xff]  }
 0x5ce   : > { %4200 = vmatpush1.bf16.msra.mxu0 %v7213_v6  ;;  %4235 = vmatpush1.bf16.msra.mxu1 %v7216_v22  ;;  %v7290_v6 = vld [vmem:[%s9574_s3 + $0x38c] ss:$16 sps:$4 sm:$0xff]   ;;  %v7285_v22 = vld [vmem:[%s9574_s3 + $0x108] ss:$16 sps:$4 sm:$0xff]  }
 0x5cf   : > { %4236 = vmatprep.subr.bf16.mxu1 %v7221_v30  ;;  %4271 = vmatprep.subr.bf16.mxu0 %v7224_v44  ;;  %v7288_v30 = vld [vmem:[%s9574_s3 + $0x388] ss:$16 sps:$4 sm:$0xff]   ;;  %v7293_v44 = vld [vmem:[%s9574_s3 + $0x36c] ss:$16 sps:$4 sm:$0xff]  }
 0x5d1   : > { %6423 = vmatmul.mubr.msk.bf16.vlgmr.msra.gmra.mxu0 %vm1808_vm6, %v8734_v2 }
 0x5d2   : > { %4237 = vmatpush1.bf16.msra.mxu1 %v7219_v8  ;;  %4272 = vmatpush1.bf16.msra.mxu0 %v7222_v17  ;;  %v7291_v8 = vld [vmem:[%s9574_s3 + $0x368] ss:$16 sps:$4 sm:$0xff]  }
 0x5d3   : > { %4303 = vmatprep.mubr.bf16.mxu0 %v8439_v21  ;;  %4238 = vmatprep.subr.bf16.mxu1 %v7227_v20  ;;  %v7234_v21 = vld [vmem:[%s9574_s3 + $0x2a8] ss:$16 sps:$4 sm:$0xff]   ;;  %v7299_v20 = vld [vmem:[%s9574_s3 + $0x34c] ss:$16 sps:$4 sm:$0xff]  }
 0x5d4   : > { %4273 = vmatprep.subr.bf16.mxu0 %v7230_v25  ;;  %v7294_v17 = vld [vmem:[%s9574_s3 + $0x4e8] ss:$16 sps:$4 sm:$0xff]   ;;  %v7302_v25 = vld [vmem:[%s9574_s3 + $0x4cc] ss:$16 sps:$4 sm:$0xff]  }
 0x5d6   : > { %4239 = vmatpush1.bf16.msra.mxu1 %v7225_v58  ;;  %4274 = vmatpush1.bf16.msra.mxu0 %v7228_v27  ;;  %v7297_v58 = vld [vmem:[%s9574_s3 + $0x348] ss:$16 sps:$4 sm:$0xff]  }
 0x5d7   : > { %4240 = vmatprep.subr.bf16.mxu1 %v7233_v28  ;;  %4275 = vmatprep.subr.bf16.mxu0 %v7236_v12  ;;  %v7300_v27 = vld [vmem:[%s9574_s3 + $0x4c8] ss:$16 sps:$4 sm:$0xff]   ;;  %v7305_v28 = vld [vmem:[%s9574_s3 + $0x32c] ss:$16 sps:$4 sm:$0xff]  }
 0x5d8   : > { %v7303_v12 = vld [vmem:[%s9574_s3 + $0x328] ss:$16 sps:$4 sm:$0xff]  }
 0x5da   : > { %4241 = vmatpush1.bf16.msra.mxu1 %v7231_v29  ;;  %4276 = vmatpush1.bf16.msra.mxu0 %v7234_v21  ;;  %v7311_v29 = vld [vmem:[%s9574_s3 + $0x30c] ss:$16 sps:$4 sm:$0xff]  }
 0x5db   : > { %4242 = vmatprep.subr.bf16.mxu1 %v7239_v31  ;;  %4277 = vmatprep.subr.bf16.mxu0 %v7242_v10  ;;  %v7314_v21 = vld [vmem:[%s9574_s3 + $0x48c] ss:$16 sps:$4 sm:$0xff]   ;;  %v7309_v31 = vld [vmem:[%s9574_s3 + $0x308] ss:$16 sps:$4 sm:$0xff]  }
 0x5dc   : > { %v7312_v10 = vld [vmem:[%s9574_s3 + $0x488] ss:$16 sps:$4 sm:$0xff]  }
 0x5de   : > { %4243 = vmatpush1.bf16.msra.mxu1 %v7237_v33  ;;  %4278 = vmatpush1.bf16.msra.mxu0 %v7240_v36  ;;  %v7317_v33 = vld [vmem:[%s9574_s3 + $0x46c] ss:$16 sps:$4 sm:$0xff]  }
 0x5df   : > { %4244 = vmatprep.subr.bf16.mxu1 %v7245_v37  ;;  %4279 = vmatprep.subr.bf16.mxu0 %v7248_v38  ;;  %v7320_v36 = vld [vmem:[%s9574_s3 + $0x6ec] ss:$16 sps:$4 sm:$0xff]   ;;  %v7315_v37 = vld [vmem:[%s9574_s3 + $0x468] ss:$16 sps:$4 sm:$0xff]  }
 0x5e0   : > { %v7318_v38 = vld [vmem:[%s9574_s3 + $0x6e8] ss:$16 sps:$4 sm:$0xff]  }
 0x5e2   : > { %4245 = vmatpush2.bf16.msra.mxu1 %v7243_v39  ;;  %4280 = vmatpush1.bf16.msra.mxu0 %v7246_v40  ;;  %v7323_v39 = vld [vmem:[%s9574_s3 + $0x44c] ss:$16 sps:$4 sm:$0xff]  }
 0x5e3   : > { %4246 = vmatprep.subr.bf16.mxu1 %v7251_v42  ;;  %4281 = vmatprep.subr.bf16.mxu0 %v7254_v43  ;;  %v7326_v40 = vld [vmem:[%s9574_s3 + $0x6cc] ss:$16 sps:$4 sm:$0xff]   ;;  %v7321_v42 = vld [vmem:[%s9574_s3 + $0x448] ss:$16 sps:$4 sm:$0xff]  }
 0x5e4   : > { %v7324_v43 = vld [vmem:[%s9574_s3 + $0x6c8] ss:$16 sps:$4 sm:$0xff]  }
 0x5e6   : > { %4247 = vmatpush2.bf16.msra.mxu1 %v7249_v45  ;;  %4282 = vmatpush1.bf16.msra.mxu0 %v7252_v56  ;;  %v7329_v45 = vld [vmem:[%s9574_s3 + $0x42c] ss:$16 sps:$4 sm:$0xff]   ;;  %v7327_v56 = vld [vmem:[%s9574_s3 + $0x428] ss:$16 sps:$4 sm:$0xff]  }
 0x5e7   : > { %4248 = vmatprep.subr.bf16.mxu1 %v7257_v62  ;;  %4283 = vmatprep.subr.bf16.mxu0 %v7260_v57  ;;  %v7335_v62 = vld [vmem:[%s9574_s3 + $0x40c] ss:$16 sps:$4 sm:$0xff]  }
 0x5e8   : > { %v7338_v57 = vld [vmem:[%s9574_s3 + $0x68c] ss:$16 sps:$4 sm:$0xff]  }
 0x5ea   : > { %4249 = vmatpush2.bf16.msra.mxu1 %v7255_v63  ;;  %4284 = vmatpush1.bf16.msra.mxu0 %v7258_v32  ;;  %v7333_v63 = vld [vmem:[%s9574_s3 + $0x408] ss:$16 sps:$4 sm:$0xff]  }
 0x5eb   : > { %4250 = vmatprep.subr.bf16.mxu1 %v7263_v34  ;;  %4285 = vmatprep.subr.bf16.mxu0 %v7266_v47  ;;  %v7336_v32 = vld [vmem:[%s9574_s3 + $0x688] ss:$16 sps:$4 sm:$0xff]   ;;  %v7341_v34 = vld [vmem:[%s9574_s3 + $0x5ec] ss:$16 sps:$4 sm:$0xff]  }
 0x5ec   : > { %v7344_v47 = vld [vmem:[%s9574_s3 + $0x66c] ss:$16 sps:$4 sm:$0xff]  }
 0x5ee   : > { %4251 = vmatpush2.bf16.msra.mxu1 %v7261_v48  ;;  %4286 = vmatpush1.bf16.msra.mxu0 %v7264_v49  ;;  %v7339_v48 = vld [vmem:[%s9574_s3 + $0x5e8] ss:$16 sps:$4 sm:$0xff]  }
 0x5ef   : > { %4252 = vmatprep.subr.bf16.mxu1 %v7269_v50  ;;  %4287 = vmatprep.subr.bf16.mxu0 %v7272_v54  ;;  %v7342_v49 = vld [vmem:[%s9574_s3 + $0x668] ss:$16 sps:$4 sm:$0xff]   ;;  %v7347_v50 = vld [vmem:[%s9574_s3 + $0x5cc] ss:$16 sps:$4 sm:$0xff]  }
 0x5f0   : > { %v7350_v54 = vld [vmem:[%s9574_s3 + $0x64c] ss:$16 sps:$4 sm:$0xff]  }
 0x5f2   : > { %4253 = vmatpush2.bf16.msra.mxu1 %v7267_v51  ;;  %4288 = vmatpush2.bf16.msra.mxu0 %v7270_v19  ;;  %v7345_v51 = vld [vmem:[%s9574_s3 + $0x5c8] ss:$16 sps:$4 sm:$0xff]  }
 0x5f3   : > { %4254 = vmatprep.subr.bf16.mxu1 %v7275_v35  ;;  %4289 = vmatprep.subr.bf16.mxu0 %v7278_v41  ;;  %v7348_v19 = vld [vmem:[%s9574_s3 + $0x648] ss:$16 sps:$4 sm:$0xff]   ;;  %v7353_v35 = vld [vmem:[%s9574_s3 + $0x5ac] ss:$16 sps:$4 sm:$0xff]  }
 0x5f4   : > { %v7356_v41 = vld [vmem:[%s9574_s3 + $0x62c] ss:$16 sps:$4 sm:$0xff]  }
 0x5f6   : > { %4255 = vmatpush2.bf16.msra.mxu1 %v7273_v24  ;;  %4290 = vmatpush2.bf16.msra.mxu0 %v7276_v59  ;;  %v7351_v24 = vld [vmem:[%s9574_s3 + $0x5a8] ss:$16 sps:$4 sm:$0xff]  }
 0x5f7   : > { %4256 = vmatprep.subr.bf16.mxu1 %v7281_v60  ;;  %4291 = vmatprep.subr.bf16.mxu0 %v7284_v61  ;;  %v7354_v59 = vld [vmem:[%s9574_s3 + $0x628] ss:$16 sps:$4 sm:$0xff]   ;;  %v7359_v60 = vld [vmem:[%s9574_s3 + $0x58c] ss:$16 sps:$4 sm:$0xff]  }
 0x5f8   : > { %v7362_v61 = vld [vmem:[%s9574_s3 + $0x60c] ss:$16 sps:$4 sm:$0xff]  }
 0x5fa   : > { %4257 = vmatpush2.bf16.msra.mxu1 %v7279_v52  ;;  %4292 = vmatpush2.bf16.msra.mxu0 %v7282_v26  ;;  %v7357_v52 = vld [vmem:[%s9574_s3 + $0x588] ss:$16 sps:$4 sm:$0xff]  }
 0x5fb   : > { %4258 = vmatprep.subr.bf16.mxu1 %v7287_v0  ;;  %4293 = vmatprep.subr.bf16.mxu0 %v7290_v6  ;;  %v7360_v26 = vld [vmem:[%s9574_s3 + $0x608] ss:$16 sps:$4 sm:$0xff]   ;;  %v7365_v0 = vld [vmem:[%s9574_s3 + $0x56c] ss:$16 sps:$4 sm:$0xff]  }
 0x5fc   : > { %v7368_v6 = vld [vmem:[%s9574_s3 + $0x7ec] ss:$16 sps:$4 sm:$0xff]  }
 0x5fe   : > { %4259 = vmatpush2.bf16.msra.mxu1 %v7285_v22  ;;  %4294 = vmatpush2.bf16.msra.mxu0 %v7288_v30  ;;  %v7363_v22 = vld [vmem:[%s9574_s3 + $0x568] ss:$16 sps:$4 sm:$0xff]  }
 0x5ff   : > { %4295 = vmatprep.subr.bf16.mxu0 %v7293_v44  ;;  %4314 = vmatprep.subr.bf16.mxu1 %v7296_v4  ;;  %v7366_v30 = vld [vmem:[%s9574_s3 + $0x7e8] ss:$16 sps:$4 sm:$0xff]   ;;  %v7371_v44 = vld [vmem:[%s9574_s3 + $0x54c] ss:$16 sps:$4 sm:$0xff]  }
 0x600   : > { %v7374_v4 = vld [vmem:[%s9574_s3 + $0x7cc] ss:$16 sps:$4 sm:$0xff]  }
 0x601   : > { %4261 = vmatmul.mubr.bf16.vlgmr.msra.gmra.mxu1 %v8390_v18  ;;  %v7308_v18 = vld [vmem:[%s9574_s3 + $0x4ac] ss:$16 sps:$4 sm:$0xff]  }
 0x602   : > { %4296 = vmatpush2.bf16.msra.mxu0 %v7291_v8  ;;  %4315 = vmatpush1.bf16.msra.mxu1 %v7294_v17  ;;  %v7369_v8 = vld [vmem:[%s9574_s3 + $0x548] ss:$16 sps:$4 sm:$0xff]  }
 0x603   : > { %4346 = vmatprep.mubr.bf16.mxu1 %v8474_v23  ;;  %4297 = vmatprep.subr.bf16.mxu0 %v7299_v20  ;;  %v7306_v23 = vld [vmem:[%s9574_s3 + $0x4a8] ss:$16 sps:$4 sm:$0xff]   ;;  %v7377_v20 = vld [vmem:[%s9574_s3 + $0x52c] ss:$16 sps:$4 sm:$0xff]  }
 0x604   : > { %4316 = vmatprep.subr.bf16.mxu1 %v7302_v25  ;;  %v7372_v17 = vld [vmem:[%s9574_s3 + $0x7c8] ss:$16 sps:$4 sm:$0xff]   ;;  %v7380_v25 = vld [vmem:[%s9574_s3 + $0x7ac] ss:$16 sps:$4 sm:$0xff]  }
 0x606   : > { %4298 = vmatpush2.bf16.msra.mxu0 %v7297_v58  ;;  %4317 = vmatpush1.bf16.msra.mxu1 %v7300_v27  ;;  %v7375_v58 = vld [vmem:[%s9574_s3 + $0x528] ss:$16 sps:$4 sm:$0xff]  }
 0x607   : > { %4299 = vmatprep.subr.bf16.mxu0 %v7305_v28  ;;  %4318 = vmatprep.subr.bf16.mxu1 %v7308_v18  ;;  %v7378_v27 = vld [vmem:[%s9574_s3 + $0x7a8] ss:$16 sps:$4 sm:$0xff]   ;;  %v7383_v28 = vld [vmem:[%s9574_s3 + $0x50c] ss:$16 sps:$4 sm:$0xff]  }
 0x608   : > { %v7386_v18 = vld [vmem:[%s9574_s3 + $0x78c] ss:$16 sps:$4 sm:$0xff]  }
 0x60a   : > { %4300 = vmatpush2.bf16.msra.mxu0 %v7303_v12  ;;  %4319 = vmatpush1.bf16.msra.mxu1 %v7306_v23  ;;  %v7381_v12 = vld [vmem:[%s9574_s3 + $0x508] ss:$16 sps:$4 sm:$0xff]  }
 0x60b   : > { %4301 = vmatprep.subr.bf16.mxu0 %v7311_v29  ;;  %4320 = vmatprep.subr.bf16.mxu1 %v7314_v21  ;;  %v7384_v23 = vld [vmem:[%s9574_s3 + $0x788] ss:$16 sps:$4 sm:$0xff]   ;;  %v7389_v29 = vld [vmem:[%s9574_s3 + $0x76c] ss:$16 sps:$4 sm:$0xff]  }
 0x60c   : > { %v7392_v21 = vld [vmem:[%s9574_s3 + $0x8ac] ss:$16 sps:$4 sm:$0xff]  }
 0x60e   : > { %4302 = vmatpush2.bf16.msra.mxu0 %v7309_v31  ;;  %4321 = vmatpush1.bf16.msra.mxu1 %v7312_v10  ;;  %v7387_v31 = vld [vmem:[%s9574_s3 + $0x768] ss:$16 sps:$4 sm:$0xff]  }
 0x60f   : > { %4322 = vmatprep.subr.bf16.mxu1 %v7317_v33  ;;  %4357 = vmatprep.subr.bf16.mxu0 %v7320_v36  ;;  %v7390_v10 = vld [vmem:[%s9574_s3 + $0x8a8] ss:$16 sps:$4 sm:$0xff]   ;;  %v7395_v33 = vld [vmem:[%s9574_s3 + $0x74c] ss:$16 sps:$4 sm:$0xff]  }
 0x610   : > { %v7398_v36 = vld [vmem:[%s9574_s3 + $0x88c] ss:$16 sps:$4 sm:$0xff]  }
 0x611   : > { %4304 = vmatmul.mubr.bf16.vlgmr.msra.gmra.mxu0 %v8435_v16  ;;  %v7332_v16 = vld [vmem:[%s9574_s3 + $0x6ac] ss:$16 sps:$4 sm:$0xff]  }
 0x612   : > { %4323 = vmatpush1.bf16.msra.mxu1 %v7315_v37  ;;  %4358 = vmatpush1.bf16.msra.mxu0 %v7318_v38  ;;  %v7393_v37 = vld [vmem:[%s9574_s3 + $0x748] ss:$16 sps:$4 sm:$0xff]  }
 0x613   : > { %4389 = vmatprep.mubr.bf16.mxu0 %v8458_v13  ;;  %4324 = vmatprep.subr.bf16.mxu1 %v7323_v39  ;;  %v7330_v13 = vld [vmem:[%s9574_s3 + $0x6a8] ss:$16 sps:$4 sm:$0xff]   ;;  %v7401_v39 = vld [vmem:[%s9574_s3 + $0x72c] ss:$16 sps:$4 sm:$0xff]  }
 0x614   : > { %4359 = vmatprep.subr.bf16.mxu0 %v7326_v40  ;;  %v7396_v38 = vld [vmem:[%s9574_s3 + $0x888] ss:$16 sps:$4 sm:$0xff]  }
 0x615   : > { %v7399_v40 = vld [vmem:[%s9574_s3 + $0x728] ss:$16 sps:$4 sm:$0xff]  }
 0x616   : > { %4325 = vmatpush1.bf16.msra.mxu1 %v7321_v42  ;;  %4360 = vmatpush1.bf16.msra.mxu0 %v7324_v43  ;;  %v7402_v42 = vld [vmem:[%s9574_s3 + $0x868] ss:$16 sps:$4 sm:$0xff]   ;;  %v7407_v43 = vld [vmem:[%s9574_s3 + $0x70c] ss:$16 sps:$4 sm:$0xff]  }
 0x617   : > { %4326 = vmatprep.subr.bf16.mxu1 %v7329_v45  ;;  %4361 = vmatprep.subr.bf16.mxu0 %v7332_v16  ;;  %v7405_v45 = vld [vmem:[%s9574_s3 + $0x708] ss:$16 sps:$4 sm:$0xff]  }
 0x618   : > { %v7408_v16 = vld [vmem:[%s9574_s3 + $0x848] ss:$16 sps:$4 sm:$0xff]  }
 0x61a   : > { %4327 = vmatpush1.bf16.msra.mxu1 %v7327_v56  ;;  %4362 = vmatpush1.bf16.msra.mxu0 %v7330_v13  ;;  %v7413_v56 = vld [vmem:[%s9574_s3 + $0x82c] ss:$16 sps:$4 sm:$0xff]   ;;  %v7411_v13 = vld [vmem:[%s9574_s3 + $0x828] ss:$16 sps:$4 sm:$0xff]  }
 0x61b   : > { %4328 = vmatprep.subr.bf16.mxu1 %v7335_v62  ;;  %4363 = vmatprep.subr.bf16.mxu0 %v7338_v57  ;;  %v7416_v62 = vld [vmem:[%s9574_s3 + $0x80c] ss:$16 sps:$4 sm:$0xff]   ;;  %v7414_v57 = vld [vmem:[%s9574_s3 + $0x808] ss:$16 sps:$4 sm:$0xff]  }
 0x61e   : > { %4329 = vmatpush1.bf16.msra.mxu1 %v7333_v63  ;;  %4364 = vmatpush1.bf16.msra.mxu0 %v7336_v32 }
 0x61f   : > { %4330 = vmatprep.subr.bf16.mxu1 %v7341_v34  ;;  %4365 = vmatprep.subr.bf16.mxu0 %v7344_v47 }
 0x622   : > { %4331 = vmatpush2.bf16.msra.mxu1 %v7339_v48  ;;  %4366 = vmatpush1.bf16.msra.mxu0 %v7342_v49 }
 0x623   : > { %4332 = vmatprep.subr.bf16.mxu1 %v7347_v50  ;;  %4367 = vmatprep.subr.bf16.mxu0 %v7350_v54 }
 0x626   : > { %4333 = vmatpush2.bf16.msra.mxu1 %v7345_v51  ;;  %4368 = vmatpush1.bf16.msra.mxu0 %v7348_v19 }
 0x627   : > { %4334 = vmatprep.subr.bf16.mxu1 %v7353_v35  ;;  %4369 = vmatprep.subr.bf16.mxu0 %v7356_v41  ;;  %v2588_v35 = vld [vmem:[%s9575_s4] sm:$0xf] }
 0x62a   : > { %4335 = vmatpush2.bf16.msra.mxu1 %v7351_v24  ;;  %4370 = vmatpush1.bf16.msra.mxu0 %v7354_v59  ;;  %v2593_v59 = vrot.slane %v2588_v35, %v981_v3 }
 0x62b   : > { %4336 = vmatprep.subr.bf16.mxu1 %v7359_v60  ;;  %4371 = vmatprep.subr.bf16.mxu0 %v7362_v61 }
 0x62e   : > { %4337 = vmatpush2.bf16.msra.mxu1 %v7357_v52  ;;  %4372 = vmatpush1.bf16.msra.mxu0 %v7360_v26 }
 0x62f   : > { %4338 = vmatprep.subr.bf16.mxu1 %v7365_v0  ;;  %4373 = vmatprep.subr.bf16.mxu0 %v7368_v6 }
 0x632   : > { %4339 = vmatpush2.bf16.msra.mxu1 %v7363_v22  ;;  %4374 = vmatpush2.bf16.msra.mxu0 %v7366_v30 }
 0x633   : > { %4340 = vmatprep.subr.bf16.mxu1 %v7371_v44  ;;  %4375 = vmatprep.subr.bf16.mxu0 %v7374_v4 }
 0x636   : > { %4341 = vmatpush2.bf16.msra.mxu1 %v7369_v8  ;;  %4376 = vmatpush2.bf16.msra.mxu0 %v7372_v17 }
 0x637   : > { %4342 = vmatprep.subr.bf16.mxu1 %v7377_v20  ;;  %4377 = vmatprep.subr.bf16.mxu0 %v7380_v25 }
 0x639   : > { %v4047_v63 = vpop.f32.mrf.mxu0 }
 0x63a   : > { %4343 = vmatpush2.bf16.msra.mxu1 %v7375_v58  ;;  %4378 = vmatpush2.bf16.msra.mxu0 %v7378_v27  ;;  %v4048_v6 = vadd.f32 %v4047_v63, %v2593_v59 }
 0x63b   : > { %4344 = vmatprep.subr.bf16.mxu1 %v7383_v28  ;;  %4379 = vmatprep.subr.bf16.mxu0 %v7386_v18  ;;  %v4049_v32 = vpop.f32.mrf.mxu0 }
 0x63d   : > { %v4051_v47 = vpop.f32.mrf.mxu0 }
 0x63e   : > { %4345 = vmatpush2.bf16.msra.mxu1 %v7381_v12  ;;  %4380 = vmatpush2.bf16.msra.mxu0 %v7384_v23  ;;  %v4052_v60 = vadd.f32 %v4051_v47, %v2593_v59  ;;  %v2601_v47 = vrot.slane %v2588_v35, %v989_v5 }
 0x63f   : > { %4381 = vmatprep.subr.bf16.mxu0 %v7389_v29  ;;  %4404 = vmatprep.subr.bf16.mxu1 %v7392_v21 }
 0x641   : > { %4347 = vmatmul.mubr.bf16.vlgmr.msra.gmra.mxu1 %v8647_v46  ;;  %v7404_v46 = vld [vmem:[%s9574_s3 + $0x86c] ss:$16 sps:$4 sm:$0xff]   ;;  %v4090_v34 = vpop.f32.mrf.mxu1 }
 0x642   : > { %4382 = vmatpush2.bf16.msra.mxu0 %v7387_v31  ;;  %4405 = vmatpush1.bf16.msra.mxu1 %v7390_v10  ;;  %v4091_v8 = vadd.f32 %v4090_v34, %v4048_v6  ;;  %v2605_v34 = vrot.slane %v2588_v35, %v993_v11 }
 0x643   : > { %4383 = vmatprep.subr.bf16.mxu0 %v7395_v33  ;;  %4406 = vmatprep.subr.bf16.mxu1 %v7398_v36  ;;  %v4092_v48 = vpop.f32.mrf.mxu1 }
 0x644   : > { %4432 = vmatprep.mubr.bf16.mxu1 %v7588_v53  ;;  %v7410_v53 = vld [vmem:[%s9574_s3 + $0x84c] ss:$16 sps:$4 sm:$0xff]  }
 0x645   : > { %v4094_v49 = vpop.f32.mrf.mxu1 }
 0x646   : > { %4384 = vmatpush2.bf16.msra.mxu0 %v7393_v37  ;;  %4407 = vmatpush1.bf16.msra.mxu1 %v7396_v38  ;;  %v4095_v22 = vadd.f32 %v4094_v49, %v4052_v60 }
 0x647   : > { %4385 = vmatprep.subr.bf16.mxu0 %v7401_v39  ;;  %4408 = vmatprep.subr.bf16.mxu1 %v7404_v46  ;;  %v4096_v54 = vpop.f32.mrf.mxu1 }
 0x64a   : > { %4386 = vmatpush2.bf16.msra.mxu0 %v7399_v40  ;;  %4409 = vmatpush1.bf16.msra.mxu1 %v7402_v42 }
 0x64b   : > { %4387 = vmatprep.subr.bf16.mxu0 %v7407_v43  ;;  %4410 = vmatprep.subr.bf16.mxu1 %v7410_v53 }
 0x64e   : > { %4388 = vmatpush2.bf16.msra.mxu0 %v7405_v45  ;;  %4411 = vmatpush1.bf16.msra.mxu1 %v7408_v16 }
 0x64f   : > { %4412 = vmatprep.subr.bf16.mxu1 %v7413_v56 }
 0x651   : > { %4390 = vmatmul.mubr.bf16.vlgmr.msra.gmra.mxu0 %v8681_v55  ;;  %v4053_v55 = vpop.f32.mrf.mxu0 }
 0x652   : > { %4413 = vmatpush1.bf16.msra.mxu1 %v7411_v13  ;;  %4529 = vmatprep.mubr.f32.mxu0 %v7577_v15 }
 0x653   : > { %4414 = vmatprep.subr.bf16.mxu1 %v7416_v62 }
 0x656   : > { %4415 = vmatpush1.bf16.msra.mxu1 %v7414_v57 }
 0x659   : > { %6424 = vmatmul.mubr.msk.bf16.vlgmr.msra.gmra.mxu1 %vm1808_vm6, %v8734_v2  ;;  %v2597_v2 = vrot.slane %v2588_v35, %v985_v9 }
 0x65a   : > { %4600 = vmatprep.mubr.f32.mxu1 %v7577_v15 }
 0x65b   : > { %v4050_v26 = vadd.f32 %v4049_v32, %v2597_v2  ;;  %v4054_v0 = vadd.f32 %v4053_v55, %v2597_v2 }
 0x65d   : > { %v4093_v44 = vadd.f32 %v4092_v48, %v4050_v26  ;;  %v4097_v4 = vadd.f32 %v4096_v54, %v4054_v0 }
 0x679   : > { %v4133_v50 = vpop.f32.mrf.mxu0 }
 0x67a   : > { %v4134_v9 = vadd.f32 %v4133_v50, %v4091_v8 }
 0x67b   : > { %v4135_v51 = vpop.f32.mrf.mxu0 }
 0x67c   : > { %v4136_v58 = vadd.f32 %v4135_v51, %v4093_v44 }
 0x67d   : > { %v4137_v41 = vpop.f32.mrf.mxu0 }
 0x67e   : > { %v4138_v17 = vadd.f32 %v4137_v41, %v4095_v22 }
 0x67f   : > { %v4139_v61 = vpop.f32.mrf.mxu0 }
 0x680   : > { %v4140_v27 = vadd.f32 %v4139_v61, %v4097_v4 }
 0x681   : > { %v4176_v19 = vpop.f32.mrf.mxu1 }
 0x682   : > { %v4177_v23 = vadd.f32 %v4176_v19, %v4134_v9 }
 0x683   : > { %v4178_v24 = vpop.f32.mrf.mxu1 }
 0x684   : > { %v4179_v3 = vadd.f32 %v4178_v24, %v4136_v58 }
 0x685   : > { %v4180_v52 = vpop.f32.mrf.mxu1 }
 0x686   : > { %v4181_v28 = vadd.f32 %v4180_v52, %v4138_v17 }
 0x687   : > { %v4182_v20 = vpop.f32.mrf.mxu1 }
 0x688   : > { %v4183_v12 = vadd.f32 %v4182_v20, %v4140_v27 }
 0x691   : > { %v4219_v30 = vpop.f32.mrf.mxu0 }
 0x692   : > { %v4220_v33 = vadd.f32 %v4219_v30, %v4177_v23 }
 0x693   : > { %v4221_v25 = vpop.f32.mrf.mxu0 }
 0x694   : > { %v4222_v31 = vadd.f32 %v4221_v25, %v4179_v3  ;;  %v4443_v39 = vmax.f32 %v4220_v33, 0.0 }
 0x695   : > { %v4223_v18 = vpop.f32.mrf.mxu0 }
 0x696   : > { %v4224_v29 = vadd.f32 %v4223_v18, %v4181_v28  ;;  %v4444_v38 = vmax.f32 %v4222_v31, 0.0 }
 0x697   : > { %v4225_v21 = vpop.f32.mrf.mxu0 }
 0x698   : > { %v4226_v10 = vadd.f32 %v4225_v21, %v4183_v12  ;;  %v4447_v37 = vmax.f32 %v4224_v29, 0.0 }
 0x69a   : > { %v4448_v36 = vmax.f32 %v4226_v10, 0.0 }
 0x69c   : > { %6425 = vmatprep.subr.msk.mxu0 %vm1182_vm8, %v4448_v36 }
 0x69d   : > { %6426 = vmatpush1.msk.msra.mxu0 %vm1182_vm8, %v4447_v37 }
 0x69e   : > { %4495 = vmatprep.subr.mxu0 %v4444_v38 }
 0x69f   : > { %4496 = vmatpush1.msra.mxu0 %v4443_v39 }
 0x6a0   : > { %6427 = vmatmul.mubr.msk.f32.vlgmr.msra.gmra.mxu0 %vm1823_vm7, %v8053_v7  ;;  %6431 = vmatprep.subr.msk.mxu0 %vm1182_vm8, %v4448_v36 }
 0x6a1   : > { %6432 = vmatpush1.msk.msra.mxu0 %vm1182_vm8, %v4447_v37  ;;  %4673 = vmatprep.mubr.f32.mxu0 %v7577_v15 }
 0x6a2   : > { %4639 = vmatprep.subr.mxu0 %v4444_v38 }
 0x6a3   : > { %4640 = vmatpush1.msra.mxu0 %v4443_v39 }
 0x6a4   : > { %6433 = vmatmul.mubr.msk.f32.vlgmr.msra.gmra.mxu0 %vm1823_vm7, %v8075_v14 }
 0x6c1   : > { %v4262_v46 = vpop.f32.mrf.mxu1 }
 0x6c2   : > { %v4263_v51 = vadd.f32 %v4262_v46, %v2601_v47 }
 0x6c3   : > { %v4264_v40 = vpop.f32.mrf.mxu1 }
 0x6c4   : > { %v4265_v50 = vadd.f32 %v4264_v40, %v2605_v34 }
 0x6c5   : > { %v4266_v43 = vpop.f32.mrf.mxu1 }
 0x6c6   : > { %v4267_v48 = vadd.f32 %v4266_v43, %v2601_v47  ;;  %v7418_v43 = vld [vmem:[%s9576_s5 + $0x38] sm:$0xff]   ;;  %v7429_v47 = vld [vmem:[%s9576_s5 + $0x48] sm:$0xff]  }
 0x6c7   : > { %v4268_v45 = vpop.f32.mrf.mxu1 }
 0x6c8   : > { %v4269_v54 = vadd.f32 %v4268_v45, %v2605_v34  ;;  %v7420_v45 = vld [vmem:[%s9576_s5 + $0x30] sm:$0xff]  }
 0x6c9   : > { %v7428_v34 = vld [vmem:[%s9576_s5 + $0x10] sm:$0xff]  }
 0x6d1   : > { %v4305_v42 = vpop.f32.mrf.mxu0 }
 0x6d2   : > { %v4306_v59 = vadd.f32 %v4305_v42, %v4263_v51  ;;  %v7417_v42 = vld [vmem:[%s9576_s5 + $0x78] sm:$0xff]  }
 0x6d3   : > { %v4307_v53 = vpop.f32.mrf.mxu0  ;;  %6580 = vmatprep.subr.bf16.mxu0 %v7417_v42  ;;  %v7442_v42 = vld [vmem:[%s9576_s5 + $0x130] sm:$0xff]  }
 0x6d4   : > { %v4308_v24 = vadd.f32 %v4307_v53, %v4265_v50  ;;  %v7419_v53 = vld [vmem:[%s9576_s5 + $0x70] sm:$0xff]   ;;  %6581 = vmatpush3.bf16.msra.mxu0 %v7418_v43 }
 0x6d5   : > { %v4309_v16 = vpop.f32.mrf.mxu0  ;;  %6582 = vmatprep.subr.bf16.mxu0 %v7419_v53 }
 0x6d6   : > { %v4310_v19 = vadd.f32 %v4309_v16, %v4267_v48  ;;  %v7421_v16 = vld [vmem:[%s9576_s5 + $0x68] sm:$0xff]  }
 0x6d7   : > { %v4311_v13 = vpop.f32.mrf.mxu0  ;;  %v7430_v48 = vld [vmem:[%s9576_s5 + $0x8] sm:$0xff]  }
 0x6d8   : > { %v4312_v2 = vadd.f32 %v4311_v13, %v4269_v54  ;;  %6583 = vmatpush3.bf16.msra.mxu0 %v7420_v45  ;;  %v7423_v13 = vld [vmem:[%s9576_s5 + $0x60] sm:$0xff]   ;;  %v7444_v45 = vld [vmem:[%s9576_s5 + $0x168] sm:$0xff]  }
 0x6d9   : > { %6584 = vmatprep.subr.bf16.mxu0 %v7421_v16 }
 0x701   : > { %v4348_v56 = vpop.f32.mrf.mxu1 }
 0x702   : > { %v4349_v11 = vadd.f32 %v4348_v56, %v4306_v59  ;;  %v7422_v56 = vld [vmem:[%s9576_s5 + $0x28] sm:$0xff]  }
 0x703   : > { %v4350_v62 = vpop.f32.mrf.mxu1  ;;  %6585 = vmatpush3.bf16.msra.mxu0 %v7422_v56  ;;  %v7446_v56 = vld [vmem:[%s9576_s5 + $0x128] sm:$0xff]  }
 0x704   : > { %v4351_v26 = vadd.f32 %v4350_v62, %v4308_v24  ;;  %v7424_v62 = vld [vmem:[%s9576_s5 + $0x20] sm:$0xff]   ;;  %6586 = vmatprep.subr.bf16.mxu0 %v7423_v13 }
 0x705   : > { %v4352_v63 = vpop.f32.mrf.mxu1 }
 0x706   : > { %v4353_v60 = vadd.f32 %v4352_v63, %v4310_v19  ;;  %v7426_v63 = vld [vmem:[%s9576_s5 + $0x18] sm:$0xff]  }
 0x707   : > { %v4354_v55 = vpop.f32.mrf.mxu1  ;;  %6587 = vmatpush3.bf16.msra.mxu0 %v7424_v62  ;;  %v7448_v62 = vld [vmem:[%s9576_s5 + $0x160] sm:$0xff]  }
 0x708   : > { %v4355_v0 = vadd.f32 %v4354_v55, %v4312_v2  ;;  %v7431_v55 = vld [vmem:[%s9576_s5 + $0x40] sm:$0xff]  }
 0x711   : > { %v4391_v57 = vpop.f32.mrf.mxu0 }
 0x712   : > { %v4392_v22 = vadd.f32 %v4391_v57, %v4349_v11  ;;  %v7425_v57 = vld [vmem:[%s9576_s5 + $0x58] sm:$0xff]  }
 0x713   : > { %v4393_v32 = vpop.f32.mrf.mxu0  ;;  %6588 = vmatprep.subr.bf16.mxu0 %v7425_v57  ;;  %v7434_v11 = vld [vmem:[%s9576_s5 + $0xb8] sm:$0xff]   ;;  %v7450_v57 = vld [vmem:[%s9576_s5 + $0x120] sm:$0xff]  }
 0x714   : > { %v4394_v5 = vadd.f32 %v4393_v32, %v4351_v26  ;;  %v7427_v32 = vld [vmem:[%s9576_s5 + $0x50] sm:$0xff]   ;;  %6589 = vmatpush3.bf16.msra.mxu0 %v7426_v63  ;;  %v7452_v63 = vld [vmem:[%s9576_s5 + $0x158] sm:$0xff]  }
 0x715   : > { %v4395_v49 = vpop.f32.mrf.mxu0  ;;  %6590 = vmatprep.subr.bf16.mxu0 %v7427_v32  ;;  %v7454_v32 = vld [vmem:[%s9576_s5 + $0x118] sm:$0xff]  }
 0x716   : > { %v4396_v6 = vadd.f32 %v4395_v49, %v4353_v60  ;;  %v7432_v49 = vld [vmem:[%s9576_s5] sm:$0xff]  }
 0x717   : > { %v4397_v61 = vpop.f32.mrf.mxu0 }
 0x718   : > { %v4398_v35 = vadd.f32 %v4397_v61, %v4355_v0  ;;  %6591 = vmatpush3.bf16.msra.mxu0 %v7428_v34  ;;  %v7433_v0 = vld [vmem:[%s9576_s5 + $0xf8] sm:$0xff]   ;;  %v7456_v34 = vld [vmem:[%s9576_s5 + $0x150] sm:$0xff]  }
 0x719   : > { %v4434_v41 = vpop.f32.mrf.mxu1  ;;  %6592 = vmatprep.subr.bf16.mxu0 %v7429_v47  ;;  %v7458_v47 = vld [vmem:[%s9576_s5 + $0x110] sm:$0xff]  }
 0x71a   : > { %v4435_v17 = vadd.f32 %v4434_v41, %v4392_v22  ;;  %v7439_v22 = vld [vmem:[%s9576_s5 + $0xe8] sm:$0xff]  }
 0x71b   : > { %v4436_v52 = vpop.f32.mrf.mxu1 }
 0x71c   : > { %v4437_v4 = vadd.f32 %v4436_v52, %v4394_v5  ;;  %v4445_v27 = vmax.f32 %v4435_v17, 0.0  ;;  %6593 = vmatpush3.bf16.msra.mxu0 %v7430_v48  ;;  %v7447_v17 = vld [vmem:[%s9576_s5 + $0xd8] sm:$0xff]   ;;  %v7460_v48 = vld [vmem:[%s9576_s5 + $0x148] sm:$0xff]  }
 0x71d   : > { %v4438_v1 = vpop.f32.mrf.mxu1  ;;  %6594 = vmatprep.subr.bf16.mxu0 %v7431_v55  ;;  %v7462_v55 = vld [vmem:[%s9576_s5 + $0x108] sm:$0xff]  }
 0x71e   : > { %v4439_v30 = vadd.f32 %v4438_v1, %v4396_v6  ;;  %v4446_v58 = vmax.f32 %v4437_v4, 0.0  ;;  %v7435_v6 = vld [vmem:[%s9576_s5 + $0xf0] sm:$0xff]   ;;  %v7436_v1 = vld [vmem:[%s9576_s5 + $0x178] sm:$0xff]   ;;  %v7443_v4 = vld [vmem:[%s9576_s5 + $0xe0] sm:$0xff]  }
 0x71f   : > { %v4440_v44 = vpop.f32.mrf.mxu1 }
 0x720   : > { %v4441_v8 = vadd.f32 %v4440_v44, %v4398_v35  ;;  %v4449_v25 = vmax.f32 %v4439_v30, 0.0  ;;  %6595 = vmatpush3.bf16.msra.mxu0 %v7432_v49  ;;  %v7437_v35 = vld [vmem:[%s9576_s5 + $0xb0] sm:$0xff]   ;;  %v7441_v44 = vld [vmem:[%s9576_s5 + $0xa8] sm:$0xff]   ;;  %v7463_v49 = vld [vmem:[%s9576_s5 + $0x140] sm:$0xff]  }
 0x721   : > { %6624 = vmatprep.subr.bf16.mxu0 %v7436_v1 }
 0x722   : > { %v4450_v20 = vmax.f32 %v4441_v8, 0.0  ;;  %v7445_v8 = vld [vmem:[%s9576_s5 + $0xa0] sm:$0xff]  }
 0x724   : > { %6428 = vmatprep.subr.msk.mxu1 %vm1182_vm8, %v4450_v20 }
 0x725   : > { %6429 = vmatpush1.msk.msra.mxu1 %vm1182_vm8, %v4449_v25 }
 0x726   : > { %4566 = vmatprep.subr.mxu1 %v4446_v58 }
 0x727   : > { %4567 = vmatpush1.msra.mxu1 %v4445_v27 }
 0x728   : > { %6430 = vmatmul.mubr.msk.f32.vlgmr.msra.gmra.mxu1 %vm1823_vm7, %v8053_v7  ;;  %6434 = vmatprep.subr.msk.mxu1 %vm1182_vm8, %v4450_v20  ;;  %v7449_v20 = vld [vmem:[%s9576_s5 + $0x98] sm:$0xff]  }
 0x729   : > { %6435 = vmatpush1.msk.msra.mxu1 %vm1182_vm8, %v4449_v25  ;;  %4744 = vmatprep.mubr.f32.mxu1 %v7577_v15  ;;  %v7451_v25 = vld [vmem:[%s9576_s5 + $0xd0] sm:$0xff]   ;;  %vm7589_vm8 = vmmov 0  }
 0x72a   : > { %4710 = vmatprep.subr.mxu1 %v4446_v58  ;;  %v7453_v58 = vld [vmem:[%s9576_s5 + $0x90] sm:$0xff]  }
 0x72b   : > { %4711 = vmatpush1.msra.mxu1 %v4445_v27  ;;  %v7455_v27 = vld [vmem:[%s9576_s5 + $0xc8] sm:$0xff]  }
 0x72c   : > { %6436 = vmatmul.mubr.msk.f32.vlgmr.msra.gmra.mxu1 %vm1823_vm7, %v8075_v14  ;;  %6602 = vmatprep.subr.bf16.mxu1 %v7433_v0  ;;  %v7466_v0 = vld [vmem:[%s9576_s5 + $0x1b8] sm:$0xff]  }
 0x72d   : > { %6603 = vmatpush3.bf16.msra.mxu1 %v7434_v11 }
 0x72e   : > { %6604 = vmatprep.subr.bf16.mxu1 %v7435_v6 }
 0x731   : > { %6605 = vmatpush3.bf16.msra.mxu1 %v7437_v35 }
 0x732   : > { %6606 = vmatprep.subr.bf16.mxu1 %v7439_v22 }
 0x735   : > { %6607 = vmatpush3.bf16.msra.mxu1 %v7441_v44 }
 0x736   : > { %6608 = vmatprep.subr.bf16.mxu1 %v7443_v4  ;;  %v7469_v4 = vld [vmem:[%s9576_s5 + $0x1b0] sm:$0xff]  }
 0x739   : > { %6609 = vmatpush3.bf16.msra.mxu1 %v7445_v8  ;;  %v7470_v8 = vld [vmem:[%s9576_s5 + $0x238] sm:$0xff]  }
 0x73a   : > { %6610 = vmatprep.subr.bf16.mxu1 %v7447_v17 }
 0x73d   : > { %6611 = vmatpush3.bf16.msra.mxu1 %v7449_v20  ;;  %v7471_v20 = vld [vmem:[%s9576_s5 + $0x1e8] sm:$0xff]  }
 0x73e   : > { %6612 = vmatprep.subr.bf16.mxu1 %v7451_v25  ;;  %v7472_v25 = vld [vmem:[%s9576_s5 + $0x270] sm:$0xff]  }
 0x741   : > { %6613 = vmatpush3.bf16.msra.mxu1 %v7453_v58 }
 0x742   : > { %6614 = vmatprep.subr.bf16.mxu1 %v7455_v27  ;;  %v7473_v27 = vld [vmem:[%s9576_s5 + $0x1a8] sm:$0xff]  }
 0x760   : > { %v4531_v9 = vpop.f32.mrf.mxu0 }
 0x762   : > { %v4533_v28 = vpop.f32.mrf.mxu0 }
 0x764   : > { %v4675_v18 = vpop.f32.mrf.mxu0 }
 0x765   : > { %v4751_v3 = vmax.f32 %v4531_v9, %v4675_v18  ;;  %v7457_v9 = vld [vmem:[%s9576_s5 + $0x88] sm:$0xff]   ;;  %v7461_v18 = vld [vmem:[%s9576_s5 + $0x80] sm:$0xff]  }
 0x766   : > { %v4677_v12 = vpop.f32.mrf.mxu0  ;;  %6615 = vmatpush3.bf16.msra.mxu1 %v7457_v9  ;;  %v7474_v9 = vld [vmem:[%s9576_s5 + $0x230] sm:$0xff]  }
 0x767   : > { %v4752_v23 = vmax.f32 %v4533_v28, %v4677_v12  ;;  %v7459_v28 = vld [vmem:[%s9576_s5 + $0xc0] sm:$0xff]  }
 0x768   : > { %6616 = vmatprep.subr.bf16.mxu1 %v7459_v28  ;;  %v7475_v28 = vld [vmem:[%s9576_s5 + $0x1e0] sm:$0xff]  }
 0x769   : > { %v6923_v29 = vpack.i.bf16 %v4752_v23, %v4751_v3 }
 0x76a   : > { %6617 = vmatpush3.bf16.msra.mxu1 %v7461_v18  ;;  %v7476_v18 = vld [vmem:[%s9576_s5 + $0x268] sm:$0xff]  }
 0x76b   : > { %6924 = vrot.lane.b32.xlu0 %v6923_v29, %s7582_s9 }
 0x7dd   : > { %v6925_v7 = vpop.permute.xlu0 %6924 }
 0x7de   : > { %v6927_v21 = vunpack.i.h.bf16 %v6925_v7  ;;  %v6926_v31 = vunpack.i.l.bf16 %v6925_v7 }
 0x7e0   : > { %v4759_v10 = vmax.f32 %v4751_v3, %v6926_v31  ;;  %v4764_v33 = vmax.f32 %v4752_v23, %v6927_v21  ;;  %v7464_v3 = vld [vmem:[%s9576_s5 + $0x1f8] sm:$0xff]  }
 0x7e1   : > { %6646 = vmatprep.subr.bf16.mxu1 %v7464_v3  ;;  %v7477_v3 = vld [vmem:[%s9576_s5 + $0x1a0] sm:$0xff]  }
 0x7e2   : > { %4776 = vrot.lane.b32.xlu0 %v4759_v10, %s7582_s9 }
 0x7e6   : > { %4783 = vrot.lane.b32.xlu0 %v4764_v33, %s7586_s16 }
 0x7e8   : > { %v4602_v36 = vpop.f32.mrf.mxu1 }
 0x7ea   : > { %v4604_v14 = vpop.f32.mrf.mxu1 }
 0x7ec   : > { %v4746_v37 = vpop.f32.mrf.mxu1 }
 0x7ed   : > { %v4753_v39 = vmax.f32 %v4602_v36, %v4746_v37 }
 0x7ee   : > { %v4748_v38 = vpop.f32.mrf.mxu1 }
 0x7ef   : > { %v4754_v46 = vmax.f32 %v4604_v14, %v4748_v38  ;;  %v7438_v38 = vld [vmem:[%s9576_s5 + $0x138] sm:$0xff]  }
 0x7f1   : > { %v6928_v40 = vpack.i.bf16 %v4754_v46, %v4753_v39 }
 0x7f3   : > { %6929 = vrot.lane.b32.xlu1 %v6928_v40, %s7582_s9  ;;  %v7440_v40 = vld [vmem:[%s9576_s5 + $0x170] sm:$0xff]  }
 0x7f7   : > { %4780 = vrot.lane.b32.xlu1 %v4764_v33, %s7583_s13 }
 0x854   : > { %v4777_v50 = vpop.permute.xlu0 %4776 }
 0x855   : > { %v4794_v2 = vsel %vm1796_vm3, %v4759_v10, %v4777_v50  ;;  %v7465_v50 = vld [vmem:[%s9576_s5 + $0x100] sm:$0xff]  }
 0x858   : > { %v4784_v60 = vpop.permute.xlu0 %4783 }
 0x865   : > { %v6930_v54 = vpop.permute.xlu1 %6929 }
 0x866   : > { %v6932_v51 = vunpack.i.h.bf16 %v6930_v54  ;;  %v6931_v19 = vunpack.i.l.bf16 %v6930_v54  ;;  %v7468_v54 = vld [vmem:[%s9576_s5 + $0x278] sm:$0xff]  }
 0x868   : > { %v4774_v41 = vmax.f32 %v4754_v46, %v6932_v51  ;;  %v4769_v24 = vmax.f32 %v4753_v39, %v6931_v19 }
 0x869   : > { %v4781_v59 = vpop.permute.xlu1 %4780 }
 0x86a   : > { %v4795_v61 = vsel %vm1802_vm4, %v4794_v2, %v4781_v59  ;;  %4787 = vrot.lane.b32.xlu1 %v4769_v24, %s7582_s9  ;;  %4791 = vrot.lane.b32.xlu0 %v4774_v41, %s7583_s13 }
 0x86b   : > { %v9221_v52 = vsel %vm1808_vm6, %v4795_v61, %v4784_v60 }
 0x86c   : > { %v4801_v26 = vrot.slane %v9221_v52, 1  ;;  %v4811_v5 = vrot.slane %v9221_v52, 2  ;;  %v4821_v30 = vrot.slane %v9221_v52, 3  ;;  %v4834_v31 = vrot.slane %v9221_v52, 5 }
 0x86d   : > { %v4859_v39 = vpack.c.bf16 %v9221_v52, %v9221_v52  ;;  %v4844_v16 = vrot.slane %v9221_v52, 6 }
 0x86e   : > { %4803 = vrot.lane.b32.xlu1 %v4801_v26, %s7582_s9 }
 0x872   : > { %4813 = vrot.lane.b32.xlu1 %v4811_v5, %s7583_s13 }
 0x876   : > { %4823 = vrot.lane.b32.xlu1 %v4821_v30, %s7586_s16 }
 0x8dc   : > { %v4788_v12 = vpop.permute.xlu1 %4787  ;;  %v4792_v23 = vpop.permute.xlu0 %4791 }
 0x8dd   : > { %v4797_v29 = vsel %vm1796_vm3, %v4769_v24, %v4788_v12  ;;  %v4830_v24 = vrot.slane %v9221_v52, 4  ;;  %v7467_v52 = vld [vmem:[%s9576_s5 + $0x1f0] sm:$0xff]   ;;  %v7478_v12 = vld [vmem:[%s9576_s5 + $0x228] sm:$0xff]  }
 0x8de   : > { %v9285_v7 = vsel %vm1802_vm4, %v4797_v29, %v4792_v23  ;;  %v7479_v23 = vld [vmem:[%s9576_s5 + $0x1d8] sm:$0xff]   ;;  %v7480_v29 = vld [vmem:[%s9576_s5 + $0x260] sm:$0xff]  }
 0x8df   : > { %v4802_v21 = vrot.slane %v9285_v7, 1  ;;  %v4835_v10 = vrot.slane %v9285_v7, 5  ;;  %v4812_v46 = vrot.slane %v9285_v7, 2  ;;  %v4822_v43 = vrot.slane %v9285_v7, 3 }
 0x8e0   : > { %v4804_v33 = vpop.permute.xlu1 %4803  ;;  %v4845_v53 = vrot.slane %v9285_v7, 6  ;;  %v4866_v5 = vpack.c.bf16 %v4830_v24, %v4830_v24  ;;  %v7503_v24 = vld [vmem:[%s9576_s5 + $0x2a8] sm:$0xff]  }
 0x8e1   : > { %v4854_v36 = vsel %vm1808_vm6, %v9285_v7, %v4804_v33  ;;  %4805 = vrot.lane.b32.xlu0 %v4802_v21, %s7582_s9  ;;  %v6933_v14 = vpack.i.bf16 %v4835_v10, %v4834_v31  ;;  %v7481_v21 = vld [vmem:[%s9576_s5 + $0x198] sm:$0xff]   ;;  %v7482_v31 = vld [vmem:[%s9576_s5 + $0x220] sm:$0xff]   ;;  %v7483_v10 = vld [vmem:[%s9576_s5 + $0x1d0] sm:$0xff]  }
 0x8e2   : > { %v4860_v37 = vpack.c.bf16 %v4854_v36, %v4854_v36  ;;  %v6938_v13 = vpack.i.bf16 %v4845_v53, %v4844_v16  ;;  %v7492_v53 = vld [vmem:[%s9576_s5 + $0x248] sm:$0xff]  }
 0x8e3   : > { %6934 = vrot.lane.b32.xlu1 %v6933_v14, %s7582_s9  ;;  %v7485_v14 = vld [vmem:[%s9576_s5 + $0x190] sm:$0xff]   ;;  %s6536_s9 = sshll.u32 %s7652_s28, 4  ;;  %s7519_s28 = sshll.u32 %s7590_s23, 4  ;;  %s7520_s28 = int_to_ptr.vmem [resolvable:$false] %s7519_s28 }
 0x8e4   : > { %5692 = vmatprep.mubr.bf16.mxu0 %v4860_v37  ;;  %v4814_v51 = vpop.permute.xlu1 %4813  ;;  %v7486_v37 = vld [vmem:[%s9576_s5 + $0x218] sm:$0xff]   ;;  %s5953_s20 = scalar_lea.hbm %s9578_s7, %s6536_s9 }
 0x8e5   : > { %5693 = vmatmul.mubr.bf16.vlgmr.msra.gmra.mxu0 %v4859_v39  ;;  %4815 = vrot.lane.b32.xlu0 %v4812_v46, %s7583_s13  ;;  %v7488_v39 = vld [vmem:[%s9576_s5 + $0x250] sm:$0xff]   ;;  %v7489_v46 = vld [vmem:[%s9576_s5 + $0x188] sm:$0xff]  }
 0x8e6   : > { %6625 = vmatpush3.bf16.msra.mxu0 %v7438_v38  ;;  %v7487_v38 = vld [vmem:[%s9576_s5 + $0x1c8] sm:$0xff]  }
 0x8e7   : > { %6626 = vmatprep.subr.bf16.mxu0 %v7440_v40  ;;  %v7490_v40 = vld [vmem:[%s9576_s5 + $0x210] sm:$0xff]  }
 0x8e8   : > { %v9351_v19 = vpop.permute.xlu1 %4823 }
 0x8e9   : > { %4825 = vrot.lane.b32.xlu0 %v4822_v43, %s7586_s16  ;;  %v7491_v43 = vld [vmem:[%s9576_s5 + $0x1c0] sm:$0xff]   ;;  %s7521_s16 = scalar_lea.vmem %s7520_s28, 32 }
 0x8ea   : > { %6627 = vmatpush3.bf16.msra.mxu0 %v7442_v42 }
 0x8eb   : > { %6628 = vmatprep.subr.bf16.mxu0 %v7444_v45 }
 0x8ed   : > { %6939 = vrot.lane.b32.xlu0 %v6938_v13, %s7583_s13  ;;  %v7494_v13 = vld [vmem:[%s9576_s5 + $0x208] sm:$0xff]   ;;  %s270_s13 = scalar_lea.vmem [#allocation2], %s269_s14 }
 0x8ee   : > { %6629 = vmatpush3.bf16.msra.mxu0 %v7446_v56  ;;  %v7493_v56 = vld [vmem:[%s9576_s5 + $0x180] sm:$0xff]   ;;  %s5955_s15 = sshll.u32 %s270_s13, 4  ;;  %s5956_s15 = int_to_ptr.vmem [resolvable:$true] %s5955_s15 }
 0x8ef   : > { %6630 = vmatprep.subr.bf16.mxu0 %v7448_v62  ;;  %v7495_v62 = vld [vmem:[%s9576_s5 + $0x240] sm:$0xff]   ;;  %s7515_s22 = scalar_lea.vmem %s5956_s15, 16  ;;  %p7522_p0 = scmp.lt.s32.totalorder %s5956_s15, %s7520_s28 }
 0x8f0   : > { %p7516_p11 = scmp.ne.s32.totalorder %s5956_s15, %s7515_s22  ;;  %p7523_p1 = scmp.lt.s32.totalorder %s7521_s16, %s7515_s22 }
 0x8f2   : > { %6631 = vmatpush3.bf16.msra.mxu0 %v7450_v57  ;;  %v7496_v57 = vld [vmem:[%s9576_s5 + $0x2f8] sm:$0xff]   ;;  %p7517_p12 = pnand %p7516_p11, %p7669_p5  ;;  %p7524_p2 = por %p7523_p1, %p7522_p0 }
 0x8f3   : > { %6632 = vmatprep.subr.bf16.mxu0 %v7452_v63 }
 0x8f4   : > { %p7518_p13 = pneg %p7517_p12 }
 0x8f6   : > { %6633 = vmatpush3.bf16.msra.mxu0 %v7454_v32  ;;  %v4831_v32 = vrot.slane %v9285_v7, 4  ;;  %v7499_v7 = vld [vmem:[%s9576_s5 + $0x2f0] sm:$0xff]   ;;  %p7525_p3 = pnand %p7524_p2, %p7518_p13 }
 0x8f7   : > { %6634 = vmatprep.subr.bf16.mxu0 %v7456_v34  ;;  %v7497_v34 = vld [vmem:[%s9576_s5 + $0x200] sm:$0xff]  }
 0x8fa   : > { %6635 = vmatpush3.bf16.msra.mxu0 %v7458_v47  ;;  %v7498_v47 = vld [vmem:[%s9576_s5 + $0x2b8] sm:$0xff]  }
 0x8fb   : > { %6636 = vmatprep.subr.bf16.mxu0 %v7460_v48 }
 0x8fe   : > { %6637 = vmatpush3.bf16.msra.mxu0 %v7462_v55 }
 0x8ff   : > { %6638 = vmatprep.subr.bf16.mxu0 %v7463_v49 }
 0x902   : > { %6639 = vmatpush3.bf16.msra.mxu0 %v7465_v50 }
 0x903   : > { %6668 = vmatprep.subr.bf16.mxu0 %v7468_v54  ;;  %v7500_v54 = vld [vmem:[%s9576_s5 + $0x2b0] sm:$0xff]  }
 0x953   : > { %v4806_v41 = vpop.permute.xlu0 %4805 }
 0x954   : > { %v4807_v2 = vsel %vm1808_vm6, %v4804_v33, %v4806_v41  ;;  %v4855_v59 = vsel %vm1802_vm4, %v4806_v41, %v4814_v51  ;;  %v7484_v33 = vld [vmem:[%s9576_s5 + $0x258] sm:$0xff]   ;;  %v7502_v41 = vld [vmem:[%s9576_s5 + $0x2e8] sm:$0xff]  }
 0x955   : > { %v4861_v60 = vpack.c.bf16 %v4807_v2, %v4807_v2  ;;  %v4862_v61 = vpack.c.bf16 %v4855_v59, %v4855_v59  ;;  %v9356_v26 = vpop.permute.xlu1 %6934  ;;  %v7504_v2 = vld [vmem:[%s9576_s5 + $0x300] sm:$0xff]  }
 0x956   : > { %v6937_v11 = vunpack.i.h.bf16 %v9356_v26  ;;  %v6936_v6 = vunpack.i.l.bf16 %v9356_v26  ;;  %v7505_v59 = vld [vmem:[%s9576_s5 + $0x2e0] sm:$0xff]  }
 0x957   : > { %5732 = vmatprep.mubr.bf16.mxu1 %v4862_v61  ;;  %v4816_v1 = vpop.permute.xlu0 %4815 }
 0x958   : > { %v4817_v35 = vsel %vm1802_vm4, %v4814_v51, %v4816_v1  ;;  %v4856_v22 = vsel %vm1796_vm3, %v4816_v1, %v9351_v19  ;;  %5733 = vmatmul.mubr.bf16.vlgmr.msra.gmra.mxu1 %v4861_v60  ;;  %v4840_v17 = vsel %vm1808_vm6, %v6936_v6, %v6937_v11  ;;  %v4857_v49 = vsel %vm1808_vm6, %v4831_v32, %v6936_v6  ;;  %v7501_v51 = vld [vmem:[%s9576_s5 + $0x308] sm:$0xff]   ;;  %v7506_v60 = vld [vmem:[%s9576_s5 + $0x2a0] sm:$0xff]   ;;  %v7508_v6 = vld [vmem:[%s9576_s5 + $0x298] sm:$0xff]  }
 0x959   : > { %v4863_v30 = vpack.c.bf16 %v4817_v35, %v4817_v35  ;;  %v4864_v44 = vpack.c.bf16 %v4856_v22, %v4856_v22  ;;  %6647 = vmatpush3.bf16.msra.mxu1 %v7466_v0  ;;  %5812 = vmatprep.mubr.bf16.mxu1 %v4866_v5  ;;  %v4868_v58 = vpack.c.bf16 %v4840_v17, %v4840_v17  ;;  %v7507_v0 = vld [vmem:[%s9576_s5 + $0x2d8] sm:$0xff]   ;;  %v7511_v1 = vld [vmem:[%s9576_s5 + $0x2c8] sm:$0xff]   ;;  %v7513_v35 = vld [vmem:[%s9576_s5 + $0x2c0] sm:$0xff]  }
 0x95a   : > { %6648 = vmatprep.subr.bf16.mxu1 %v7467_v52  ;;  %v7510_v52 = vld [vmem:[%s9576_s5 + $0x290] sm:$0xff]   ;;  %v7512_v5 = vld [vmem:[%s9576_s5 + $0x288] sm:$0xff]   ;;  %v7514_v22 = vld [vmem:[%s9576_s5 + $0x280] sm:$0xff]  }
 0x95b   : > { %5772 = vmatprep.mubr.bf16.mxu0 %v4864_v44  ;;  %v4826_v36 = vpop.permute.xlu0 %4825 }
 0x95c   : > { %5773 = vmatmul.mubr.bf16.vlgmr.msra.gmra.mxu0 %v4863_v30  ;;  %v4827_v63 = vsel %vm1796_vm3, %v9351_v19, %v4826_v36  ;;  %v4867_v19 = vpack.c.bf16 %v4857_v49, %v4857_v49 }
 0x95d   : > { %6649 = vmatpush3.bf16.msra.mxu1 %v7469_v4  ;;  %6669 = vmatpush3.bf16.msra.mxu0 %v7470_v8  ;;  %v4865_v55 = vpack.c.bf16 %v4827_v63, %v4827_v63 }
 0x95e   : > { %5852 = vmatprep.mubr.bf16.mxu0 %v4868_v58  ;;  %6650 = vmatprep.subr.bf16.mxu1 %v7471_v20 }
 0x95f   : > { %6670 = vmatprep.subr.bf16.mxu0 %v7472_v25  ;;  %v9440_v42 = vpop.permute.xlu0 %6939 }
 0x960   : > { %v6942_v45 = vunpack.i.h.bf16 %v9440_v42  ;;  %v6941_v16 = vunpack.i.l.bf16 %v9440_v42 }
 0x961   : > { %6651 = vmatpush3.bf16.msra.mxu1 %v7473_v27  ;;  %6671 = vmatpush3.bf16.msra.mxu0 %v7474_v9 }
 0x962   : > { %6652 = vmatprep.subr.bf16.mxu1 %v7475_v28  ;;  %6672 = vmatprep.subr.bf16.mxu0 %v7476_v18  ;;  %v4850_v48 = vsel %vm1802_vm4, %v6941_v16, %v6942_v45  ;;  %v4871_v61 = vpack.c.bf16 %v6942_v45, %v6942_v45  ;;  %v4858_v30 = vsel %vm1802_vm4, %v6937_v11, %v6941_v16 }
 0x963   : > { %v4870_v50 = vpack.c.bf16 %v4850_v48, %v4850_v48  ;;  %v4869_v44 = vpack.c.bf16 %v4858_v30, %v4858_v30 }
 0x965   : > { %6653 = vmatpush3.bf16.msra.mxu1 %v7477_v3  ;;  %6673 = vmatpush3.bf16.msra.mxu0 %v7478_v12 }
 0x966   : > { %6654 = vmatprep.subr.bf16.mxu1 %v7479_v23  ;;  %6674 = vmatprep.subr.bf16.mxu0 %v7480_v29 }
 0x969   : > { %6655 = vmatpush3.bf16.msra.mxu1 %v7481_v21  ;;  %6675 = vmatpush3.bf16.msra.mxu0 %v7482_v31 }
 0x96a   : > { %6656 = vmatprep.subr.bf16.mxu1 %v7483_v10  ;;  %6676 = vmatprep.subr.bf16.mxu0 %v7484_v33 }
 0x96d   : > { %6657 = vmatpush3.bf16.msra.mxu1 %v7485_v14  ;;  %6677 = vmatpush3.bf16.msra.mxu0 %v7486_v37 }
 0x96e   : > { %6658 = vmatprep.subr.bf16.mxu1 %v7487_v38  ;;  %6678 = vmatprep.subr.bf16.mxu0 %v7488_v39 }
 0x971   : > { %6659 = vmatpush3.bf16.msra.mxu1 %v7489_v46  ;;  %6679 = vmatpush3.bf16.msra.mxu0 %v7490_v40  ;;  %v5068_v46 = vld [vmem:[%s9577_s6] sm:$0x1] }
 0x972   : > { %6660 = vmatprep.subr.bf16.mxu1 %v7491_v43  ;;  %6680 = vmatprep.subr.bf16.mxu0 %v7492_v53 }
 0x975   : > { %6661 = vmatpush3.bf16.msra.mxu1 %v7493_v56  ;;  %6681 = vmatpush3.bf16.msra.mxu0 %v7494_v13 }
 0x976   : > { %6682 = vmatprep.subr.bf16.mxu0 %v7495_v62  ;;  %6690 = vmatprep.subr.bf16.mxu1 %v7496_v57 }
 0x978   : > { %5813 = vmatmul.mubr.bf16.vlgmr.msra.gmra.mxu1 %v4865_v55 }
 0x979   : > { %6683 = vmatpush3.bf16.msra.mxu0 %v7497_v34  ;;  %6691 = vmatpush3.bf16.msra.mxu1 %v7498_v47 }
 0x97a   : > { %5892 = vmatprep.mubr.bf16.mxu1 %v4870_v50  ;;  %6692 = vmatprep.subr.bf16.mxu1 %v7499_v7 }
 0x97b   : > { %6785 = vmatprep.subr.bf16.mxu0 %v7577_v15 }
 0x97c   : > { %5853 = vmatmul.mubr.bf16.vlgmr.msra.gmra.mxu0 %v4867_v19 }
 0x97d   : > { %6693 = vmatpush3.bf16.msra.mxu1 %v7500_v54  ;;  %6786 = vmatpush3.bf16.msra.mxu0 %v7501_v51 }
 0x97e   : > { %6694 = vmatprep.subr.bf16.mxu1 %v7502_v41  ;;  %6787 = vmatprep.subr.bf16.mxu0 %v7577_v15 }
 0x97f   : > { %6789 = vmatprep.mubr.msk.bf16.mxu0 %vm7589_vm8, %v7577_v15  ;;  %v7509_v15 = vld [vmem:[%s9576_s5 + $0x2d0] sm:$0xff]  }
 0x981   : > { %6695 = vmatpush3.bf16.msra.mxu1 %v7503_v24  ;;  %6788 = vmatpush3.bf16.msra.mxu0 %v7504_v2 }
 0x982   : > { %6696 = vmatprep.subr.bf16.mxu1 %v7505_v59 }
 0x984   : > { %6790 = vmatmul.mubr.msk.bf16.vlgmr.msra.gmra.mxu0 %vm1796_vm3, %v4871_v61 }
 0x985   : > { %6697 = vmatpush3.bf16.msra.mxu1 %v7506_v60 }
 0x986   : > { %6698 = vmatprep.subr.bf16.mxu1 %v7507_v0 }
 0x989   : > { %6699 = vmatpush3.bf16.msra.mxu1 %v7508_v6 }
 0x98a   : > { %6700 = vmatprep.subr.bf16.mxu1 %v7509_v15 }
 0x98d   : > { %6701 = vmatpush3.bf16.msra.mxu1 %v7510_v52 }
 0x98e   : > { %6702 = vmatprep.subr.bf16.mxu1 %v7511_v1 }
 0x991   : > { %6703 = vmatpush3.bf16.msra.mxu1 %v7512_v5 }
 0x992   : > { %6704 = vmatprep.subr.bf16.mxu1 %v7513_v35 }
 0x995   : > { %6705 = vmatpush3.bf16.msra.mxu1 %v7514_v22 }
 0x998   : > { %5893 = vmatmul.mubr.bf16.vlgmr.msra.gmra.mxu1 %v4869_v44 }
 0x9a5   : > { %v6596_v4 = vpop.f32.mrf.mxu0 }
 0x9a7   : > { %v6597_v8 = vpop.f32.mrf.mxu0 }
 0x9a8   : > { %v6598_v17 = vadd.f32 %v6597_v8, %v6596_v4 }
 0x9a9   : > { %v6599_v20 = vpop.f32.mrf.mxu0 }
 0x9aa   : > { %v5695_v42 = vadd.f32 %v6598_v17, %v5068_v46 }
 0x9ab   : > { %v6600_v25 = vpop.f32.mrf.mxu0 }
 0xa18   : > { %v6618_v58 = vpop.f32.mrf.mxu1 }
 0xa1a   : > { %v6619_v27 = vpop.f32.mrf.mxu1 }
 0xa1b   : > { %v6620_v40 = vadd.f32 %v6619_v27, %v6618_v58 }
 0xa1c   : > { %v6621_v9 = vpop.f32.mrf.mxu1  ;;  %v6640_v28 = vpop.f32.mrf.mxu0 }
 0xa1d   : > { %v5735_v53 = vadd.f32 %v6620_v40, %v5695_v42 }
 0xa1e   : > { %v6622_v18 = vpop.f32.mrf.mxu1  ;;  %v6641_v3 = vpop.f32.mrf.mxu0 }
 0xa1f   : > { %v6642_v43 = vadd.f32 %v6641_v3, %v6640_v28 }
 0xa20   : > { %v6643_v12 = vpop.f32.mrf.mxu0 }
 0xa21   : > { %v5775_v16 = vadd.f32 %v6642_v43, %v5735_v53 }
 0xa22   : > { %v6644_v23 = vpop.f32.mrf.mxu0 }
 0xa38   : > { %v6662_v29 = vpop.f32.mrf.mxu1 }
 0xa3a   : > { %v6663_v26 = vpop.f32.mrf.mxu1 }
 0xa3b   : > { %v6664_v45 = vadd.f32 %v6663_v26, %v6662_v29 }
 0xa3c   : > { %v6665_v21 = vpop.f32.mrf.mxu1  ;;  %v6684_v11 = vpop.f32.mrf.mxu0 }
 0xa3d   : > { %v5815_v62 = vadd.f32 %v6664_v45, %v5775_v16 }
 0xa3e   : > { %v6666_v31 = vpop.f32.mrf.mxu1  ;;  %v6685_v10 = vpop.f32.mrf.mxu0 }
 0xa3f   : > { %v6686_v56 = vadd.f32 %v6685_v10, %v6684_v11 }
 0xa40   : > { %v6687_v33 = vpop.f32.mrf.mxu0 }
 0xa41   : > { %v5855_v63 = vadd.f32 %v6686_v56, %v5815_v62 }
 0xa42   : > { %v6688_v36 = vpop.f32.mrf.mxu0 }
 0xa44   : > { %v5934_v14 = vpop.f32.mrf.mxu0 }
 0xa46   : > { %v6791_v37 = vpop.f32.mrf.mxu0 }
 0xa48   : > { %v5937_v38 = vpop.f32.mrf.mxu0 }
 0xa4a   : > { %v6792_v39 = vpop.f32.mrf.mxu0 }
 0xa58   : > { %v6706_v13 = vpop.f32.mrf.mxu1 }
 0xa5a   : > { %v6707_v57 = vpop.f32.mrf.mxu1 }
 0xa5b   : > { %v6708_v32 = vadd.f32 %v6707_v57, %v6706_v13 }
 0xa5c   : > { %v6709_v34 = vpop.f32.mrf.mxu1 }
 0xa5d   : > { %v5895_v47 = vadd.f32 %v6708_v32, %v5855_v63 }
 0xa5e   : > { %v6710_v48 = vpop.f32.mrf.mxu1 }
 0xa5f   : > { %v5935_v55 = vadd.f32 %v5934_v14, %v5895_v47 }
 0xa61   : > { %5941 = vst.msk [vmem:[%s270_s13] sm:$0x1] %vm5940_vm9, %v5935_v55 }
 0xa62   : > { %7528 = shalt.err (!%p7525_p3)
}
 0xa63   : > { %s7529_s29 = scalar_lea.hbm %s5953_s20, 16  ;;  %s7533_s14 = scalar_lea.hbm %s9578_s7, 32 }
 0xa64   : > { %p7530_p4 = scmp.ne.s32.totalorder %s5953_s20, %s7529_s29  ;;  %p7534_p9 = scmp.lt.s32.totalorder %s5953_s20, %s9578_s7 }
 0xa65   : > { %p7535_p10 = scmp.lt.s32.totalorder %s7533_s14, %s7529_s29 }
 0xa66   : > { %p7531_p7 = pnand %p7530_p4, %p7669_p5 }
 0xa67   : > { %p7536_p11 = por %p7535_p10, %p7534_p9 }
 0xa68   : > { %p7532_p8 = pneg %p7531_p7 }
 0xa6a   : > { %p7537_p12 = pnand %p7536_p11, %p7532_p8 }
 0xa6c   : > { %7540 = shalt.err (!%p7537_p12)
}
 0xa6d   : > { %6801 = dma.vmem_to_hbm [thread:$0]  (%p7669_p5), %s5956_s15, 16, %s5953_s20, %s5943_s21  }
 0xa6e PF: > { %p6807_p13 = scmp.ge.s32.totalorder %s7575_s27, 2  ;;  %s5967_s17 = sand.u32 1, %s7563_s24  }
 0xa6f   : > { %s5968_s19 = scalar_lea.sflag [#allocation3], %s5967_s17 }
 0xa70   : > { %p6804_p0 = pnand %p6807_p13, %p7673_p6 }
 0xa72   : > { %p6805_p1 = pneg %p6804_p0 }
 0xa74   : > { %7558 = dma.done.wait (%p6805_p1), %s5968_s19, 16  }
 0xa75   : > { %7560 = vsyncadd (%p6805_p1), %s5968_s19, 4294967280  ;;  %p17_p2 = scmp.ge.s32.totalorder %s7656_s30, 4   ;;  %s9581_s24 = smov %s7567_s25 }
 0xa76   : > { %s9582_s25 = smov %s7571_s26  ;;  %s9583_s26 = smov %s7667_s10 }
 0xa77   : > { %s9584_s27 = smov %s7656_s30  ;;  %19 = sbr.rel (!%p17_p2) target bundleno = 3 (0x3), region = 83 }
 0xa7c   :  { %5972 = vsyncpa [#allocation3], 1 }
 0xa7d   :  { %5974 = vsyncpa [#allocation3 + $0x1], 1 }

</bundles_post_ra>
